<compile_context>
chip_gen: v7x
topology: tpu7x:2x2x1
jax: 0.10.0
libtpu: 0.0.40
codegen_flags: <defaults>
</compile_context>

<pallas_src>
import functools
import numpy as np
import jax
import jax.numpy as jnp
from jax import lax
from jax.experimental import pallas as pl
from jax.experimental.pallas import tpu as pltpu

LN_EPS = 1e-5


# ---------------- config ----------------
class Config:
    n_enc_vocab = 32
    n_enc_seq = 8
    i_pad = 0
    n_layer = 2
    d_embed = 32
    n_heads = 4
    d_k = 8
    d_v = 8
    d_ff = 64
    dropout = 0.0  # identity (eval mode)


# ---------------- sinusoidal table (same math as reference) ----------------
def get_sinusoid_encoding_table(n_seq, d_embed):
    def cal_angle(position, i_embed):
        return position / np.power(10000, 2 * (i_embed // 2) / d_embed)

    def get_posi_angle_vec(position):
        return [cal_angle(position, i) for i in range(d_embed)]

    table = np.array([get_posi_angle_vec(i) for i in range(n_seq)])
    table[:, 0::2] = np.sin(table[:, 0::2])
    table[:, 1::2] = np.cos(table[:, 1::2])
    return table.astype(np.float32)


# ---------------- fused kernel ----------------
def _layer_norm(y, gamma, beta):
    mean = jnp.mean(y, axis=-1, keepdims=True)
    var = jnp.mean((y - mean) ** 2, axis=-1, keepdims=True)
    return (y - mean) * lax.rsqrt(var + LN_EPS) * gamma + beta


def encoder_stack_kernel(x_ref, maskadd_ref,
                         wqkv_ref, bqkv_ref, wo_ref, bo_ref, g1_ref, be1_ref,
                         w1_ref, bf1_ref, w2_ref, bf2_ref, g2_ref, be2_ref,
                         out_ref, *, n_layer, n_heads, d_k, d_v, batch, seq):
    HDk = n_heads * d_k
    HDv = n_heads * d_v
    x = x_ref[...].astype(jnp.float32)                      # (B*S, D) fp32

    def dot_bf16(a, b):
        # MXU inputs in bf16, fp32 accumulation.
        return jnp.dot(a.astype(jnp.bfloat16), b.astype(jnp.bfloat16),
                       preferred_element_type=jnp.float32)

    for l in range(n_layer):                                # statically unrolled
        # ---- multi-head self attention ----
        # fused QKV projection (1/sqrt(d_k) already folded into W_Q at init)
        qkv = dot_bf16(x, wqkv_ref[l]) + bqkv_ref[l]        # (B*S, 3*H*d_k)

        batch_ctx = []
        for b in range(batch):
            rows = slice(b * seq, (b + 1) * seq)
            qb = qkv[rows, 0:HDk]
            kb = qkv[rows, HDk:2 * HDk]
            vb = qkv[rows, 2 * HDk:2 * HDk + HDv]
            madd = maskadd_ref[b]                           # (S, S) additive mask, fp32

            head_ctx = []
            for h in range(n_heads):
                qh = qb[:, h * d_k:(h + 1) * d_k].astype(jnp.bfloat16)
                kh = kb[:, h * d_k:(h + 1) * d_k].astype(jnp.bfloat16)
                vh = vb[:, h * d_v:(h + 1) * d_v].astype(jnp.bfloat16)
                # scores = qh @ kh^T  (contract last dims, no explicit transpose)
                s = lax.dot_general(qh, kh, (((1,), (1,)), ((), ())),
                                    preferred_element_type=jnp.float32) + madd
                m = jnp.max(s, axis=-1, keepdims=True)
                e = jnp.exp(s - m)
                p = e * pl.reciprocal(jnp.sum(e, axis=-1, keepdims=True), approx=True)
                head_ctx.append(jnp.dot(p.astype(jnp.bfloat16), vh,
                                        preferred_element_type=jnp.float32))
            batch_ctx.append(jnp.concatenate(head_ctx, axis=-1))   # (S, H*d_v)
        ctx = jnp.concatenate(batch_ctx, axis=0)                    # (B*S, H*d_v)

        # single lane-dense output projection + residual + LayerNorm
        attn_out = dot_bf16(ctx, wo_ref[l]) + bo_ref[l]             # (B*S, D)
        x = _layer_norm(attn_out + x, g1_ref[l], be1_ref[l])

        # ---- position-wise FFN (Conv1d k=1 == per-position linear) ----
        h1 = jnp.maximum(dot_bf16(x, w1_ref[l]) + bf1_ref[l], 0.0)  # (B*S, d_ff)
        o = dot_bf16(h1, w2_ref[l]) + bf2_ref[l]                    # (B*S, D)
        x = _layer_norm(o + x, g2_ref[l], be2_ref[l])

    out_ref[...] = x.astype(out_ref.dtype)


# ---------------- wrappers ----------------
def _full_spec(shape):
    nd = len(shape)
    return pl.BlockSpec(shape, lambda i, _nd=nd: (0,) * _nd)


def encoder_layers(x_emb, mask_add, p, cfg):
    """Run all encoder layers in one fused pallas_call. x_emb: (B, S, D)."""
    B, S, D = x_emb.shape
    x_flat = x_emb.reshape(B * S, D)                        # fold batch into sublanes

    kernel = functools.partial(
        encoder_stack_kernel,
        n_layer=cfg.n_layer, n_heads=cfg.n_heads,
        d_k=cfg.d_k, d_v=cfg.d_v, batch=B, seq=S)

    operands = (x_flat, mask_add,
                p["wqkv"], p["bqkv"], p["wo"], p["bo"], p["g1"], p["be1"],
                p["w1"], p["bf1"], p["w2"], p["bf2"], p["g2"], p["be2"])
    in_specs = [_full_spec(op.shape) for op in operands]
    out_specs = _full_spec((B * S, D))

    out = pl.pallas_call(
        kernel,
        out_shape=jax.ShapeDtypeStruct((B * S, D), jnp.float32),
        grid_spec=pltpu.PrefetchScalarGridSpec(
            num_scalar_prefetch=0, grid=(1,),
            in_specs=in_specs, out_specs=out_specs),
        compiler_params=pltpu.CompilerParams(dimension_semantics=("arbitrary",)),
    )(*operands)
    return out.reshape(B, S, D)


def encoder_forward(enc_inputs, params, cfg):
    """Matches Encoder.forward of the PyTorch reference."""
    B, S = enc_inputs.shape
    not_pad = (enc_inputs != cfg.i_pad)

    # positions = cumsum(ones) * (1 - is_pad)  -> pad positions get index 0
    positions = jnp.arange(1, S + 1, dtype=jnp.int32)[None, :] * not_pad.astype(jnp.int32)

    tok_emb = jnp.take(params["enc_emb"], enc_inputs, axis=0)      # (B, S, D)
    pos_emb = jnp.take(params["pos_emb"], positions, axis=0)       # (B, S, D)
    x_emb = tok_emb + pos_emb

    # get_attn_pad_mask: True where the KEY token is pad
    pad_mask = jnp.broadcast_to((enc_inputs == cfg.i_pad)[:, None, :], (B, S, S))
    mask_add = pad_mask.astype(jnp.float32) * jnp.float32(-1e9)     # additive mask

    enc_outputs = encoder_layers(x_emb, mask_add, params["layers"], cfg)

    # NOTE: the reference EncoderLayer.forward returns enc_self_attn_mask (not the
    # attention probabilities), so the per-layer "attn" list is the mask itself.
    enc_self_attn_mask = pad_mask.astype(jnp.uint8)
    enc_self_attns = [enc_self_attn_mask for _ in range(cfg.n_layer)]
    return enc_outputs, enc_self_attns


# ---------------- deterministic parameter init ----------------
def init_params(key, cfg):
    D, H, dk, dv, F, L = (cfg.d_embed, cfg.n_heads, cfg.d_k, cfg.d_v,
                          cfg.d_ff, cfg.n_layer)
    keys = jax.random.split(key, 1 + L)
    s = 0.02
    enc_emb = jax.random.normal(keys[0], (cfg.n_enc_vocab, D), jnp.float32)
    pos_emb = jnp.asarray(get_sinusoid_encoding_table(cfg.n_enc_seq + 1, D))

    scale = 1.0 / np.sqrt(float(dk))   # folded into W_Q (and b_Q, which is zero here)
    wqkv, bqkv, wo, bo, g1, be1, w1, bf1, w2, bf2, g2, be2 = ([] for _ in range(12))
    for l in range(L):
        kq, kk, kv, ko, k1, k2 = jax.random.split(keys[1 + l], 6)
        wq = jax.random.normal(kq, (D, H * dk), jnp.float32) * s * scale
        wk = jax.random.normal(kk, (D, H * dk), jnp.float32) * s
        wv = jax.random.normal(kv, (D, H * dv), jnp.float32) * s
        wqkv.append(jnp.concatenate([wq, wk, wv], axis=1))          # (D, 3*H*dk)
        bqkv.append(jnp.zeros((1, 2 * H * dk + H * dv), jnp.float32))
        wo.append(jax.random.normal(ko, (H * dv, D), jnp.float32) * s)
        bo.append(jnp.zeros((1, D), jnp.float32))
        g1.append(jnp.ones((1, D), jnp.float32)); be1.append(jnp.zeros((1, D), jnp.float32))
        w1.append(jax.random.normal(k1, (D, F), jnp.float32) * s)   # conv1 (k=1) as linear
        bf1.append(jnp.zeros((1, F), jnp.float32))
        w2.append(jax.random.normal(k2, (F, D), jnp.float32) * s)   # conv2 (k=1) as linear
        bf2.append(jnp.zeros((1, D), jnp.float32))
        g2.append(jnp.ones((1, D), jnp.float32)); be2.append(jnp.zeros((1, D), jnp.float32))

    stack = lambda xs: jnp.stack(xs, axis=0)
    layers = {
        # MXU operands stored in bf16 (fp32 accumulation in-kernel); biases/LN in fp32.
        "wqkv": stack(wqkv).astype(jnp.bfloat16), "bqkv": stack(bqkv),
        "wo":   stack(wo).astype(jnp.bfloat16),   "bo":   stack(bo),
        "g1":   stack(g1), "be1": stack(be1),
        "w1":   stack(w1).astype(jnp.bfloat16),   "bf1":  stack(bf1),
        "w2":   stack(w2).astype(jnp.bfloat16),   "bf2":  stack(bf2),
        "g2":   stack(g2), "be2": stack(be2),
    }
    return {"enc_emb": enc_emb, "pos_emb": pos_emb, "layers": layers}


if __name__ == "__main__":
    cfg = Config()
    B, S = 2, cfg.n_enc_seq

    key = jax.random.PRNGKey(0)
    k_tok, k_par = jax.random.split(key)

    enc_inputs = jax.random.randint(k_tok, (B, S), 1, cfg.n_enc_vocab, dtype=jnp.int32)
    enc_inputs = enc_inputs.at[1, -2:].set(cfg.i_pad)   # some pad tokens to exercise the mask

    params = init_params(k_par, cfg)

    enc_outputs, enc_self_attns = encoder_forward(enc_inputs, params, cfg)
    jax.block_until_ready((enc_outputs, enc_self_attns))

    assert enc_outputs.shape == (B, S, cfg.d_embed)
    assert len(enc_self_attns) == cfg.n_layer
    assert enc_self_attns[0].shape == (B, S, S)
    assert bool(jnp.all(jnp.isfinite(enc_outputs)))
    print("KERNEL_OK")
</pallas_src>

<mosaic_0001>
module attributes {stable_mosaic.version = 11 : i64} {
  func.func @encoder_stack_kernel(%arg0: i32, %arg1: memref<16x32xf32, #tpu.memory_space<vmem>>, %arg2: memref<2x8x8xf32, #tpu.memory_space<vmem>>, %arg3: memref<2x32x96xbf16, #tpu.memory_space<vmem>>, %arg4: memref<2x1x96xf32, #tpu.memory_space<vmem>>, %arg5: memref<2x32x32xbf16, #tpu.memory_space<vmem>>, %arg6: memref<2x1x32xf32, #tpu.memory_space<vmem>>, %arg7: memref<2x1x32xf32, #tpu.memory_space<vmem>>, %arg8: memref<2x1x32xf32, #tpu.memory_space<vmem>>, %arg9: memref<2x32x64xbf16, #tpu.memory_space<vmem>>, %arg10: memref<2x1x64xf32, #tpu.memory_space<vmem>>, %arg11: memref<2x64x32xbf16, #tpu.memory_space<vmem>>, %arg12: memref<2x1x32xf32, #tpu.memory_space<vmem>>, %arg13: memref<2x1x32xf32, #tpu.memory_space<vmem>>, %arg14: memref<2x1x32xf32, #tpu.memory_space<vmem>>, %arg15: memref<16x32xf32, #tpu.memory_space<vmem>>) attributes {dimension_semantics = [#tpu.dimension_semantics<arbitrary>], iteration_bounds = array<i64: 1>, scalar_prefetch = 0 : i64, scratch_operands = 0 : i64, tpu.core_type = #tpu.core_type<tc>, window_params = [{pipeline_mode = #tpu.pipeline_mode<synchronous>, transform_indices = @transform_0, window_bounds = array<i64: 16, 32>}, {pipeline_mode = #tpu.pipeline_mode<synchronous>, transform_indices = @transform_1, window_bounds = array<i64: 2, 8, 8>}, {pipeline_mode = #tpu.pipeline_mode<synchronous>, transform_indices = @transform_2, window_bounds = array<i64: 2, 32, 96>}, {pipeline_mode = #tpu.pipeline_mode<synchronous>, transform_indices = @transform_3, window_bounds = array<i64: 2, 1, 96>}, {pipeline_mode = #tpu.pipeline_mode<synchronous>, transform_indices = @transform_4, window_bounds = array<i64: 2, 32, 32>}, {pipeline_mode = #tpu.pipeline_mode<synchronous>, transform_indices = @transform_5, window_bounds = array<i64: 2, 1, 32>}, {pipeline_mode = #tpu.pipeline_mode<synchronous>, transform_indices = @transform_6, window_bounds = array<i64: 2, 1, 32>}, {pipeline_mode = #tpu.pipeline_mode<synchronous>, transform_indices = @transform_7, window_bounds = array<i64: 2, 1, 32>}, {pipeline_mode = #tpu.pipeline_mode<synchronous>, transform_indices = @transform_8, window_bounds = array<i64: 2, 32, 64>}, {pipeline_mode = #tpu.pipeline_mode<synchronous>, transform_indices = @transform_9, window_bounds = array<i64: 2, 1, 64>}, {pipeline_mode = #tpu.pipeline_mode<synchronous>, transform_indices = @transform_10, window_bounds = array<i64: 2, 64, 32>}, {pipeline_mode = #tpu.pipeline_mode<synchronous>, transform_indices = @transform_11, window_bounds = array<i64: 2, 1, 32>}, {pipeline_mode = #tpu.pipeline_mode<synchronous>, transform_indices = @transform_12, window_bounds = array<i64: 2, 1, 32>}, {pipeline_mode = #tpu.pipeline_mode<synchronous>, transform_indices = @transform_13, window_bounds = array<i64: 2, 1, 32>}, {pipeline_mode = #tpu.pipeline_mode<synchronous>, transform_indices = @transform_14, window_bounds = array<i64: 16, 32>}]} {
    %c0 = arith.constant 0 : index
    %c0_0 = arith.constant 0 : index
    %0 = vector.load %arg1[%c0, %c0_0] : memref<16x32xf32, #tpu.memory_space<vmem>>, vector<16x32xf32>
    %c0_1 = arith.constant 0 : index
    %c0_2 = arith.constant 0 : index
    %c0_3 = arith.constant 0 : index
    %1 = vector.load %arg3[%c0_1, %c0_2, %c0_3] : memref<2x32x96xbf16, #tpu.memory_space<vmem>>, vector<1x32x96xbf16>
    %2 = vector.shape_cast %1 : vector<1x32x96xbf16> to vector<32x96xbf16>
    %3 = arith.truncf %0 : vector<16x32xf32> to vector<16x32xbf16>
    %cst = arith.constant dense<0.000000e+00> : vector<16x96xf32>
    %4 = tpu.matmul %3, %2, %cst {dimension_numbers = #tpu.dot_dimension_numbers<[1], [0], [0], [1], [0, 0, 1, 1], [], []>} : vector<16x32xbf16>, vector<32x96xbf16>, vector<16x96xf32> -> vector<16x96xf32>
    %c0_4 = arith.constant 0 : index
    %c0_5 = arith.constant 0 : index
    %c0_6 = arith.constant 0 : index
    %5 = vector.load %arg4[%c0_4, %c0_5, %c0_6] : memref<2x1x96xf32, #tpu.memory_space<vmem>>, vector<1x1x96xf32>
    %6 = vector.shape_cast %5 : vector<1x1x96xf32> to vector<1x96xf32>
    %7 = vector.broadcast %6 : vector<1x96xf32> to vector<16x96xf32>
    %8 = arith.addf %4, %7 : vector<16x96xf32>
    %9 = vector.extract_strided_slice %8 {offsets = [0, 0], sizes = [8, 32], strides = [1, 1]} : vector<16x96xf32> to vector<8x32xf32>
    %10 = vector.extract_strided_slice %8 {offsets = [0, 32], sizes = [8, 32], strides = [1, 1]} : vector<16x96xf32> to vector<8x32xf32>
    %11 = vector.extract_strided_slice %8 {offsets = [0, 64], sizes = [8, 32], strides = [1, 1]} : vector<16x96xf32> to vector<8x32xf32>
    %c0_7 = arith.constant 0 : index
    %c0_8 = arith.constant 0 : index
    %c0_9 = arith.constant 0 : index
    %12 = vector.load %arg2[%c0_7, %c0_8, %c0_9] : memref<2x8x8xf32, #tpu.memory_space<vmem>>, vector<1x8x8xf32>
    %13 = vector.shape_cast %12 : vector<1x8x8xf32> to vector<8x8xf32>
    %14 = vector.extract_strided_slice %9 {offsets = [0, 0], sizes = [8, 8], strides = [1, 1]} : vector<8x32xf32> to vector<8x8xf32>
    %15 = arith.truncf %14 : vector<8x8xf32> to vector<8x8xbf16>
    %16 = vector.extract_strided_slice %10 {offsets = [0, 0], sizes = [8, 8], strides = [1, 1]} : vector<8x32xf32> to vector<8x8xf32>
    %17 = arith.truncf %16 : vector<8x8xf32> to vector<8x8xbf16>
    %18 = vector.extract_strided_slice %11 {offsets = [0, 0], sizes = [8, 8], strides = [1, 1]} : vector<8x32xf32> to vector<8x8xf32>
    %19 = arith.truncf %18 : vector<8x8xf32> to vector<8x8xbf16>
    %cst_10 = arith.constant dense<0.000000e+00> : vector<8x8xf32>
    %20 = tpu.matmul %15, %17, %cst_10 {dimension_numbers = #tpu.dot_dimension_numbers<[1], [1], [0], [0], [0, 0, 1, 0], [], []>} : vector<8x8xbf16>, vector<8x8xbf16>, vector<8x8xf32> -> vector<8x8xf32>
    %21 = arith.addf %20, %13 : vector<8x8xf32>
    %cst_11 = arith.constant dense<0xFF800000> : vector<8xf32>
    %22 = vector.multi_reduction <maximumf>, %21, %cst_11 [1] : vector<8x8xf32> to vector<8xf32>
    %23 = vector.shape_cast %22 : vector<8xf32> to vector<8x1xf32>
    %24 = vector.broadcast %23 : vector<8x1xf32> to vector<8x8xf32>
    %25 = arith.subf %21, %24 : vector<8x8xf32>
    %26 = math.exp %25 : vector<8x8xf32>
    %cst_12 = arith.constant dense<0.000000e+00> : vector<8xf32>
    %27 = vector.multi_reduction <add>, %26, %cst_12 [1] : vector<8x8xf32> to vector<8xf32>
    %28 = vector.shape_cast %27 : vector<8xf32> to vector<8x1xf32>
    %29 = tpu.reciprocal %28 {approx = true} : vector<8x1xf32> -> vector<8x1xf32>
    %30 = vector.broadcast %29 : vector<8x1xf32> to vector<8x8xf32>
    %31 = arith.mulf %26, %30 : vector<8x8xf32>
    %32 = arith.truncf %31 : vector<8x8xf32> to vector<8x8xbf16>
    %cst_13 = arith.constant dense<0.000000e+00> : vector<8x8xf32>
    %33 = tpu.matmul %32, %19, %cst_13 {dimension_numbers = #tpu.dot_dimension_numbers<[1], [0], [0], [1], [0, 0, 1, 1], [], []>} : vector<8x8xbf16>, vector<8x8xbf16>, vector<8x8xf32> -> vector<8x8xf32>
    %34 = vector.extract_strided_slice %9 {offsets = [0, 8], sizes = [8, 8], strides = [1, 1]} : vector<8x32xf32> to vector<8x8xf32>
    %35 = arith.truncf %34 : vector<8x8xf32> to vector<8x8xbf16>
    %36 = vector.extract_strided_slice %10 {offsets = [0, 8], sizes = [8, 8], strides = [1, 1]} : vector<8x32xf32> to vector<8x8xf32>
    %37 = arith.truncf %36 : vector<8x8xf32> to vector<8x8xbf16>
    %38 = vector.extract_strided_slice %11 {offsets = [0, 8], sizes = [8, 8], strides = [1, 1]} : vector<8x32xf32> to vector<8x8xf32>
    %39 = arith.truncf %38 : vector<8x8xf32> to vector<8x8xbf16>
    %cst_14 = arith.constant dense<0.000000e+00> : vector<8x8xf32>
    %40 = tpu.matmul %35, %37, %cst_14 {dimension_numbers = #tpu.dot_dimension_numbers<[1], [1], [0], [0], [0, 0, 1, 0], [], []>} : vector<8x8xbf16>, vector<8x8xbf16>, vector<8x8xf32> -> vector<8x8xf32>
    %41 = arith.addf %40, %13 : vector<8x8xf32>
    %cst_15 = arith.constant dense<0xFF800000> : vector<8xf32>
    %42 = vector.multi_reduction <maximumf>, %41, %cst_15 [1] : vector<8x8xf32> to vector<8xf32>
    %43 = vector.shape_cast %42 : vector<8xf32> to vector<8x1xf32>
    %44 = vector.broadcast %43 : vector<8x1xf32> to vector<8x8xf32>
    %45 = arith.subf %41, %44 : vector<8x8xf32>
    %46 = math.exp %45 : vector<8x8xf32>
    %cst_16 = arith.constant dense<0.000000e+00> : vector<8xf32>
    %47 = vector.multi_reduction <add>, %46, %cst_16 [1] : vector<8x8xf32> to vector<8xf32>
    %48 = vector.shape_cast %47 : vector<8xf32> to vector<8x1xf32>
    %49 = tpu.reciprocal %48 {approx = true} : vector<8x1xf32> -> vector<8x1xf32>
    %50 = vector.broadcast %49 : vector<8x1xf32> to vector<8x8xf32>
    %51 = arith.mulf %46, %50 : vector<8x8xf32>
    %52 = arith.truncf %51 : vector<8x8xf32> to vector<8x8xbf16>
    %cst_17 = arith.constant dense<0.000000e+00> : vector<8x8xf32>
    %53 = tpu.matmul %52, %39, %cst_17 {dimension_numbers = #tpu.dot_dimension_numbers<[1], [0], [0], [1], [0, 0, 1, 1], [], []>} : vector<8x8xbf16>, vector<8x8xbf16>, vector<8x8xf32> -> vector<8x8xf32>
    %54 = vector.extract_strided_slice %9 {offsets = [0, 16], sizes = [8, 8], strides = [1, 1]} : vector<8x32xf32> to vector<8x8xf32>
    %55 = arith.truncf %54 : vector<8x8xf32> to vector<8x8xbf16>
    %56 = vector.extract_strided_slice %10 {offsets = [0, 16], sizes = [8, 8], strides = [1, 1]} : vector<8x32xf32> to vector<8x8xf32>
    %57 = arith.truncf %56 : vector<8x8xf32> to vector<8x8xbf16>
    %58 = vector.extract_strided_slice %11 {offsets = [0, 16], sizes = [8, 8], strides = [1, 1]} : vector<8x32xf32> to vector<8x8xf32>
    %59 = arith.truncf %58 : vector<8x8xf32> to vector<8x8xbf16>
    %cst_18 = arith.constant dense<0.000000e+00> : vector<8x8xf32>
    %60 = tpu.matmul %55, %57, %cst_18 {dimension_numbers = #tpu.dot_dimension_numbers<[1], [1], [0], [0], [0, 0, 1, 0], [], []>} : vector<8x8xbf16>, vector<8x8xbf16>, vector<8x8xf32> -> vector<8x8xf32>
    %61 = arith.addf %60, %13 : vector<8x8xf32>
    %cst_19 = arith.constant dense<0xFF800000> : vector<8xf32>
    %62 = vector.multi_reduction <maximumf>, %61, %cst_19 [1] : vector<8x8xf32> to vector<8xf32>
    %63 = vector.shape_cast %62 : vector<8xf32> to vector<8x1xf32>
    %64 = vector.broadcast %63 : vector<8x1xf32> to vector<8x8xf32>
    %65 = arith.subf %61, %64 : vector<8x8xf32>
    %66 = math.exp %65 : vector<8x8xf32>
    %cst_20 = arith.constant dense<0.000000e+00> : vector<8xf32>
    %67 = vector.multi_reduction <add>, %66, %cst_20 [1] : vector<8x8xf32> to vector<8xf32>
    %68 = vector.shape_cast %67 : vector<8xf32> to vector<8x1xf32>
    %69 = tpu.reciprocal %68 {approx = true} : vector<8x1xf32> -> vector<8x1xf32>
    %70 = vector.broadcast %69 : vector<8x1xf32> to vector<8x8xf32>
    %71 = arith.mulf %66, %70 : vector<8x8xf32>
    %72 = arith.truncf %71 : vector<8x8xf32> to vector<8x8xbf16>
    %cst_21 = arith.constant dense<0.000000e+00> : vector<8x8xf32>
    %73 = tpu.matmul %72, %59, %cst_21 {dimension_numbers = #tpu.dot_dimension_numbers<[1], [0], [0], [1], [0, 0, 1, 1], [], []>} : vector<8x8xbf16>, vector<8x8xbf16>, vector<8x8xf32> -> vector<8x8xf32>
    %74 = vector.extract_strided_slice %9 {offsets = [0, 24], sizes = [8, 8], strides = [1, 1]} : vector<8x32xf32> to vector<8x8xf32>
    %75 = arith.truncf %74 : vector<8x8xf32> to vector<8x8xbf16>
    %76 = vector.extract_strided_slice %10 {offsets = [0, 24], sizes = [8, 8], strides = [1, 1]} : vector<8x32xf32> to vector<8x8xf32>
    %77 = arith.truncf %76 : vector<8x8xf32> to vector<8x8xbf16>
    %78 = vector.extract_strided_slice %11 {offsets = [0, 24], sizes = [8, 8], strides = [1, 1]} : vector<8x32xf32> to vector<8x8xf32>
    %79 = arith.truncf %78 : vector<8x8xf32> to vector<8x8xbf16>
    %cst_22 = arith.constant dense<0.000000e+00> : vector<8x8xf32>
    %80 = tpu.matmul %75, %77, %cst_22 {dimension_numbers = #tpu.dot_dimension_numbers<[1], [1], [0], [0], [0, 0, 1, 0], [], []>} : vector<8x8xbf16>, vector<8x8xbf16>, vector<8x8xf32> -> vector<8x8xf32>
    %81 = arith.addf %80, %13 : vector<8x8xf32>
    %cst_23 = arith.constant dense<0xFF800000> : vector<8xf32>
    %82 = vector.multi_reduction <maximumf>, %81, %cst_23 [1] : vector<8x8xf32> to vector<8xf32>
    %83 = vector.shape_cast %82 : vector<8xf32> to vector<8x1xf32>
    %84 = vector.broadcast %83 : vector<8x1xf32> to vector<8x8xf32>
    %85 = arith.subf %81, %84 : vector<8x8xf32>
    %86 = math.exp %85 : vector<8x8xf32>
    %cst_24 = arith.constant dense<0.000000e+00> : vector<8xf32>
    %87 = vector.multi_reduction <add>, %86, %cst_24 [1] : vector<8x8xf32> to vector<8xf32>
    %88 = vector.shape_cast %87 : vector<8xf32> to vector<8x1xf32>
    %89 = tpu.reciprocal %88 {approx = true} : vector<8x1xf32> -> vector<8x1xf32>
    %90 = vector.broadcast %89 : vector<8x1xf32> to vector<8x8xf32>
    %91 = arith.mulf %86, %90 : vector<8x8xf32>
    %92 = arith.truncf %91 : vector<8x8xf32> to vector<8x8xbf16>
    %cst_25 = arith.constant dense<0.000000e+00> : vector<8x8xf32>
    %93 = tpu.matmul %92, %79, %cst_25 {dimension_numbers = #tpu.dot_dimension_numbers<[1], [0], [0], [1], [0, 0, 1, 1], [], []>} : vector<8x8xbf16>, vector<8x8xbf16>, vector<8x8xf32> -> vector<8x8xf32>
    %94 = tpu.concatenate %33, %53, %73, %93 in 1 : vector<8x8xf32>, vector<8x8xf32>, vector<8x8xf32>, vector<8x8xf32> -> vector<8x32xf32>
    %95 = vector.extract_strided_slice %8 {offsets = [8, 0], sizes = [8, 32], strides = [1, 1]} : vector<16x96xf32> to vector<8x32xf32>
    %96 = vector.extract_strided_slice %8 {offsets = [8, 32], sizes = [8, 32], strides = [1, 1]} : vector<16x96xf32> to vector<8x32xf32>
    %97 = vector.extract_strided_slice %8 {offsets = [8, 64], sizes = [8, 32], strides = [1, 1]} : vector<16x96xf32> to vector<8x32xf32>
    %c1 = arith.constant 1 : index
    %c0_26 = arith.constant 0 : index
    %c0_27 = arith.constant 0 : index
    %98 = vector.load %arg2[%c1, %c0_26, %c0_27] : memref<2x8x8xf32, #tpu.memory_space<vmem>>, vector<1x8x8xf32>
    %99 = vector.shape_cast %98 : vector<1x8x8xf32> to vector<8x8xf32>
    %100 = vector.extract_strided_slice %95 {offsets = [0, 0], sizes = [8, 8], strides = [1, 1]} : vector<8x32xf32> to vector<8x8xf32>
    %101 = arith.truncf %100 : vector<8x8xf32> to vector<8x8xbf16>
    %102 = vector.extract_strided_slice %96 {offsets = [0, 0], sizes = [8, 8], strides = [1, 1]} : vector<8x32xf32> to vector<8x8xf32>
    %103 = arith.truncf %102 : vector<8x8xf32> to vector<8x8xbf16>
    %104 = vector.extract_strided_slice %97 {offsets = [0, 0], sizes = [8, 8], strides = [1, 1]} : vector<8x32xf32> to vector<8x8xf32>
    %105 = arith.truncf %104 : vector<8x8xf32> to vector<8x8xbf16>
    %cst_28 = arith.constant dense<0.000000e+00> : vector<8x8xf32>
    %106 = tpu.matmul %101, %103, %cst_28 {dimension_numbers = #tpu.dot_dimension_numbers<[1], [1], [0], [0], [0, 0, 1, 0], [], []>} : vector<8x8xbf16>, vector<8x8xbf16>, vector<8x8xf32> -> vector<8x8xf32>
    %107 = arith.addf %106, %99 : vector<8x8xf32>
    %cst_29 = arith.constant dense<0xFF800000> : vector<8xf32>
    %108 = vector.multi_reduction <maximumf>, %107, %cst_29 [1] : vector<8x8xf32> to vector<8xf32>
    %109 = vector.shape_cast %108 : vector<8xf32> to vector<8x1xf32>
    %110 = vector.broadcast %109 : vector<8x1xf32> to vector<8x8xf32>
    %111 = arith.subf %107, %110 : vector<8x8xf32>
    %112 = math.exp %111 : vector<8x8xf32>
    %cst_30 = arith.constant dense<0.000000e+00> : vector<8xf32>
    %113 = vector.multi_reduction <add>, %112, %cst_30 [1] : vector<8x8xf32> to vector<8xf32>
    %114 = vector.shape_cast %113 : vector<8xf32> to vector<8x1xf32>
    %115 = tpu.reciprocal %114 {approx = true} : vector<8x1xf32> -> vector<8x1xf32>
    %116 = vector.broadcast %115 : vector<8x1xf32> to vector<8x8xf32>
    %117 = arith.mulf %112, %116 : vector<8x8xf32>
    %118 = arith.truncf %117 : vector<8x8xf32> to vector<8x8xbf16>
    %cst_31 = arith.constant dense<0.000000e+00> : vector<8x8xf32>
    %119 = tpu.matmul %118, %105, %cst_31 {dimension_numbers = #tpu.dot_dimension_numbers<[1], [0], [0], [1], [0, 0, 1, 1], [], []>} : vector<8x8xbf16>, vector<8x8xbf16>, vector<8x8xf32> -> vector<8x8xf32>
    %120 = vector.extract_strided_slice %95 {offsets = [0, 8], sizes = [8, 8], strides = [1, 1]} : vector<8x32xf32> to vector<8x8xf32>
    %121 = arith.truncf %120 : vector<8x8xf32> to vector<8x8xbf16>
    %122 = vector.extract_strided_slice %96 {offsets = [0, 8], sizes = [8, 8], strides = [1, 1]} : vector<8x32xf32> to vector<8x8xf32>
    %123 = arith.truncf %122 : vector<8x8xf32> to vector<8x8xbf16>
    %124 = vector.extract_strided_slice %97 {offsets = [0, 8], sizes = [8, 8], strides = [1, 1]} : vector<8x32xf32> to vector<8x8xf32>
    %125 = arith.truncf %124 : vector<8x8xf32> to vector<8x8xbf16>
    %cst_32 = arith.constant dense<0.000000e+00> : vector<8x8xf32>
    %126 = tpu.matmul %121, %123, %cst_32 {dimension_numbers = #tpu.dot_dimension_numbers<[1], [1], [0], [0], [0, 0, 1, 0], [], []>} : vector<8x8xbf16>, vector<8x8xbf16>, vector<8x8xf32> -> vector<8x8xf32>
    %127 = arith.addf %126, %99 : vector<8x8xf32>
    %cst_33 = arith.constant dense<0xFF800000> : vector<8xf32>
    %128 = vector.multi_reduction <maximumf>, %127, %cst_33 [1] : vector<8x8xf32> to vector<8xf32>
    %129 = vector.shape_cast %128 : vector<8xf32> to vector<8x1xf32>
    %130 = vector.broadcast %129 : vector<8x1xf32> to vector<8x8xf32>
    %131 = arith.subf %127, %130 : vector<8x8xf32>
    %132 = math.exp %131 : vector<8x8xf32>
    %cst_34 = arith.constant dense<0.000000e+00> : vector<8xf32>
    %133 = vector.multi_reduction <add>, %132, %cst_34 [1] : vector<8x8xf32> to vector<8xf32>
    %134 = vector.shape_cast %133 : vector<8xf32> to vector<8x1xf32>
    %135 = tpu.reciprocal %134 {approx = true} : vector<8x1xf32> -> vector<8x1xf32>
    %136 = vector.broadcast %135 : vector<8x1xf32> to vector<8x8xf32>
    %137 = arith.mulf %132, %136 : vector<8x8xf32>
    %138 = arith.truncf %137 : vector<8x8xf32> to vector<8x8xbf16>
    %cst_35 = arith.constant dense<0.000000e+00> : vector<8x8xf32>
    %139 = tpu.matmul %138, %125, %cst_35 {dimension_numbers = #tpu.dot_dimension_numbers<[1], [0], [0], [1], [0, 0, 1, 1], [], []>} : vector<8x8xbf16>, vector<8x8xbf16>, vector<8x8xf32> -> vector<8x8xf32>
    %140 = vector.extract_strided_slice %95 {offsets = [0, 16], sizes = [8, 8], strides = [1, 1]} : vector<8x32xf32> to vector<8x8xf32>
    %141 = arith.truncf %140 : vector<8x8xf32> to vector<8x8xbf16>
    %142 = vector.extract_strided_slice %96 {offsets = [0, 16], sizes = [8, 8], strides = [1, 1]} : vector<8x32xf32> to vector<8x8xf32>
    %143 = arith.truncf %142 : vector<8x8xf32> to vector<8x8xbf16>
    %144 = vector.extract_strided_slice %97 {offsets = [0, 16], sizes = [8, 8], strides = [1, 1]} : vector<8x32xf32> to vector<8x8xf32>
    %145 = arith.truncf %144 : vector<8x8xf32> to vector<8x8xbf16>
    %cst_36 = arith.constant dense<0.000000e+00> : vector<8x8xf32>
    %146 = tpu.matmul %141, %143, %cst_36 {dimension_numbers = #tpu.dot_dimension_numbers<[1], [1], [0], [0], [0, 0, 1, 0], [], []>} : vector<8x8xbf16>, vector<8x8xbf16>, vector<8x8xf32> -> vector<8x8xf32>
    %147 = arith.addf %146, %99 : vector<8x8xf32>
    %cst_37 = arith.constant dense<0xFF800000> : vector<8xf32>
    %148 = vector.multi_reduction <maximumf>, %147, %cst_37 [1] : vector<8x8xf32> to vector<8xf32>
    %149 = vector.shape_cast %148 : vector<8xf32> to vector<8x1xf32>
    %150 = vector.broadcast %149 : vector<8x1xf32> to vector<8x8xf32>
    %151 = arith.subf %147, %150 : vector<8x8xf32>
    %152 = math.exp %151 : vector<8x8xf32>
    %cst_38 = arith.constant dense<0.000000e+00> : vector<8xf32>
    %153 = vector.multi_reduction <add>, %152, %cst_38 [1] : vector<8x8xf32> to vector<8xf32>
    %154 = vector.shape_cast %153 : vector<8xf32> to vector<8x1xf32>
    %155 = tpu.reciprocal %154 {approx = true} : vector<8x1xf32> -> vector<8x1xf32>
    %156 = vector.broadcast %155 : vector<8x1xf32> to vector<8x8xf32>
    %157 = arith.mulf %152, %156 : vector<8x8xf32>
    %158 = arith.truncf %157 : vector<8x8xf32> to vector<8x8xbf16>
    %cst_39 = arith.constant dense<0.000000e+00> : vector<8x8xf32>
    %159 = tpu.matmul %158, %145, %cst_39 {dimension_numbers = #tpu.dot_dimension_numbers<[1], [0], [0], [1], [0, 0, 1, 1], [], []>} : vector<8x8xbf16>, vector<8x8xbf16>, vector<8x8xf32> -> vector<8x8xf32>
    %160 = vector.extract_strided_slice %95 {offsets = [0, 24], sizes = [8, 8], strides = [1, 1]} : vector<8x32xf32> to vector<8x8xf32>
    %161 = arith.truncf %160 : vector<8x8xf32> to vector<8x8xbf16>
    %162 = vector.extract_strided_slice %96 {offsets = [0, 24], sizes = [8, 8], strides = [1, 1]} : vector<8x32xf32> to vector<8x8xf32>
    %163 = arith.truncf %162 : vector<8x8xf32> to vector<8x8xbf16>
    %164 = vector.extract_strided_slice %97 {offsets = [0, 24], sizes = [8, 8], strides = [1, 1]} : vector<8x32xf32> to vector<8x8xf32>
    %165 = arith.truncf %164 : vector<8x8xf32> to vector<8x8xbf16>
    %cst_40 = arith.constant dense<0.000000e+00> : vector<8x8xf32>
    %166 = tpu.matmul %161, %163, %cst_40 {dimension_numbers = #tpu.dot_dimension_numbers<[1], [1], [0], [0], [0, 0, 1, 0], [], []>} : vector<8x8xbf16>, vector<8x8xbf16>, vector<8x8xf32> -> vector<8x8xf32>
    %167 = arith.addf %166, %99 : vector<8x8xf32>
    %cst_41 = arith.constant dense<0xFF800000> : vector<8xf32>
    %168 = vector.multi_reduction <maximumf>, %167, %cst_41 [1] : vector<8x8xf32> to vector<8xf32>
    %169 = vector.shape_cast %168 : vector<8xf32> to vector<8x1xf32>
    %170 = vector.broadcast %169 : vector<8x1xf32> to vector<8x8xf32>
    %171 = arith.subf %167, %170 : vector<8x8xf32>
    %172 = math.exp %171 : vector<8x8xf32>
    %cst_42 = arith.constant dense<0.000000e+00> : vector<8xf32>
    %173 = vector.multi_reduction <add>, %172, %cst_42 [1] : vector<8x8xf32> to vector<8xf32>
    %174 = vector.shape_cast %173 : vector<8xf32> to vector<8x1xf32>
    %175 = tpu.reciprocal %174 {approx = true} : vector<8x1xf32> -> vector<8x1xf32>
    %176 = vector.broadcast %175 : vector<8x1xf32> to vector<8x8xf32>
    %177 = arith.mulf %172, %176 : vector<8x8xf32>
    %178 = arith.truncf %177 : vector<8x8xf32> to vector<8x8xbf16>
    %cst_43 = arith.constant dense<0.000000e+00> : vector<8x8xf32>
    %179 = tpu.matmul %178, %165, %cst_43 {dimension_numbers = #tpu.dot_dimension_numbers<[1], [0], [0], [1], [0, 0, 1, 1], [], []>} : vector<8x8xbf16>, vector<8x8xbf16>, vector<8x8xf32> -> vector<8x8xf32>
    %180 = tpu.concatenate %119, %139, %159, %179 in 1 : vector<8x8xf32>, vector<8x8xf32>, vector<8x8xf32>, vector<8x8xf32> -> vector<8x32xf32>
    %181 = tpu.concatenate %94, %180 in 0 : vector<8x32xf32>, vector<8x32xf32> -> vector<16x32xf32>
    %c0_44 = arith.constant 0 : index
    %c0_45 = arith.constant 0 : index
    %c0_46 = arith.constant 0 : index
    %182 = vector.load %arg5[%c0_44, %c0_45, %c0_46] : memref<2x32x32xbf16, #tpu.memory_space<vmem>>, vector<1x32x32xbf16>
    %183 = vector.shape_cast %182 : vector<1x32x32xbf16> to vector<32x32xbf16>
    %184 = arith.truncf %181 : vector<16x32xf32> to vector<16x32xbf16>
    %cst_47 = arith.constant dense<0.000000e+00> : vector<16x32xf32>
    %185 = tpu.matmul %184, %183, %cst_47 {dimension_numbers = #tpu.dot_dimension_numbers<[1], [0], [0], [1], [0, 0, 1, 1], [], []>} : vector<16x32xbf16>, vector<32x32xbf16>, vector<16x32xf32> -> vector<16x32xf32>
    %c0_48 = arith.constant 0 : index
    %c0_49 = arith.constant 0 : index
    %c0_50 = arith.constant 0 : index
    %186 = vector.load %arg6[%c0_48, %c0_49, %c0_50] : memref<2x1x32xf32, #tpu.memory_space<vmem>>, vector<1x1x32xf32>
    %187 = vector.shape_cast %186 : vector<1x1x32xf32> to vector<1x32xf32>
    %188 = vector.broadcast %187 : vector<1x32xf32> to vector<16x32xf32>
    %189 = arith.addf %185, %188 : vector<16x32xf32>
    %190 = arith.addf %189, %0 : vector<16x32xf32>
    %c0_51 = arith.constant 0 : index
    %c0_52 = arith.constant 0 : index
    %c0_53 = arith.constant 0 : index
    %191 = vector.load %arg7[%c0_51, %c0_52, %c0_53] : memref<2x1x32xf32, #tpu.memory_space<vmem>>, vector<1x1x32xf32>
    %192 = vector.shape_cast %191 : vector<1x1x32xf32> to vector<1x32xf32>
    %c0_54 = arith.constant 0 : index
    %c0_55 = arith.constant 0 : index
    %c0_56 = arith.constant 0 : index
    %193 = vector.load %arg8[%c0_54, %c0_55, %c0_56] : memref<2x1x32xf32, #tpu.memory_space<vmem>>, vector<1x1x32xf32>
    %194 = vector.shape_cast %193 : vector<1x1x32xf32> to vector<1x32xf32>
    %cst_57 = arith.constant dense<0.000000e+00> : vector<16xf32>
    %195 = vector.multi_reduction <add>, %190, %cst_57 [1] : vector<16x32xf32> to vector<16xf32>
    %196 = vector.shape_cast %195 : vector<16xf32> to vector<16x1xf32>
    %cst_58 = arith.constant 3.200000e+01 : f32
    %197 = vector.broadcast %cst_58 : f32 to vector<16x1xf32>
    %198 = arith.divf %196, %197 : vector<16x1xf32>
    %199 = vector.broadcast %198 : vector<16x1xf32> to vector<16x32xf32>
    %200 = arith.subf %190, %199 : vector<16x32xf32>
    %201 = arith.mulf %200, %200 : vector<16x32xf32>
    %cst_59 = arith.constant dense<0.000000e+00> : vector<16xf32>
    %202 = vector.multi_reduction <add>, %201, %cst_59 [1] : vector<16x32xf32> to vector<16xf32>
    %203 = vector.shape_cast %202 : vector<16xf32> to vector<16x1xf32>
    %cst_60 = arith.constant 3.200000e+01 : f32
    %204 = vector.broadcast %cst_60 : f32 to vector<16x1xf32>
    %205 = arith.divf %203, %204 : vector<16x1xf32>
    %206 = vector.broadcast %198 : vector<16x1xf32> to vector<16x32xf32>
    %207 = arith.subf %190, %206 : vector<16x32xf32>
    %cst_61 = arith.constant 9.99999974E-6 : f32
    %208 = vector.broadcast %cst_61 : f32 to vector<16x1xf32>
    %209 = arith.addf %205, %208 : vector<16x1xf32>
    %210 = math.rsqrt %209 : vector<16x1xf32>
    %211 = vector.broadcast %210 : vector<16x1xf32> to vector<16x32xf32>
    %212 = arith.mulf %207, %211 : vector<16x32xf32>
    %213 = vector.broadcast %192 : vector<1x32xf32> to vector<16x32xf32>
    %214 = arith.mulf %212, %213 : vector<16x32xf32>
    %215 = vector.broadcast %194 : vector<1x32xf32> to vector<16x32xf32>
    %216 = arith.addf %214, %215 : vector<16x32xf32>
    %c0_62 = arith.constant 0 : index
    %c0_63 = arith.constant 0 : index
    %c0_64 = arith.constant 0 : index
    %217 = vector.load %arg9[%c0_62, %c0_63, %c0_64] : memref<2x32x64xbf16, #tpu.memory_space<vmem>>, vector<1x32x64xbf16>
    %218 = vector.shape_cast %217 : vector<1x32x64xbf16> to vector<32x64xbf16>
    %219 = arith.truncf %216 : vector<16x32xf32> to vector<16x32xbf16>
    %cst_65 = arith.constant dense<0.000000e+00> : vector<16x64xf32>
    %220 = tpu.matmul %219, %218, %cst_65 {dimension_numbers = #tpu.dot_dimension_numbers<[1], [0], [0], [1], [0, 0, 1, 1], [], []>} : vector<16x32xbf16>, vector<32x64xbf16>, vector<16x64xf32> -> vector<16x64xf32>
    %c0_66 = arith.constant 0 : index
    %c0_67 = arith.constant 0 : index
    %c0_68 = arith.constant 0 : index
    %221 = vector.load %arg10[%c0_66, %c0_67, %c0_68] : memref<2x1x64xf32, #tpu.memory_space<vmem>>, vector<1x1x64xf32>
    %222 = vector.shape_cast %221 : vector<1x1x64xf32> to vector<1x64xf32>
    %223 = vector.broadcast %222 : vector<1x64xf32> to vector<16x64xf32>
    %224 = arith.addf %220, %223 : vector<16x64xf32>
    %cst_69 = arith.constant 0.000000e+00 : f32
    %225 = vector.broadcast %cst_69 : f32 to vector<16x64xf32>
    %226 = arith.maximumf %224, %225 : vector<16x64xf32>
    %c0_70 = arith.constant 0 : index
    %c0_71 = arith.constant 0 : index
    %c0_72 = arith.constant 0 : index
    %227 = vector.load %arg11[%c0_70, %c0_71, %c0_72] : memref<2x64x32xbf16, #tpu.memory_space<vmem>>, vector<1x64x32xbf16>
    %228 = vector.shape_cast %227 : vector<1x64x32xbf16> to vector<64x32xbf16>
    %229 = arith.truncf %226 : vector<16x64xf32> to vector<16x64xbf16>
    %cst_73 = arith.constant dense<0.000000e+00> : vector<16x32xf32>
    %230 = tpu.matmul %229, %228, %cst_73 {dimension_numbers = #tpu.dot_dimension_numbers<[1], [0], [0], [1], [0, 0, 1, 1], [], []>} : vector<16x64xbf16>, vector<64x32xbf16>, vector<16x32xf32> -> vector<16x32xf32>
    %c0_74 = arith.constant 0 : index
    %c0_75 = arith.constant 0 : index
    %c0_76 = arith.constant 0 : index
    %231 = vector.load %arg12[%c0_74, %c0_75, %c0_76] : memref<2x1x32xf32, #tpu.memory_space<vmem>>, vector<1x1x32xf32>
    %232 = vector.shape_cast %231 : vector<1x1x32xf32> to vector<1x32xf32>
    %233 = vector.broadcast %232 : vector<1x32xf32> to vector<16x32xf32>
    %234 = arith.addf %230, %233 : vector<16x32xf32>
    %235 = arith.addf %234, %216 : vector<16x32xf32>
    %c0_77 = arith.constant 0 : index
    %c0_78 = arith.constant 0 : index
    %c0_79 = arith.constant 0 : index
    %236 = vector.load %arg13[%c0_77, %c0_78, %c0_79] : memref<2x1x32xf32, #tpu.memory_space<vmem>>, vector<1x1x32xf32>
    %237 = vector.shape_cast %236 : vector<1x1x32xf32> to vector<1x32xf32>
    %c0_80 = arith.constant 0 : index
    %c0_81 = arith.constant 0 : index
    %c0_82 = arith.constant 0 : index
    %238 = vector.load %arg14[%c0_80, %c0_81, %c0_82] : memref<2x1x32xf32, #tpu.memory_space<vmem>>, vector<1x1x32xf32>
    %239 = vector.shape_cast %238 : vector<1x1x32xf32> to vector<1x32xf32>
    %cst_83 = arith.constant dense<0.000000e+00> : vector<16xf32>
    %240 = vector.multi_reduction <add>, %235, %cst_83 [1] : vector<16x32xf32> to vector<16xf32>
    %241 = vector.shape_cast %240 : vector<16xf32> to vector<16x1xf32>
    %cst_84 = arith.constant 3.200000e+01 : f32
    %242 = vector.broadcast %cst_84 : f32 to vector<16x1xf32>
    %243 = arith.divf %241, %242 : vector<16x1xf32>
    %244 = vector.broadcast %243 : vector<16x1xf32> to vector<16x32xf32>
    %245 = arith.subf %235, %244 : vector<16x32xf32>
    %246 = arith.mulf %245, %245 : vector<16x32xf32>
    %cst_85 = arith.constant dense<0.000000e+00> : vector<16xf32>
    %247 = vector.multi_reduction <add>, %246, %cst_85 [1] : vector<16x32xf32> to vector<16xf32>
    %248 = vector.shape_cast %247 : vector<16xf32> to vector<16x1xf32>
    %cst_86 = arith.constant 3.200000e+01 : f32
    %249 = vector.broadcast %cst_86 : f32 to vector<16x1xf32>
    %250 = arith.divf %248, %249 : vector<16x1xf32>
    %251 = vector.broadcast %243 : vector<16x1xf32> to vector<16x32xf32>
    %252 = arith.subf %235, %251 : vector<16x32xf32>
    %cst_87 = arith.constant 9.99999974E-6 : f32
    %253 = vector.broadcast %cst_87 : f32 to vector<16x1xf32>
    %254 = arith.addf %250, %253 : vector<16x1xf32>
    %255 = math.rsqrt %254 : vector<16x1xf32>
    %256 = vector.broadcast %255 : vector<16x1xf32> to vector<16x32xf32>
    %257 = arith.mulf %252, %256 : vector<16x32xf32>
    %258 = vector.broadcast %237 : vector<1x32xf32> to vector<16x32xf32>
    %259 = arith.mulf %257, %258 : vector<16x32xf32>
    %260 = vector.broadcast %239 : vector<1x32xf32> to vector<16x32xf32>
    %261 = arith.addf %259, %260 : vector<16x32xf32>
    %c1_88 = arith.constant 1 : index
    %c0_89 = arith.constant 0 : index
    %c0_90 = arith.constant 0 : index
    %262 = vector.load %arg3[%c1_88, %c0_89, %c0_90] : memref<2x32x96xbf16, #tpu.memory_space<vmem>>, vector<1x32x96xbf16>
    %263 = vector.shape_cast %262 : vector<1x32x96xbf16> to vector<32x96xbf16>
    %264 = arith.truncf %261 : vector<16x32xf32> to vector<16x32xbf16>
    %cst_91 = arith.constant dense<0.000000e+00> : vector<16x96xf32>
    %265 = tpu.matmul %264, %263, %cst_91 {dimension_numbers = #tpu.dot_dimension_numbers<[1], [0], [0], [1], [0, 0, 1, 1], [], []>} : vector<16x32xbf16>, vector<32x96xbf16>, vector<16x96xf32> -> vector<16x96xf32>
    %c1_92 = arith.constant 1 : index
    %c0_93 = arith.constant 0 : index
    %c0_94 = arith.constant 0 : index
    %266 = vector.load %arg4[%c1_92, %c0_93, %c0_94] : memref<2x1x96xf32, #tpu.memory_space<vmem>>, vector<1x1x96xf32>
    %267 = vector.shape_cast %266 : vector<1x1x96xf32> to vector<1x96xf32>
    %268 = vector.broadcast %267 : vector<1x96xf32> to vector<16x96xf32>
    %269 = arith.addf %265, %268 : vector<16x96xf32>
    %270 = vector.extract_strided_slice %269 {offsets = [0, 0], sizes = [8, 32], strides = [1, 1]} : vector<16x96xf32> to vector<8x32xf32>
    %271 = vector.extract_strided_slice %269 {offsets = [0, 32], sizes = [8, 32], strides = [1, 1]} : vector<16x96xf32> to vector<8x32xf32>
    %272 = vector.extract_strided_slice %269 {offsets = [0, 64], sizes = [8, 32], strides = [1, 1]} : vector<16x96xf32> to vector<8x32xf32>
    %c0_95 = arith.constant 0 : index
    %c0_96 = arith.constant 0 : index
    %c0_97 = arith.constant 0 : index
    %273 = vector.load %arg2[%c0_95, %c0_96, %c0_97] : memref<2x8x8xf32, #tpu.memory_space<vmem>>, vector<1x8x8xf32>
    %274 = vector.shape_cast %273 : vector<1x8x8xf32> to vector<8x8xf32>
    %275 = vector.extract_strided_slice %270 {offsets = [0, 0], sizes = [8, 8], strides = [1, 1]} : vector<8x32xf32> to vector<8x8xf32>
    %276 = arith.truncf %275 : vector<8x8xf32> to vector<8x8xbf16>
    %277 = vector.extract_strided_slice %271 {offsets = [0, 0], sizes = [8, 8], strides = [1, 1]} : vector<8x32xf32> to vector<8x8xf32>
    %278 = arith.truncf %277 : vector<8x8xf32> to vector<8x8xbf16>
    %279 = vector.extract_strided_slice %272 {offsets = [0, 0], sizes = [8, 8], strides = [1, 1]} : vector<8x32xf32> to vector<8x8xf32>
    %280 = arith.truncf %279 : vector<8x8xf32> to vector<8x8xbf16>
    %cst_98 = arith.constant dense<0.000000e+00> : vector<8x8xf32>
    %281 = tpu.matmul %276, %278, %cst_98 {dimension_numbers = #tpu.dot_dimension_numbers<[1], [1], [0], [0], [0, 0, 1, 0], [], []>} : vector<8x8xbf16>, vector<8x8xbf16>, vector<8x8xf32> -> vector<8x8xf32>
    %282 = arith.addf %281, %274 : vector<8x8xf32>
    %cst_99 = arith.constant dense<0xFF800000> : vector<8xf32>
    %283 = vector.multi_reduction <maximumf>, %282, %cst_99 [1] : vector<8x8xf32> to vector<8xf32>
    %284 = vector.shape_cast %283 : vector<8xf32> to vector<8x1xf32>
    %285 = vector.broadcast %284 : vector<8x1xf32> to vector<8x8xf32>
    %286 = arith.subf %282, %285 : vector<8x8xf32>
    %287 = math.exp %286 : vector<8x8xf32>
    %cst_100 = arith.constant dense<0.000000e+00> : vector<8xf32>
    %288 = vector.multi_reduction <add>, %287, %cst_100 [1] : vector<8x8xf32> to vector<8xf32>
    %289 = vector.shape_cast %288 : vector<8xf32> to vector<8x1xf32>
    %290 = tpu.reciprocal %289 {approx = true} : vector<8x1xf32> -> vector<8x1xf32>
    %291 = vector.broadcast %290 : vector<8x1xf32> to vector<8x8xf32>
    %292 = arith.mulf %287, %291 : vector<8x8xf32>
    %293 = arith.truncf %292 : vector<8x8xf32> to vector<8x8xbf16>
    %cst_101 = arith.constant dense<0.000000e+00> : vector<8x8xf32>
    %294 = tpu.matmul %293, %280, %cst_101 {dimension_numbers = #tpu.dot_dimension_numbers<[1], [0], [0], [1], [0, 0, 1, 1], [], []>} : vector<8x8xbf16>, vector<8x8xbf16>, vector<8x8xf32> -> vector<8x8xf32>
    %295 = vector.extract_strided_slice %270 {offsets = [0, 8], sizes = [8, 8], strides = [1, 1]} : vector<8x32xf32> to vector<8x8xf32>
    %296 = arith.truncf %295 : vector<8x8xf32> to vector<8x8xbf16>
    %297 = vector.extract_strided_slice %271 {offsets = [0, 8], sizes = [8, 8], strides = [1, 1]} : vector<8x32xf32> to vector<8x8xf32>
    %298 = arith.truncf %297 : vector<8x8xf32> to vector<8x8xbf16>
    %299 = vector.extract_strided_slice %272 {offsets = [0, 8], sizes = [8, 8], strides = [1, 1]} : vector<8x32xf32> to vector<8x8xf32>
    %300 = arith.truncf %299 : vector<8x8xf32> to vector<8x8xbf16>
    %cst_102 = arith.constant dense<0.000000e+00> : vector<8x8xf32>
    %301 = tpu.matmul %296, %298, %cst_102 {dimension_numbers = #tpu.dot_dimension_numbers<[1], [1], [0], [0], [0, 0, 1, 0], [], []>} : vector<8x8xbf16>, vector<8x8xbf16>, vector<8x8xf32> -> vector<8x8xf32>
    %302 = arith.addf %301, %274 : vector<8x8xf32>
    %cst_103 = arith.constant dense<0xFF800000> : vector<8xf32>
    %303 = vector.multi_reduction <maximumf>, %302, %cst_103 [1] : vector<8x8xf32> to vector<8xf32>
    %304 = vector.shape_cast %303 : vector<8xf32> to vector<8x1xf32>
    %305 = vector.broadcast %304 : vector<8x1xf32> to vector<8x8xf32>
    %306 = arith.subf %302, %305 : vector<8x8xf32>
    %307 = math.exp %306 : vector<8x8xf32>
    %cst_104 = arith.constant dense<0.000000e+00> : vector<8xf32>
    %308 = vector.multi_reduction <add>, %307, %cst_104 [1] : vector<8x8xf32> to vector<8xf32>
    %309 = vector.shape_cast %308 : vector<8xf32> to vector<8x1xf32>
    %310 = tpu.reciprocal %309 {approx = true} : vector<8x1xf32> -> vector<8x1xf32>
    %311 = vector.broadcast %310 : vector<8x1xf32> to vector<8x8xf32>
    %312 = arith.mulf %307, %311 : vector<8x8xf32>
    %313 = arith.truncf %312 : vector<8x8xf32> to vector<8x8xbf16>
    %cst_105 = arith.constant dense<0.000000e+00> : vector<8x8xf32>
    %314 = tpu.matmul %313, %300, %cst_105 {dimension_numbers = #tpu.dot_dimension_numbers<[1], [0], [0], [1], [0, 0, 1, 1], [], []>} : vector<8x8xbf16>, vector<8x8xbf16>, vector<8x8xf32> -> vector<8x8xf32>
    %315 = vector.extract_strided_slice %270 {offsets = [0, 16], sizes = [8, 8], strides = [1, 1]} : vector<8x32xf32> to vector<8x8xf32>
    %316 = arith.truncf %315 : vector<8x8xf32> to vector<8x8xbf16>
    %317 = vector.extract_strided_slice %271 {offsets = [0, 16], sizes = [8, 8], strides = [1, 1]} : vector<8x32xf32> to vector<8x8xf32>
    %318 = arith.truncf %317 : vector<8x8xf32> to vector<8x8xbf16>
    %319 = vector.extract_strided_slice %272 {offsets = [0, 16], sizes = [8, 8], strides = [1, 1]} : vector<8x32xf32> to vector<8x8xf32>
    %320 = arith.truncf %319 : vector<8x8xf32> to vector<8x8xbf16>
    %cst_106 = arith.constant dense<0.000000e+00> : vector<8x8xf32>
    %321 = tpu.matmul %316, %318, %cst_106 {dimension_numbers = #tpu.dot_dimension_numbers<[1], [1], [0], [0], [0, 0, 1, 0], [], []>} : vector<8x8xbf16>, vector<8x8xbf16>, vector<8x8xf32> -> vector<8x8xf32>
    %322 = arith.addf %321, %274 : vector<8x8xf32>
    %cst_107 = arith.constant dense<0xFF800000> : vector<8xf32>
    %323 = vector.multi_reduction <maximumf>, %322, %cst_107 [1] : vector<8x8xf32> to vector<8xf32>
    %324 = vector.shape_cast %323 : vector<8xf32> to vector<8x1xf32>
    %325 = vector.broadcast %324 : vector<8x1xf32> to vector<8x8xf32>
    %326 = arith.subf %322, %325 : vector<8x8xf32>
    %327 = math.exp %326 : vector<8x8xf32>
    %cst_108 = arith.constant dense<0.000000e+00> : vector<8xf32>
    %328 = vector.multi_reduction <add>, %327, %cst_108 [1] : vector<8x8xf32> to vector<8xf32>
    %329 = vector.shape_cast %328 : vector<8xf32> to vector<8x1xf32>
    %330 = tpu.reciprocal %329 {approx = true} : vector<8x1xf32> -> vector<8x1xf32>
    %331 = vector.broadcast %330 : vector<8x1xf32> to vector<8x8xf32>
    %332 = arith.mulf %327, %331 : vector<8x8xf32>
    %333 = arith.truncf %332 : vector<8x8xf32> to vector<8x8xbf16>
    %cst_109 = arith.constant dense<0.000000e+00> : vector<8x8xf32>
    %334 = tpu.matmul %333, %320, %cst_109 {dimension_numbers = #tpu.dot_dimension_numbers<[1], [0], [0], [1], [0, 0, 1, 1], [], []>} : vector<8x8xbf16>, vector<8x8xbf16>, vector<8x8xf32> -> vector<8x8xf32>
    %335 = vector.extract_strided_slice %270 {offsets = [0, 24], sizes = [8, 8], strides = [1, 1]} : vector<8x32xf32> to vector<8x8xf32>
    %336 = arith.truncf %335 : vector<8x8xf32> to vector<8x8xbf16>
    %337 = vector.extract_strided_slice %271 {offsets = [0, 24], sizes = [8, 8], strides = [1, 1]} : vector<8x32xf32> to vector<8x8xf32>
    %338 = arith.truncf %337 : vector<8x8xf32> to vector<8x8xbf16>
    %339 = vector.extract_strided_slice %272 {offsets = [0, 24], sizes = [8, 8], strides = [1, 1]} : vector<8x32xf32> to vector<8x8xf32>
    %340 = arith.truncf %339 : vector<8x8xf32> to vector<8x8xbf16>
    %cst_110 = arith.constant dense<0.000000e+00> : vector<8x8xf32>
    %341 = tpu.matmul %336, %338, %cst_110 {dimension_numbers = #tpu.dot_dimension_numbers<[1], [1], [0], [0], [0, 0, 1, 0], [], []>} : vector<8x8xbf16>, vector<8x8xbf16>, vector<8x8xf32> -> vector<8x8xf32>
    %342 = arith.addf %341, %274 : vector<8x8xf32>
    %cst_111 = arith.constant dense<0xFF800000> : vector<8xf32>
    %343 = vector.multi_reduction <maximumf>, %342, %cst_111 [1] : vector<8x8xf32> to vector<8xf32>
    %344 = vector.shape_cast %343 : vector<8xf32> to vector<8x1xf32>
    %345 = vector.broadcast %344 : vector<8x1xf32> to vector<8x8xf32>
    %346 = arith.subf %342, %345 : vector<8x8xf32>
    %347 = math.exp %346 : vector<8x8xf32>
    %cst_112 = arith.constant dense<0.000000e+00> : vector<8xf32>
    %348 = vector.multi_reduction <add>, %347, %cst_112 [1] : vector<8x8xf32> to vector<8xf32>
    %349 = vector.shape_cast %348 : vector<8xf32> to vector<8x1xf32>
    %350 = tpu.reciprocal %349 {approx = true} : vector<8x1xf32> -> vector<8x1xf32>
    %351 = vector.broadcast %350 : vector<8x1xf32> to vector<8x8xf32>
    %352 = arith.mulf %347, %351 : vector<8x8xf32>
    %353 = arith.truncf %352 : vector<8x8xf32> to vector<8x8xbf16>
    %cst_113 = arith.constant dense<0.000000e+00> : vector<8x8xf32>
    %354 = tpu.matmul %353, %340, %cst_113 {dimension_numbers = #tpu.dot_dimension_numbers<[1], [0], [0], [1], [0, 0, 1, 1], [], []>} : vector<8x8xbf16>, vector<8x8xbf16>, vector<8x8xf32> -> vector<8x8xf32>
    %355 = tpu.concatenate %294, %314, %334, %354 in 1 : vector<8x8xf32>, vector<8x8xf32>, vector<8x8xf32>, vector<8x8xf32> -> vector<8x32xf32>
    %356 = vector.extract_strided_slice %269 {offsets = [8, 0], sizes = [8, 32], strides = [1, 1]} : vector<16x96xf32> to vector<8x32xf32>
    %357 = vector.extract_strided_slice %269 {offsets = [8, 32], sizes = [8, 32], strides = [1, 1]} : vector<16x96xf32> to vector<8x32xf32>
    %358 = vector.extract_strided_slice %269 {offsets = [8, 64], sizes = [8, 32], strides = [1, 1]} : vector<16x96xf32> to vector<8x32xf32>
    %c1_114 = arith.constant 1 : index
    %c0_115 = arith.constant 0 : index
    %c0_116 = arith.constant 0 : index
    %359 = vector.load %arg2[%c1_114, %c0_115, %c0_116] : memref<2x8x8xf32, #tpu.memory_space<vmem>>, vector<1x8x8xf32>
    %360 = vector.shape_cast %359 : vector<1x8x8xf32> to vector<8x8xf32>
    %361 = vector.extract_strided_slice %356 {offsets = [0, 0], sizes = [8, 8], strides = [1, 1]} : vector<8x32xf32> to vector<8x8xf32>
    %362 = arith.truncf %361 : vector<8x8xf32> to vector<8x8xbf16>
    %363 = vector.extract_strided_slice %357 {offsets = [0, 0], sizes = [8, 8], strides = [1, 1]} : vector<8x32xf32> to vector<8x8xf32>
    %364 = arith.truncf %363 : vector<8x8xf32> to vector<8x8xbf16>
    %365 = vector.extract_strided_slice %358 {offsets = [0, 0], sizes = [8, 8], strides = [1, 1]} : vector<8x32xf32> to vector<8x8xf32>
    %366 = arith.truncf %365 : vector<8x8xf32> to vector<8x8xbf16>
    %cst_117 = arith.constant dense<0.000000e+00> : vector<8x8xf32>
    %367 = tpu.matmul %362, %364, %cst_117 {dimension_numbers = #tpu.dot_dimension_numbers<[1], [1], [0], [0], [0, 0, 1, 0], [], []>} : vector<8x8xbf16>, vector<8x8xbf16>, vector<8x8xf32> -> vector<8x8xf32>
    %368 = arith.addf %367, %360 : vector<8x8xf32>
    %cst_118 = arith.constant dense<0xFF800000> : vector<8xf32>
    %369 = vector.multi_reduction <maximumf>, %368, %cst_118 [1] : vector<8x8xf32> to vector<8xf32>
    %370 = vector.shape_cast %369 : vector<8xf32> to vector<8x1xf32>
    %371 = vector.broadcast %370 : vector<8x1xf32> to vector<8x8xf32>
    %372 = arith.subf %368, %371 : vector<8x8xf32>
    %373 = math.exp %372 : vector<8x8xf32>
    %cst_119 = arith.constant dense<0.000000e+00> : vector<8xf32>
    %374 = vector.multi_reduction <add>, %373, %cst_119 [1] : vector<8x8xf32> to vector<8xf32>
    %375 = vector.shape_cast %374 : vector<8xf32> to vector<8x1xf32>
    %376 = tpu.reciprocal %375 {approx = true} : vector<8x1xf32> -> vector<8x1xf32>
    %377 = vector.broadcast %376 : vector<8x1xf32> to vector<8x8xf32>
    %378 = arith.mulf %373, %377 : vector<8x8xf32>
    %379 = arith.truncf %378 : vector<8x8xf32> to vector<8x8xbf16>
    %cst_120 = arith.constant dense<0.000000e+00> : vector<8x8xf32>
    %380 = tpu.matmul %379, %366, %cst_120 {dimension_numbers = #tpu.dot_dimension_numbers<[1], [0], [0], [1], [0, 0, 1, 1], [], []>} : vector<8x8xbf16>, vector<8x8xbf16>, vector<8x8xf32> -> vector<8x8xf32>
    %381 = vector.extract_strided_slice %356 {offsets = [0, 8], sizes = [8, 8], strides = [1, 1]} : vector<8x32xf32> to vector<8x8xf32>
    %382 = arith.truncf %381 : vector<8x8xf32> to vector<8x8xbf16>
    %383 = vector.extract_strided_slice %357 {offsets = [0, 8], sizes = [8, 8], strides = [1, 1]} : vector<8x32xf32> to vector<8x8xf32>
    %384 = arith.truncf %383 : vector<8x8xf32> to vector<8x8xbf16>
    %385 = vector.extract_strided_slice %358 {offsets = [0, 8], sizes = [8, 8], strides = [1, 1]} : vector<8x32xf32> to vector<8x8xf32>
    %386 = arith.truncf %385 : vector<8x8xf32> to vector<8x8xbf16>
    %cst_121 = arith.constant dense<0.000000e+00> : vector<8x8xf32>
    %387 = tpu.matmul %382, %384, %cst_121 {dimension_numbers = #tpu.dot_dimension_numbers<[1], [1], [0], [0], [0, 0, 1, 0], [], []>} : vector<8x8xbf16>, vector<8x8xbf16>, vector<8x8xf32> -> vector<8x8xf32>
    %388 = arith.addf %387, %360 : vector<8x8xf32>
    %cst_122 = arith.constant dense<0xFF800000> : vector<8xf32>
    %389 = vector.multi_reduction <maximumf>, %388, %cst_122 [1] : vector<8x8xf32> to vector<8xf32>
    %390 = vector.shape_cast %389 : vector<8xf32> to vector<8x1xf32>
    %391 = vector.broadcast %390 : vector<8x1xf32> to vector<8x8xf32>
    %392 = arith.subf %388, %391 : vector<8x8xf32>
    %393 = math.exp %392 : vector<8x8xf32>
    %cst_123 = arith.constant dense<0.000000e+00> : vector<8xf32>
    %394 = vector.multi_reduction <add>, %393, %cst_123 [1] : vector<8x8xf32> to vector<8xf32>
    %395 = vector.shape_cast %394 : vector<8xf32> to vector<8x1xf32>
    %396 = tpu.reciprocal %395 {approx = true} : vector<8x1xf32> -> vector<8x1xf32>
    %397 = vector.broadcast %396 : vector<8x1xf32> to vector<8x8xf32>
    %398 = arith.mulf %393, %397 : vector<8x8xf32>
    %399 = arith.truncf %398 : vector<8x8xf32> to vector<8x8xbf16>
    %cst_124 = arith.constant dense<0.000000e+00> : vector<8x8xf32>
    %400 = tpu.matmul %399, %386, %cst_124 {dimension_numbers = #tpu.dot_dimension_numbers<[1], [0], [0], [1], [0, 0, 1, 1], [], []>} : vector<8x8xbf16>, vector<8x8xbf16>, vector<8x8xf32> -> vector<8x8xf32>
    %401 = vector.extract_strided_slice %356 {offsets = [0, 16], sizes = [8, 8], strides = [1, 1]} : vector<8x32xf32> to vector<8x8xf32>
    %402 = arith.truncf %401 : vector<8x8xf32> to vector<8x8xbf16>
    %403 = vector.extract_strided_slice %357 {offsets = [0, 16], sizes = [8, 8], strides = [1, 1]} : vector<8x32xf32> to vector<8x8xf32>
    %404 = arith.truncf %403 : vector<8x8xf32> to vector<8x8xbf16>
    %405 = vector.extract_strided_slice %358 {offsets = [0, 16], sizes = [8, 8], strides = [1, 1]} : vector<8x32xf32> to vector<8x8xf32>
    %406 = arith.truncf %405 : vector<8x8xf32> to vector<8x8xbf16>
    %cst_125 = arith.constant dense<0.000000e+00> : vector<8x8xf32>
    %407 = tpu.matmul %402, %404, %cst_125 {dimension_numbers = #tpu.dot_dimension_numbers<[1], [1], [0], [0], [0, 0, 1, 0], [], []>} : vector<8x8xbf16>, vector<8x8xbf16>, vector<8x8xf32> -> vector<8x8xf32>
    %408 = arith.addf %407, %360 : vector<8x8xf32>
    %cst_126 = arith.constant dense<0xFF800000> : vector<8xf32>
    %409 = vector.multi_reduction <maximumf>, %408, %cst_126 [1] : vector<8x8xf32> to vector<8xf32>
    %410 = vector.shape_cast %409 : vector<8xf32> to vector<8x1xf32>
    %411 = vector.broadcast %410 : vector<8x1xf32> to vector<8x8xf32>
    %412 = arith.subf %408, %411 : vector<8x8xf32>
    %413 = math.exp %412 : vector<8x8xf32>
    %cst_127 = arith.constant dense<0.000000e+00> : vector<8xf32>
    %414 = vector.multi_reduction <add>, %413, %cst_127 [1] : vector<8x8xf32> to vector<8xf32>
    %415 = vector.shape_cast %414 : vector<8xf32> to vector<8x1xf32>
    %416 = tpu.reciprocal %415 {approx = true} : vector<8x1xf32> -> vector<8x1xf32>
    %417 = vector.broadcast %416 : vector<8x1xf32> to vector<8x8xf32>
    %418 = arith.mulf %413, %417 : vector<8x8xf32>
    %419 = arith.truncf %418 : vector<8x8xf32> to vector<8x8xbf16>
    %cst_128 = arith.constant dense<0.000000e+00> : vector<8x8xf32>
    %420 = tpu.matmul %419, %406, %cst_128 {dimension_numbers = #tpu.dot_dimension_numbers<[1], [0], [0], [1], [0, 0, 1, 1], [], []>} : vector<8x8xbf16>, vector<8x8xbf16>, vector<8x8xf32> -> vector<8x8xf32>
    %421 = vector.extract_strided_slice %356 {offsets = [0, 24], sizes = [8, 8], strides = [1, 1]} : vector<8x32xf32> to vector<8x8xf32>
    %422 = arith.truncf %421 : vector<8x8xf32> to vector<8x8xbf16>
    %423 = vector.extract_strided_slice %357 {offsets = [0, 24], sizes = [8, 8], strides = [1, 1]} : vector<8x32xf32> to vector<8x8xf32>
    %424 = arith.truncf %423 : vector<8x8xf32> to vector<8x8xbf16>
    %425 = vector.extract_strided_slice %358 {offsets = [0, 24], sizes = [8, 8], strides = [1, 1]} : vector<8x32xf32> to vector<8x8xf32>
    %426 = arith.truncf %425 : vector<8x8xf32> to vector<8x8xbf16>
    %cst_129 = arith.constant dense<0.000000e+00> : vector<8x8xf32>
    %427 = tpu.matmul %422, %424, %cst_129 {dimension_numbers = #tpu.dot_dimension_numbers<[1], [1], [0], [0], [0, 0, 1, 0], [], []>} : vector<8x8xbf16>, vector<8x8xbf16>, vector<8x8xf32> -> vector<8x8xf32>
    %428 = arith.addf %427, %360 : vector<8x8xf32>
    %cst_130 = arith.constant dense<0xFF800000> : vector<8xf32>
    %429 = vector.multi_reduction <maximumf>, %428, %cst_130 [1] : vector<8x8xf32> to vector<8xf32>
    %430 = vector.shape_cast %429 : vector<8xf32> to vector<8x1xf32>
    %431 = vector.broadcast %430 : vector<8x1xf32> to vector<8x8xf32>
    %432 = arith.subf %428, %431 : vector<8x8xf32>
    %433 = math.exp %432 : vector<8x8xf32>
    %cst_131 = arith.constant dense<0.000000e+00> : vector<8xf32>
    %434 = vector.multi_reduction <add>, %433, %cst_131 [1] : vector<8x8xf32> to vector<8xf32>
    %435 = vector.shape_cast %434 : vector<8xf32> to vector<8x1xf32>
    %436 = tpu.reciprocal %435 {approx = true} : vector<8x1xf32> -> vector<8x1xf32>
    %437 = vector.broadcast %436 : vector<8x1xf32> to vector<8x8xf32>
    %438 = arith.mulf %433, %437 : vector<8x8xf32>
    %439 = arith.truncf %438 : vector<8x8xf32> to vector<8x8xbf16>
    %cst_132 = arith.constant dense<0.000000e+00> : vector<8x8xf32>
    %440 = tpu.matmul %439, %426, %cst_132 {dimension_numbers = #tpu.dot_dimension_numbers<[1], [0], [0], [1], [0, 0, 1, 1], [], []>} : vector<8x8xbf16>, vector<8x8xbf16>, vector<8x8xf32> -> vector<8x8xf32>
    %441 = tpu.concatenate %380, %400, %420, %440 in 1 : vector<8x8xf32>, vector<8x8xf32>, vector<8x8xf32>, vector<8x8xf32> -> vector<8x32xf32>
    %442 = tpu.concatenate %355, %441 in 0 : vector<8x32xf32>, vector<8x32xf32> -> vector<16x32xf32>
    %c1_133 = arith.constant 1 : index
    %c0_134 = arith.constant 0 : index
    %c0_135 = arith.constant 0 : index
    %443 = vector.load %arg5[%c1_133, %c0_134, %c0_135] : memref<2x32x32xbf16, #tpu.memory_space<vmem>>, vector<1x32x32xbf16>
    %444 = vector.shape_cast %443 : vector<1x32x32xbf16> to vector<32x32xbf16>
    %445 = arith.truncf %442 : vector<16x32xf32> to vector<16x32xbf16>
    %cst_136 = arith.constant dense<0.000000e+00> : vector<16x32xf32>
    %446 = tpu.matmul %445, %444, %cst_136 {dimension_numbers = #tpu.dot_dimension_numbers<[1], [0], [0], [1], [0, 0, 1, 1], [], []>} : vector<16x32xbf16>, vector<32x32xbf16>, vector<16x32xf32> -> vector<16x32xf32>
    %c1_137 = arith.constant 1 : index
    %c0_138 = arith.constant 0 : index
    %c0_139 = arith.constant 0 : index
    %447 = vector.load %arg6[%c1_137, %c0_138, %c0_139] : memref<2x1x32xf32, #tpu.memory_space<vmem>>, vector<1x1x32xf32>
    %448 = vector.shape_cast %447 : vector<1x1x32xf32> to vector<1x32xf32>
    %449 = vector.broadcast %448 : vector<1x32xf32> to vector<16x32xf32>
    %450 = arith.addf %446, %449 : vector<16x32xf32>
    %451 = arith.addf %450, %261 : vector<16x32xf32>
    %c1_140 = arith.constant 1 : index
    %c0_141 = arith.constant 0 : index
    %c0_142 = arith.constant 0 : index
    %452 = vector.load %arg7[%c1_140, %c0_141, %c0_142] : memref<2x1x32xf32, #tpu.memory_space<vmem>>, vector<1x1x32xf32>
    %453 = vector.shape_cast %452 : vector<1x1x32xf32> to vector<1x32xf32>
    %c1_143 = arith.constant 1 : index
    %c0_144 = arith.constant 0 : index
    %c0_145 = arith.constant 0 : index
    %454 = vector.load %arg8[%c1_143, %c0_144, %c0_145] : memref<2x1x32xf32, #tpu.memory_space<vmem>>, vector<1x1x32xf32>
    %455 = vector.shape_cast %454 : vector<1x1x32xf32> to vector<1x32xf32>
    %cst_146 = arith.constant dense<0.000000e+00> : vector<16xf32>
    %456 = vector.multi_reduction <add>, %451, %cst_146 [1] : vector<16x32xf32> to vector<16xf32>
    %457 = vector.shape_cast %456 : vector<16xf32> to vector<16x1xf32>
    %cst_147 = arith.constant 3.200000e+01 : f32
    %458 = vector.broadcast %cst_147 : f32 to vector<16x1xf32>
    %459 = arith.divf %457, %458 : vector<16x1xf32>
    %460 = vector.broadcast %459 : vector<16x1xf32> to vector<16x32xf32>
    %461 = arith.subf %451, %460 : vector<16x32xf32>
    %462 = arith.mulf %461, %461 : vector<16x32xf32>
    %cst_148 = arith.constant dense<0.000000e+00> : vector<16xf32>
    %463 = vector.multi_reduction <add>, %462, %cst_148 [1] : vector<16x32xf32> to vector<16xf32>
    %464 = vector.shape_cast %463 : vector<16xf32> to vector<16x1xf32>
    %cst_149 = arith.constant 3.200000e+01 : f32
    %465 = vector.broadcast %cst_149 : f32 to vector<16x1xf32>
    %466 = arith.divf %464, %465 : vector<16x1xf32>
    %467 = vector.broadcast %459 : vector<16x1xf32> to vector<16x32xf32>
    %468 = arith.subf %451, %467 : vector<16x32xf32>
    %cst_150 = arith.constant 9.99999974E-6 : f32
    %469 = vector.broadcast %cst_150 : f32 to vector<16x1xf32>
    %470 = arith.addf %466, %469 : vector<16x1xf32>
    %471 = math.rsqrt %470 : vector<16x1xf32>
    %472 = vector.broadcast %471 : vector<16x1xf32> to vector<16x32xf32>
    %473 = arith.mulf %468, %472 : vector<16x32xf32>
    %474 = vector.broadcast %453 : vector<1x32xf32> to vector<16x32xf32>
    %475 = arith.mulf %473, %474 : vector<16x32xf32>
    %476 = vector.broadcast %455 : vector<1x32xf32> to vector<16x32xf32>
    %477 = arith.addf %475, %476 : vector<16x32xf32>
    %c1_151 = arith.constant 1 : index
    %c0_152 = arith.constant 0 : index
    %c0_153 = arith.constant 0 : index
    %478 = vector.load %arg9[%c1_151, %c0_152, %c0_153] : memref<2x32x64xbf16, #tpu.memory_space<vmem>>, vector<1x32x64xbf16>
    %479 = vector.shape_cast %478 : vector<1x32x64xbf16> to vector<32x64xbf16>
    %480 = arith.truncf %477 : vector<16x32xf32> to vector<16x32xbf16>
    %cst_154 = arith.constant dense<0.000000e+00> : vector<16x64xf32>
    %481 = tpu.matmul %480, %479, %cst_154 {dimension_numbers = #tpu.dot_dimension_numbers<[1], [0], [0], [1], [0, 0, 1, 1], [], []>} : vector<16x32xbf16>, vector<32x64xbf16>, vector<16x64xf32> -> vector<16x64xf32>
    %c1_155 = arith.constant 1 : index
    %c0_156 = arith.constant 0 : index
    %c0_157 = arith.constant 0 : index
    %482 = vector.load %arg10[%c1_155, %c0_156, %c0_157] : memref<2x1x64xf32, #tpu.memory_space<vmem>>, vector<1x1x64xf32>
    %483 = vector.shape_cast %482 : vector<1x1x64xf32> to vector<1x64xf32>
    %484 = vector.broadcast %483 : vector<1x64xf32> to vector<16x64xf32>
    %485 = arith.addf %481, %484 : vector<16x64xf32>
    %cst_158 = arith.constant 0.000000e+00 : f32
    %486 = vector.broadcast %cst_158 : f32 to vector<16x64xf32>
    %487 = arith.maximumf %485, %486 : vector<16x64xf32>
    %c1_159 = arith.constant 1 : index
    %c0_160 = arith.constant 0 : index
    %c0_161 = arith.constant 0 : index
    %488 = vector.load %arg11[%c1_159, %c0_160, %c0_161] : memref<2x64x32xbf16, #tpu.memory_space<vmem>>, vector<1x64x32xbf16>
    %489 = vector.shape_cast %488 : vector<1x64x32xbf16> to vector<64x32xbf16>
    %490 = arith.truncf %487 : vector<16x64xf32> to vector<16x64xbf16>
    %cst_162 = arith.constant dense<0.000000e+00> : vector<16x32xf32>
    %491 = tpu.matmul %490, %489, %cst_162 {dimension_numbers = #tpu.dot_dimension_numbers<[1], [0], [0], [1], [0, 0, 1, 1], [], []>} : vector<16x64xbf16>, vector<64x32xbf16>, vector<16x32xf32> -> vector<16x32xf32>
    %c1_163 = arith.constant 1 : index
    %c0_164 = arith.constant 0 : index
    %c0_165 = arith.constant 0 : index
    %492 = vector.load %arg12[%c1_163, %c0_164, %c0_165] : memref<2x1x32xf32, #tpu.memory_space<vmem>>, vector<1x1x32xf32>
    %493 = vector.shape_cast %492 : vector<1x1x32xf32> to vector<1x32xf32>
    %494 = vector.broadcast %493 : vector<1x32xf32> to vector<16x32xf32>
    %495 = arith.addf %491, %494 : vector<16x32xf32>
    %496 = arith.addf %495, %477 : vector<16x32xf32>
    %c1_166 = arith.constant 1 : index
    %c0_167 = arith.constant 0 : index
    %c0_168 = arith.constant 0 : index
    %497 = vector.load %arg13[%c1_166, %c0_167, %c0_168] : memref<2x1x32xf32, #tpu.memory_space<vmem>>, vector<1x1x32xf32>
    %498 = vector.shape_cast %497 : vector<1x1x32xf32> to vector<1x32xf32>
    %c1_169 = arith.constant 1 : index
    %c0_170 = arith.constant 0 : index
    %c0_171 = arith.constant 0 : index
    %499 = vector.load %arg14[%c1_169, %c0_170, %c0_171] : memref<2x1x32xf32, #tpu.memory_space<vmem>>, vector<1x1x32xf32>
    %500 = vector.shape_cast %499 : vector<1x1x32xf32> to vector<1x32xf32>
    %cst_172 = arith.constant dense<0.000000e+00> : vector<16xf32>
    %501 = vector.multi_reduction <add>, %496, %cst_172 [1] : vector<16x32xf32> to vector<16xf32>
    %502 = vector.shape_cast %501 : vector<16xf32> to vector<16x1xf32>
    %cst_173 = arith.constant 3.200000e+01 : f32
    %503 = vector.broadcast %cst_173 : f32 to vector<16x1xf32>
    %504 = arith.divf %502, %503 : vector<16x1xf32>
    %505 = vector.broadcast %504 : vector<16x1xf32> to vector<16x32xf32>
    %506 = arith.subf %496, %505 : vector<16x32xf32>
    %507 = arith.mulf %506, %506 : vector<16x32xf32>
    %cst_174 = arith.constant dense<0.000000e+00> : vector<16xf32>
    %508 = vector.multi_reduction <add>, %507, %cst_174 [1] : vector<16x32xf32> to vector<16xf32>
    %509 = vector.shape_cast %508 : vector<16xf32> to vector<16x1xf32>
    %cst_175 = arith.constant 3.200000e+01 : f32
    %510 = vector.broadcast %cst_175 : f32 to vector<16x1xf32>
    %511 = arith.divf %509, %510 : vector<16x1xf32>
    %512 = vector.broadcast %504 : vector<16x1xf32> to vector<16x32xf32>
    %513 = arith.subf %496, %512 : vector<16x32xf32>
    %cst_176 = arith.constant 9.99999974E-6 : f32
    %514 = vector.broadcast %cst_176 : f32 to vector<16x1xf32>
    %515 = arith.addf %511, %514 : vector<16x1xf32>
    %516 = math.rsqrt %515 : vector<16x1xf32>
    %517 = vector.broadcast %516 : vector<16x1xf32> to vector<16x32xf32>
    %518 = arith.mulf %513, %517 : vector<16x32xf32>
    %519 = vector.broadcast %498 : vector<1x32xf32> to vector<16x32xf32>
    %520 = arith.mulf %518, %519 : vector<16x32xf32>
    %521 = vector.broadcast %500 : vector<1x32xf32> to vector<16x32xf32>
    %522 = arith.addf %520, %521 : vector<16x32xf32>
    %c0_177 = arith.constant 0 : index
    %c0_178 = arith.constant 0 : index
    %523 = vector.load %arg15[%c0_177, %c0_178] : memref<16x32xf32, #tpu.memory_space<vmem>>, vector<16x32xf32>
    tpu.vector_store %arg15[%c0_177, %c0_178], %522 {strides = array<i32>} : memref<16x32xf32, #tpu.memory_space<vmem>>, vector<16x32xf32>,
    return
  }
  func.func @transform_0(%arg0: i32) -> (i32, i32) {
    %c0_i32 = arith.constant 0 : i32
    %c0_i32_0 = arith.constant 0 : i32
    %c0_i32_1 = arith.constant 0 : i32
    return %c0_i32, %c0_i32_0 : i32, i32
  }
  func.func @transform_1(%arg0: i32) -> (i32, i32, i32) {
    %c0_i32 = arith.constant 0 : i32
    %c0_i32_0 = arith.constant 0 : i32
    %c0_i32_1 = arith.constant 0 : i32
    %c0_i32_2 = arith.constant 0 : i32
    return %c0_i32, %c0_i32_0, %c0_i32_1 : i32, i32, i32
  }
  func.func @transform_2(%arg0: i32) -> (i32, i32, i32) {
    %c0_i32 = arith.constant 0 : i32
    %c0_i32_0 = arith.constant 0 : i32
    %c0_i32_1 = arith.constant 0 : i32
    %c0_i32_2 = arith.constant 0 : i32
    return %c0_i32, %c0_i32_0, %c0_i32_1 : i32, i32, i32
  }
  func.func @transform_3(%arg0: i32) -> (i32, i32, i32) {
    %c0_i32 = arith.constant 0 : i32
    %c0_i32_0 = arith.constant 0 : i32
    %c0_i32_1 = arith.constant 0 : i32
    %c0_i32_2 = arith.constant 0 : i32
    return %c0_i32, %c0_i32_0, %c0_i32_1 : i32, i32, i32
  }
  func.func @transform_4(%arg0: i32) -> (i32, i32, i32) {
    %c0_i32 = arith.constant 0 : i32
    %c0_i32_0 = arith.constant 0 : i32
    %c0_i32_1 = arith.constant 0 : i32
    %c0_i32_2 = arith.constant 0 : i32
    return %c0_i32, %c0_i32_0, %c0_i32_1 : i32, i32, i32
  }
  func.func @transform_5(%arg0: i32) -> (i32, i32, i32) {
    %c0_i32 = arith.constant 0 : i32
    %c0_i32_0 = arith.constant 0 : i32
    %c0_i32_1 = arith.constant 0 : i32
    %c0_i32_2 = arith.constant 0 : i32
    return %c0_i32, %c0_i32_0, %c0_i32_1 : i32, i32, i32
  }
  func.func @transform_6(%arg0: i32) -> (i32, i32, i32) {
    %c0_i32 = arith.constant 0 : i32
    %c0_i32_0 = arith.constant 0 : i32
    %c0_i32_1 = arith.constant 0 : i32
    %c0_i32_2 = arith.constant 0 : i32
    return %c0_i32, %c0_i32_0, %c0_i32_1 : i32, i32, i32
  }
  func.func @transform_7(%arg0: i32) -> (i32, i32, i32) {
    %c0_i32 = arith.constant 0 : i32
    %c0_i32_0 = arith.constant 0 : i32
    %c0_i32_1 = arith.constant 0 : i32
    %c0_i32_2 = arith.constant 0 : i32
    return %c0_i32, %c0_i32_0, %c0_i32_1 : i32, i32, i32
  }
  func.func @transform_8(%arg0: i32) -> (i32, i32, i32) {
    %c0_i32 = arith.constant 0 : i32
    %c0_i32_0 = arith.constant 0 : i32
    %c0_i32_1 = arith.constant 0 : i32
    %c0_i32_2 = arith.constant 0 : i32
    return %c0_i32, %c0_i32_0, %c0_i32_1 : i32, i32, i32
  }
  func.func @transform_9(%arg0: i32) -> (i32, i32, i32) {
    %c0_i32 = arith.constant 0 : i32
    %c0_i32_0 = arith.constant 0 : i32
    %c0_i32_1 = arith.constant 0 : i32
    %c0_i32_2 = arith.constant 0 : i32
    return %c0_i32, %c0_i32_0, %c0_i32_1 : i32, i32, i32
  }
  func.func @transform_10(%arg0: i32) -> (i32, i32, i32) {
    %c0_i32 = arith.constant 0 : i32
    %c0_i32_0 = arith.constant 0 : i32
    %c0_i32_1 = arith.constant 0 : i32
    %c0_i32_2 = arith.constant 0 : i32
    return %c0_i32, %c0_i32_0, %c0_i32_1 : i32, i32, i32
  }
  func.func @transform_11(%arg0: i32) -> (i32, i32, i32) {
    %c0_i32 = arith.constant 0 : i32
    %c0_i32_0 = arith.constant 0 : i32
    %c0_i32_1 = arith.constant 0 : i32
    %c0_i32_2 = arith.constant 0 : i32
    return %c0_i32, %c0_i32_0, %c0_i32_1 : i32, i32, i32
  }
  func.func @transform_12(%arg0: i32) -> (i32, i32, i32) {
    %c0_i32 = arith.constant 0 : i32
    %c0_i32_0 = arith.constant 0 : i32
    %c0_i32_1 = arith.constant 0 : i32
    %c0_i32_2 = arith.constant 0 : i32
    return %c0_i32, %c0_i32_0, %c0_i32_1 : i32, i32, i32
  }
  func.func @transform_13(%arg0: i32) -> (i32, i32, i32) {
    %c0_i32 = arith.constant 0 : i32
    %c0_i32_0 = arith.constant 0 : i32
    %c0_i32_1 = arith.constant 0 : i32
    %c0_i32_2 = arith.constant 0 : i32
    return %c0_i32, %c0_i32_0, %c0_i32_1 : i32, i32, i32
  }
  func.func @transform_14(%arg0: i32) -> (i32, i32) {
    %c0_i32 = arith.constant 0 : i32
    %c0_i32_0 = arith.constant 0 : i32
    %c0_i32_1 = arith.constant 0 : i32
    return %c0_i32, %c0_i32_0 : i32, i32
  }
}

</mosaic_0001>

<bundles_post_ra>
// kernel: tpu_custom_call.1
= control target key start
LH: loop header
LB: loop body
LE: loop exit
PB: predicated region body
PF: predicated region fallthrough
CT: control target
= control target key end

     0   :  { %19 = vsyncpa [#allocation3], 0  ;;  %s4264_s0 = inlined_call_operand.hbm [shape: f32[16,32], index: 0, kind: input, shape index: {}]   ;;  %s4265_s1 = inlined_call_operand.hbm [shape: f32[2,8,8], index: 1, kind: input, shape index: {}]   ;;  %s4266_s2 = inlined_call_operand.vmem [shape: bf16[2,32,96], index: 2, kind: input, shape index: {}]   ;;  %s4267_s3 = inlined_call_operand.vmem [shape: f32[2,1,96], index: 3, kind: input, shape index: {}]   ;;  %s4268_s4 = inlined_call_operand.vmem [shape: bf16[2,32,32], index: 4, kind: input, shape index: {}]   ;;  %s4269_s5 = inlined_call_operand.vmem [shape: f32[2,1,32], index: 5, kind: input, shape index: {}]   ;;  %s4270_s6 = inlined_call_operand.hbm [shape: f32[2,1,32], index: 6, kind: input, shape index: {}]   ;;  %s4271_s7 = inlined_call_operand.hbm [shape: f32[2,1,32], index: 7, kind: input, shape index: {}]   ;;  %s4272_s8 = inlined_call_operand.vmem [shape: bf16[2,32,64], index: 8, kind: input, shape index: {}]   ;;  %s4273_s9 = inlined_call_operand.hbm [shape: f32[2,1,64], index: 9, kind: input, shape index: {}]   ;;  %s4274_s10 = inlined_call_operand.vmem [shape: bf16[2,64,32], index: 10, kind: input, shape index: {}]   ;;  %s4275_s11 = inlined_call_operand.vmem [shape: f32[2,1,32], index: 11, kind: input, shape index: {}]   ;;  %s4276_s12 = inlined_call_operand.vmem [shape: f32[2,1,32], index: 12, kind: input, shape index: {}]   ;;  %s4277_s13 = inlined_call_operand.vmem [shape: f32[2,1,32], index: 13, kind: input, shape index: {}]   ;;  %s4278_s14 = inlined_call_operand.hbm [shape: f32[16,32], index: 14, kind: output, shape index: {}]  }
   0x1   :  { %20 = vsyncpa [#allocation6], 0 }
   0x2   :  { %21 = vsyncpa [#allocation9], 0 }
   0x3   :  { %22 = vsyncpa [#allocation4], 0  ;;  %s3498_s29 = smov [#allocation5]   ;;  %s3358_s17 = scalar_lea.hbm %s4265_s1, 256 }
   0x4   :  { %s40_s30 = sshll.u32 %s3498_s29, 4  ;;  %p3359_p0 = scmp.ne.s32.totalorder %s4265_s1, %s3358_s17  ;;  %s41_s30 = int_to_ptr.vmem [resolvable:$true] %s40_s30 }
   0x5   :  { %p3362_p1 = scmp.lt.u32.totalorder %s3358_s17, %s4265_s1 }
   0x7   :  { %p3364_p2 = pnand %p3362_p1, %p3359_p0 }
   0x9   :  { %3367 = shalt.err (!%p3364_p2)
}
   0xa   :  { %s3368_s22 = scalar_lea.vmem %s41_s30, 256  ;;  %p3373_p4 = scmp.lt.s32.totalorder %s41_s30, %s41_s30 }
   0xb   :  { %p3369_p3 = scmp.ne.s32.totalorder %s41_s30, %s3368_s22  ;;  %p3374_p5 = scmp.lt.s32.totalorder %s3368_s22, %s3368_s22 }
   0xd   :  { %p3375_p6 = por %p3374_p5, %p3373_p4 }
   0xf   :  { %p3376_p7 = pnand %p3375_p6, %p3369_p3 }
  0x11   :  { %3379 = shalt.err (!%p3376_p7)
}
  0x12   :  { %s4279_s23 = smov 128   ;;  %s3500_s24 = smov 8  }
  0x13   :  { %46 = dma.hbm_to_vmem [thread:$0]  %s4265_s1, 256, %s41_s30, [#allocation6], %s4279_s23, %s4279_s23, %s3500_s24  }
  0x14   :  { %s3501_s27 = smov [#allocation8]   ;;  %s3502_s29 = smov [#allocation2]  }
  0x15   :  { %s72_s28 = sshll.u32 %s3501_s27, 4  ;;  %s28_s15 = sshll.u32 %s3502_s29, 4  ;;  %s73_s28 = int_to_ptr.vmem [resolvable:$true] %s72_s28  ;;  %s29_s15 = int_to_ptr.vmem [resolvable:$true] %s28_s15 }
  0x16   :  { %s3380_s18 = scalar_lea.hbm %s4271_s7, 32 }
  0x17   :  { %p3381_p8 = scmp.ne.s32.totalorder %s4271_s7, %s3380_s18  ;;  %p3384_p9 = scmp.lt.u32.totalorder %s3380_s18, %s4271_s7 }
  0x19   :  { %p3386_p10 = pnand %p3384_p9, %p3381_p8 }
  0x1b   :  { %3389 = shalt.err (!%p3386_p10)
}
  0x1c   :  { %s3390_s1 = scalar_lea.vmem %s73_s28, 32  ;;  %p3395_p12 = scmp.lt.s32.totalorder %s73_s28, %s73_s28 }
  0x1d   :  { %p3391_p11 = scmp.ne.s32.totalorder %s73_s28, %s3390_s1  ;;  %p3396_p13 = scmp.lt.s32.totalorder %s3390_s1, %s3390_s1 }
  0x1f   :  { %p3397_p0 = por %p3396_p13, %p3395_p12 }
  0x21   :  { %p3398_p1 = pnand %p3397_p0, %p3391_p11 }
  0x23   :  { %3401 = shalt.err (!%p3398_p1)
}
  0x24   :  { %s3503_s30 = smov 16   ;;  %s3504_s25 = smov 1  }
  0x25   :  { %78 = dma.hbm_to_vmem [thread:$0]  %s4271_s7, 32, %s73_s28, [#allocation9], %s3503_s30, %s3503_s30, %s3504_s25  }
  0x26   :  { %s3402_s17 = scalar_lea.hbm %s4264_s0, 256 }
  0x27   :  { %p3403_p2 = scmp.ne.s32.totalorder %s4264_s0, %s3402_s17  ;;  %p3406_p3 = scmp.lt.u32.totalorder %s3402_s17, %s4264_s0 }
  0x29   :  { %p3408_p4 = pnand %p3406_p3, %p3403_p2 }
  0x2b   :  { %3411 = shalt.err (!%p3408_p4)
}
  0x2c   :  { %s3412_s22 = scalar_lea.vmem %s29_s15, 256  ;;  %p3417_p6 = scmp.lt.s32.totalorder %s29_s15, %s29_s15 }
  0x2d   :  { %p3413_p5 = scmp.ne.s32.totalorder %s29_s15, %s3412_s22  ;;  %p3418_p7 = scmp.lt.s32.totalorder %s3412_s22, %s3412_s22 }
  0x2f   :  { %p3419_p8 = por %p3418_p7, %p3417_p6 }
  0x31   :  { %p3420_p9 = pnand %p3419_p8, %p3413_p5 }
  0x33   :  { %3423 = shalt.err (!%p3420_p9)
}
  0x34   :  { %34 = dma.hbm_to_vmem [thread:$0]  %s4264_s0, 256, %s29_s15, [#allocation3], %s4279_s23, %s4279_s23, %s3500_s24  }
  0x35   :  { %s3505_s1 = smov [#allocation7]   ;;  %s3506_s27 = smov [#allocation10]  }
  0x36   :  { %s60_s26 = sshll.u32 %s3505_s1, 4  ;;  %s86_s29 = sshll.u32 %s3506_s27, 4  ;;  %s61_s26 = int_to_ptr.vmem [resolvable:$true] %s60_s26  ;;  %s87_s29 = int_to_ptr.vmem [resolvable:$true] %s86_s29 }
  0x37   :  { %s3424_s18 = scalar_lea.hbm %s4270_s6, 32 }
  0x38   :  { %p3425_p10 = scmp.ne.s32.totalorder %s4270_s6, %s3424_s18  ;;  %p3428_p11 = scmp.lt.u32.totalorder %s3424_s18, %s4270_s6 }
  0x3a   :  { %p3430_p12 = pnand %p3428_p11, %p3425_p10 }
  0x3c   :  { %3433 = shalt.err (!%p3430_p12)
}
  0x3d   :  { %s3434_s0 = scalar_lea.vmem %s61_s26, 32  ;;  %p3439_p0 = scmp.lt.s32.totalorder %s61_s26, %s61_s26 }
  0x3e   :  { %p3435_p13 = scmp.ne.s32.totalorder %s61_s26, %s3434_s0  ;;  %p3440_p1 = scmp.lt.s32.totalorder %s3434_s0, %s3434_s0 }
  0x40   :  { %p3441_p2 = por %p3440_p1, %p3439_p0 }
  0x42   :  { %p3442_p3 = pnand %p3441_p2, %p3435_p13 }
  0x44   :  { %3445 = shalt.err (!%p3442_p3)
}
  0x45   :  { %66 = dma.hbm_to_vmem [thread:$0]  %s4270_s6, 32, %s61_s26, [#allocation6], %s3503_s30, %s3503_s30, %s3504_s25  }
  0x46   :  { %s3446_s27 = scalar_lea.hbm %s4273_s9, 32 }
  0x47   :  { %p3447_p4 = scmp.ne.s32.totalorder %s4273_s9, %s3446_s27  ;;  %p3450_p5 = scmp.lt.u32.totalorder %s3446_s27, %s4273_s9 }
  0x49   :  { %p3452_p6 = pnand %p3450_p5, %p3447_p4 }
  0x4b   :  { %3455 = shalt.err (!%p3452_p6)
}
  0x4c   :  { %s3456_s20 = scalar_lea.vmem %s87_s29, 32  ;;  %p3461_p8 = scmp.lt.s32.totalorder %s87_s29, %s87_s29 }
  0x4d   :  { %p3457_p7 = scmp.ne.s32.totalorder %s87_s29, %s3456_s20  ;;  %p3462_p9 = scmp.lt.s32.totalorder %s3456_s20, %s3456_s20 }
  0x4f   :  { %p3463_p10 = por %p3462_p9, %p3461_p8 }
  0x51   :  { %p3464_p11 = pnand %p3463_p10, %p3457_p7 }
  0x53   :  { %3467 = shalt.err (!%p3464_p11)
}
  0x54   :  { %92 = dma.hbm_to_vmem [thread:$0]  %s4273_s9, 32, %s87_s29, [#allocation9], %s3503_s30, %s3503_s30, %s3504_s25  }
  0x55   :  { %3490 = dma.done.wait [#allocation3], 256  }
  0x56   :  { %3491 = vsyncadd [#allocation3], 4294967040 }
  0x57   :  { %3492 = dma.done.wait [#allocation6], 288  }
  0x58   :  { %3493 = vsyncadd [#allocation6], 4294967008 }
  0x59   :  { %3494 = dma.done.wait [#allocation9], 64  }
  0x5a   :  { %3495 = vsyncadd [#allocation9], 4294967232  ;;  %v3507_v0 = vmov 0.0   ;;  %vm3508_vm0 = vmmov 0   ;;  %v3257_v1 = vld [vmem:[%s4266_s2] sm:$0xff]   ;;  %v3258_v2 = vld [vmem:[%s4266_s2 + $0x8] sm:$0xff]  }
  0x5b   :  { %2939 = vmatprep.subr.bf16.mxu1 %v3507_v0  ;;  %2943 = vmatprep.mubr.msk.bf16.mxu1 %vm3508_vm0, %v3507_v0  ;;  %v3684_v3 = vld [vmem:[#allocation2] sm:$0xff]  ;;  %v3686_v4 = vld [vmem:[#allocation2 + $0x8] sm:$0xff]  ;;  %vm143_vm1 = vcmask 261120   ;;  %s3509_s15 = smov 120   ;;  %s3510_s7 = smov 96   ;;  %vm193_vm2 = vcmask 64512  }
  0x5c   :  { %2953 = vmatprep.subr.bf16.mxu0 %v3507_v0  ;;  %2955 = vmatprep.mubr.msk.bf16.mxu0 %vm3508_vm0, %v3507_v0  ;;  %v123_v5 = vpack.c.bf16 %v3686_v4, %v3684_v3  ;;  %v2746_v6 = vld [vmem:[%s4267_s3] ss:$0 sm:$0xff]  ;;  %s3511_s28 = smov 80   ;;  %s3512_s1 = smov 88   ;;  %v3772_v37 = vld [vmem:[#allocation5] sm:$0xff]  ;;  %v3785_v62 = vld [vmem:[#allocation5 + $0x8] sm:$0xff] }
  0x5d   :  { %2940 = vmatpush3.bf16.msra.mxu1 %v3257_v1  ;;  %s3513_s27 = smov 72   ;;  %s3514_s16 = smov 112   ;;  %vm257_vm3 = vcmask 1043456   ;;  %vm644_vm4 = vcmask 130048   ;;  %vm646_vm5 = vcmask 195584   ;;  %vm1330_vm6 = vcmask 523264  }
  0x5e   :  { %2941 = vmatprep.subr.bf16.mxu1 %v3507_v0  ;;  %s3515_s17 = smov 104   ;;  %s3516_s18 = smov 56  }
  0x5f   :  { %s3517_s19 = smov 64   ;;  %s3518_s20 = smov 48  }
  0x60   :  { %s3519_s6 = smov 40   ;;  %s4280_s29 = smov 24  }
  0x61   :  { %2942 = vmatpush3.bf16.msra.mxu1 %v3258_v2  ;;  %s3521_s25 = smov [#allocation11]  }
  0x62   :  { %2947 = vmatprep.subr.bf16.mxu1 %v3507_v0  ;;  %s2732_s22 = sshll.u32 %s3521_s25, 4  ;;  %s2733_s22 = int_to_ptr.vmem [resolvable:$true] %s2732_s22 }
  0x63   :  { %p3473_p13 = scmp.lt.s32.totalorder %s2733_s22, %s2733_s22 }
  0x64   :  { %2944 = vmatmul.mubr.msk.bf16.vlgmr.msra.gmra.mrb[0].mxu1 %vm143_vm1, %v123_v5 }
  0x65   :  { %2949 = vmatprep.mubr.msk.bf16.mxu1 %vm3508_vm0, %v3507_v0 }
 0x137   :  { %v181_v7 = vpop.f32.mrb[0].mxu1 }
 0x138   :  { %v182_v8 = vadd.f32 %v2746_v6, %v181_v7  ;;  %v2945_v9 = vpop.f32.mrb[1].mxu1 }
 0x139   :  { %v184_v10 = vpop.f32.mrb[2].mxu1 }
 0x13a   :  { %v3698_v11 = vpack.c.bf16 %v182_v8, %v182_v8  ;;  %v2946_v12 = vpop.f32.mrb[3].mxu1  ;;  %v185_v13 = vadd.f32 %v2746_v6, %v184_v10 }
 0x13c   :  { %301 = vrot.lane.b32.xlu1 %v3698_v11, %s3509_s15  ;;  %191 = vrot.lane.b32.xlu0 %v3698_v11, %s3510_s7  ;;  %v3712_v14 = vpack.c.bf16 %v185_v13, %v185_v13 }
 0x140   :  { %413 = vrot.lane.b32.xlu1 %v3698_v11, %s3511_s28  ;;  %303 = vrot.lane.b32.xlu0 %v3698_v11, %s3512_s1 }
 0x144   :  { %523 = vrot.lane.b32.xlu1 %v3698_v11, %s3513_s27  ;;  %411 = vrot.lane.b32.xlu0 %v3698_v11, %s3514_s16 }
 0x148   :  { %521 = vrot.lane.b32.xlu0 %v3698_v11, %s3515_s17  ;;  %652 = vrot.lane.b32.xlu1 %v3712_v14, %s3510_s7 }
 0x14c   :  { %762 = vrot.lane.b32.xlu0 %v3712_v14, %s3512_s1  ;;  %760 = vrot.lane.b32.xlu1 %v3712_v14, %s3509_s15 }
 0x150   :  { %872 = vrot.lane.b32.xlu0 %v3712_v14, %s3511_s28  ;;  %870 = vrot.lane.b32.xlu1 %v3712_v14, %s3514_s16 }
 0x154   :  { %982 = vrot.lane.b32.xlu0 %v3712_v14, %s3513_s27  ;;  %980 = vrot.lane.b32.xlu1 %v3712_v14, %s3515_s17 }
 0x1ae   :  { %v192_v15 = vpop.permute.xlu0 %191  ;;  %v302_v18 = vpop.permute.xlu1 %301 }
 0x1af   :  { %v198_v16 = vsel %vm193_vm2, %v192_v15, 0 }
 0x1b0   :  { %2948 = vmatpush3.bf16.xpose.msra.mxu1 %v198_v16 }
 0x1b1   :  { %2959 = vmatprep.subr.bf16.mxu1 %v3507_v0 }
 0x1b2   :  { %v304_v17 = vpop.permute.xlu0 %303  ;;  %v414_v20 = vpop.permute.xlu1 %413 }
 0x1b3   :  { %v309_v19 = vsel %vm193_vm2, %v304_v17, 0  ;;  %v419_v21 = vsel %vm193_vm2, %v414_v20, 0 }
 0x1b6   :  { %v524_v22 = vpop.permute.xlu1 %523  ;;  %v412_v23 = vpop.permute.xlu0 %411 }
 0x1b7   :  { %2950 = vmatmul.mubr.msk.bf16.vlgmr.msra.gmra.mrb[4].mxu1 %vm193_vm2, %v3698_v11  ;;  %v529_v24 = vsel %vm193_vm2, %v524_v22, 0 }
 0x1b8   :  { %2960 = vmatpush3.bf16.xpose.msra.mxu1 %v309_v19  ;;  %2961 = vmatprep.mubr.msk.bf16.mxu1 %vm3508_vm0, %v3507_v0 }
 0x1b9   :  { %2971 = vmatprep.subr.bf16.mxu1 %v3507_v0 }
 0x1ba   :  { %v653_v25 = vpop.permute.xlu1 %652  ;;  %v522_v26 = vpop.permute.xlu0 %521 }
 0x1bb   :  { %v658_v27 = vsel %vm193_vm2, %v653_v25, 0 }
 0x1be   :  { %v763_v28 = vpop.permute.xlu0 %762  ;;  %v761_v31 = vpop.permute.xlu1 %760 }
 0x1bf   :  { %2962 = vmatmul.mubr.msk.bf16.vlgmr.msra.gmra.mrb[8].mxu1 %vm193_vm2, %v302_v18  ;;  %v768_v29 = vsel %vm193_vm2, %v763_v28, 0 }
 0x1c0   :  { %2972 = vmatpush3.bf16.xpose.msra.mxu1 %v419_v21  ;;  %2973 = vmatprep.mubr.msk.bf16.mxu1 %vm3508_vm0, %v3507_v0 }
 0x1c1   :  { %2983 = vmatprep.subr.bf16.mxu1 %v3507_v0 }
 0x1c2   :  { %v873_v30 = vpop.permute.xlu0 %872  ;;  %v871_v34 = vpop.permute.xlu1 %870 }
 0x1c3   :  { %v878_v32 = vsel %vm193_vm2, %v873_v30, 0 }
 0x1c6   :  { %v983_v33 = vpop.permute.xlu0 %982  ;;  %v981_v36 = vpop.permute.xlu1 %980 }
 0x1c7   :  { %2974 = vmatmul.mubr.msk.bf16.vlgmr.msra.gmra.mrb[12].mxu1 %vm193_vm2, %v412_v23  ;;  %v988_v35 = vsel %vm193_vm2, %v983_v33, 0 }
 0x1c8   :  { %2984 = vmatpush3.bf16.xpose.msra.mxu1 %v529_v24  ;;  %2985 = vmatprep.mubr.msk.bf16.mxu1 %vm3508_vm0, %v3507_v0 }
 0x1c9   :  { %2995 = vmatprep.subr.bf16.mxu1 %v3507_v0 }
 0x1cf   :  { %2986 = vmatmul.mubr.msk.bf16.vlgmr.msra.gmra.mrb[16].mxu1 %vm193_vm2, %v522_v26 }
 0x1d0   :  { %2996 = vmatpush3.bf16.xpose.msra.mxu1 %v658_v27  ;;  %2997 = vmatprep.mubr.msk.bf16.mxu1 %vm3508_vm0, %v3507_v0 }
 0x1d1   :  { %3007 = vmatprep.subr.bf16.mxu1 %v3507_v0 }
 0x1d7   :  { %2998 = vmatmul.mubr.msk.bf16.vlgmr.msra.gmra.mrb[20].mxu1 %vm193_vm2, %v3712_v14 }
 0x1d8   :  { %3008 = vmatpush3.bf16.xpose.msra.mxu1 %v768_v29  ;;  %3009 = vmatprep.mubr.msk.bf16.mxu1 %vm3508_vm0, %v3507_v0 }
 0x1d9   :  { %3019 = vmatprep.subr.bf16.mxu1 %v3507_v0 }
 0x1df   :  { %3010 = vmatmul.mubr.msk.bf16.vlgmr.msra.gmra.mrb[24].mxu1 %vm193_vm2, %v761_v31 }
 0x1e0   :  { %3020 = vmatpush3.bf16.xpose.msra.mxu1 %v878_v32  ;;  %3021 = vmatprep.mubr.msk.bf16.mxu1 %vm3508_vm0, %v3507_v0 }
 0x1e1   :  { %3031 = vmatprep.subr.bf16.mxu1 %v3507_v0 }
 0x1e7   :  { %3022 = vmatmul.mubr.msk.bf16.vlgmr.msra.gmra.mrb[28].mxu1 %vm193_vm2, %v871_v34 }
 0x1e8   :  { %3032 = vmatpush3.bf16.xpose.msra.mxu1 %v988_v35  ;;  %3033 = vmatprep.mubr.msk.bf16.mxu1 %vm3508_vm0, %v3507_v0 }
 0x1e9   :  { %3043 = vmatprep.subr.bf16.mxu1 %v3507_v0 }
 0x1ef   :  { %3034 = vmatmul.mubr.msk.bf16.vlgmr.msra.gmra.mrb[32].mxu1 %vm193_vm2, %v981_v36 }
 0x1f0   :  { %3047 = vmatprep.mubr.msk.bf16.mxu1 %vm3508_vm0, %v3507_v0 }
 0x28a   :  { %v234_v38 = vpop.f32.mrb[4].mxu1 }
 0x28b   :  { %v235_v39 = vadd.f32 %v234_v38, %v3772_v37  ;;  %v2951_v40 = vpop.f32.mrb[5].mxu1 }
 0x28c   :  { %v237_v41 = vpop.f32.mrb[6].mxu1 }
 0x28d   :  { %v2952_v42 = vpop.f32.mrb[7].mxu1  ;;  %v240_v43 = vsel %vm193_vm2, %v235_v39, -inf }
 0x28e   :  { %241 = vmax.xlane.f32.xlu0 %v240_v43 }
 0x292   :  { %v345_v44 = vpop.f32.mrb[8].mxu1 }
 0x293   :  { %v346_v45 = vadd.f32 %v345_v44, %v3772_v37  ;;  %v2963_v46 = vpop.f32.mrb[9].mxu1 }
 0x294   :  { %v348_v47 = vpop.f32.mrb[10].mxu1 }
 0x295   :  { %v2964_v48 = vpop.f32.mrb[11].mxu1  ;;  %v351_v49 = vsel %vm193_vm2, %v346_v45, -inf }
 0x296   :  { %352 = vmax.xlane.f32.xlu1 %v351_v49 }
 0x29a   :  { %v455_v50 = vpop.f32.mrb[12].mxu1 }
 0x29b   :  { %v456_v51 = vadd.f32 %v455_v50, %v3772_v37  ;;  %v2975_v52 = vpop.f32.mrb[13].mxu1 }
 0x29c   :  { %v458_v53 = vpop.f32.mrb[14].mxu1 }
 0x29d   :  { %v2976_v54 = vpop.f32.mrb[15].mxu1  ;;  %v461_v55 = vsel %vm193_vm2, %v456_v51, -inf }
 0x29e   :  { %462 = vmax.xlane.f32.xlu0 %v461_v55 }
 0x2a2   :  { %v565_v56 = vpop.f32.mrb[16].mxu1 }
 0x2a3   :  { %v3781_v57 = vadd.f32 %v565_v56, %v3772_v37  ;;  %v2987_v58 = vpop.f32.mrb[17].mxu1 }
 0x2a4   :  { %v568_v59 = vpop.f32.mrb[18].mxu1 }
 0x2a5   :  { %v2988_v60 = vpop.f32.mrb[19].mxu1  ;;  %v571_v61 = vsel %vm193_vm2, %v3781_v57, -inf }
 0x2a6   :  { %572 = vmax.xlane.f32.xlu0 %v571_v61 }
 0x2aa   :  { %v694_v63 = vpop.f32.mrb[20].mxu1 }
 0x2ab   :  { %v3788_v1 = vadd.f32 %v694_v63, %v3785_v62  ;;  %v2999_v2 = vpop.f32.mrb[21].mxu1 }
 0x2ac   :  { %v697_v5 = vpop.f32.mrb[22].mxu1 }
 0x2ad   :  { %v3000_v6 = vpop.f32.mrb[23].mxu1  ;;  %v700_v7 = vsel %vm193_vm2, %v3788_v1, -inf }
 0x2ae   :  { %701 = vmax.xlane.f32.xlu1 %v700_v7 }
 0x2b2   :  { %v804_v8 = vpop.f32.mrb[24].mxu1 }
 0x2b3   :  { %v3793_v9 = vadd.f32 %v804_v8, %v3785_v62  ;;  %v3011_v10 = vpop.f32.mrb[25].mxu1 }
 0x2b4   :  { %v807_v12 = vpop.f32.mrb[26].mxu1 }
 0x2b5   :  { %v3012_v13 = vpop.f32.mrb[27].mxu1  ;;  %v810_v15 = vsel %vm193_vm2, %v3793_v9, -inf }
 0x2b6   :  { %811 = vmax.xlane.f32.xlu0 %v810_v15 }
 0x2ba   :  { %v914_v16 = vpop.f32.mrb[28].mxu1 }
 0x2bb   :  { %v915_v17 = vadd.f32 %v914_v16, %v3785_v62  ;;  %v3023_v18 = vpop.f32.mrb[29].mxu1 }
 0x2bc   :  { %v917_v19 = vpop.f32.mrb[30].mxu1 }
 0x2bd   :  { %v3024_v20 = vpop.f32.mrb[31].mxu1  ;;  %v920_v21 = vsel %vm193_vm2, %v915_v17, -inf }
 0x2be   :  { %921 = vmax.xlane.f32.xlu1 %v920_v21 }
 0x2c2   :  { %v1024_v22 = vpop.f32.mrb[32].mxu1 }
 0x2c3   :  { %v3035_v23 = vpop.f32.mrb[33].mxu1  ;;  %v3804_v26 = vadd.f32 %v1024_v22, %v3785_v62 }
 0x2c4   :  { %v1027_v24 = vpop.f32.mrb[34].mxu1 }
 0x2c5   :  { %v3036_v25 = vpop.f32.mrb[35].mxu1  ;;  %v1030_v27 = vsel %vm193_vm2, %v3804_v26, -inf }
 0x2cc   :  { %363 = vrot.lane.b32.xlu0 %v3698_v11, %s3516_s18 }
 0x2cf   :  { %252 = vrot.lane.b32.xlu1 %v3698_v11, %s3517_s19 }
 0x2eb   :  { %1031 = vmax.xlane.f32.xlu0 %v1030_v27 }
 0x31b   :  { %v242_v28 = vpop.xlane.xlu0 %241 }
 0x31c   :  { %v243_v29 = vsub.f32 %v235_v39, %v242_v28 }
 0x31e   :  { %v244_v30 = vmul.f32 1.442695, %v243_v29 }
 0x320   :  { %3277 = vpow2.f32 %v244_v30 }
 0x323   :  { %v353_v31 = vpop.xlane.xlu1 %352 }
 0x324   :  { %v354_v32 = vsub.f32 %v346_v45, %v353_v31 }
 0x326   :  { %v355_v33 = vmul.f32 1.442695, %v354_v32 }
 0x328   :  { %3279 = vpow2.f32 %v355_v33 }
 0x32a   :  { %v3808_v34 = vpop.eup %3277 }
 0x32b   :  { %v463_v35 = vpop.xlane.xlu0 %462  ;;  %v246_v36 = vsel %vm193_vm2, %v3808_v34, 0.0 }
 0x32c   :  { %v464_v38 = vsub.f32 %v456_v51, %v463_v35  ;;  %247 = vadd.xlane.f32.xlu1 %v246_v36 }
 0x32e   :  { %v465_v40 = vmul.f32 1.442695, %v464_v38 }
 0x330   :  { %3281 = vpow2.f32 %v465_v40 }
 0x332   :  { %v3812_v41 = vpop.eup %3279 }
 0x333   :  { %v357_v39 = vsel %vm193_vm2, %v3812_v41, 0.0  ;;  %v573_v47 = vpop.xlane.xlu0 %572 }
 0x334   :  { %358 = vadd.xlane.f32.xlu0 %v357_v39  ;;  %v574_v49 = vsub.f32 %v3781_v57, %v573_v47 }
 0x336   :  { %v575_v50 = vmul.f32 1.442695, %v574_v49 }
 0x338   :  { %3283 = vpow2.f32 %v575_v50 }
 0x33a   :  { %v3816_v42 = vpop.eup %3281 }
 0x33b   :  { %v467_v43 = vsel %vm193_vm2, %v3816_v42, 0.0  ;;  %v702_v44 = vpop.xlane.xlu1 %701 }
 0x33c   :  { %468 = vadd.xlane.f32.xlu1 %v467_v43  ;;  %v703_v51 = vsub.f32 %v3788_v1, %v702_v44 }
 0x33e   :  { %v704_v54 = vmul.f32 1.442695, %v703_v51 }
 0x340   :  { %3285 = vpow2.f32 %v704_v54 }
 0x342   :  { %v3284_v58 = vpop.eup %3283 }
 0x343   :  { %v812_v52 = vpop.xlane.xlu0 %811  ;;  %v577_v59 = vsel %vm193_vm2, %v3284_v58, 0.0 }
 0x344   :  { %v813_v53 = vsub.f32 %v3793_v9, %v812_v52 }
 0x347   :  { %v364_v5 = vpop.permute.xlu0 %363 }
 0x348   :  { %v369_v18 = vsel %vm257_vm3, %v364_v5, 0 }
 0x34a   :  { %473 = vrot.lane.b32.xlu0 %v3698_v11, %s3518_s20  ;;  %v3830_v60 = vpop.eup %3285 }
 0x34b   :  { %v922_v45 = vpop.xlane.xlu1 %921  ;;  %v706_v61 = vsel %vm193_vm2, %v3830_v60, 0.0 }
 0x34c   :  { %v923_v55 = vsub.f32 %v915_v17, %v922_v45 }
 0x34d   :  { %583 = vrot.lane.b32.xlu1 %v3698_v11, %s3519_s6  ;;  %v814_v11 = vmul.f32 1.442695, %v813_v53 }
 0x34e   :  { %v924_v56 = vmul.f32 1.442695, %v923_v55 }
 0x34f   :  { %v253_v46 = vpop.permute.xlu1 %252  ;;  %3287 = vpow2.f32 %v814_v11 }
 0x350   :  { %v259_v48 = vsel %vm257_vm3, %v253_v46, 0  ;;  %3289 = vpow2.f32 %v924_v56 }
 0x351   :  { %2954 = vmatpush3.bf16.msra.mxu0 %v259_v48 }
 0x352   :  { %2965 = vmatprep.subr.bf16.mxu0 %v3507_v0 }
 0x359   :  { %v3832_v57 = vpop.eup %3287 }
 0x35a   :  { %v3836_v63 = vpop.eup %3289  ;;  %v816_v1 = vsel %vm193_vm2, %v3832_v57, 0.0 }
 0x35b   :  { %v926_v2 = vsel %vm193_vm2, %v3836_v63, 0.0 }
 0x369   :  { %578 = vadd.xlane.f32.xlu0 %v577_v59 }
 0x36d   :  { %707 = vadd.xlane.f32.xlu0 %v706_v61 }
 0x371   :  { %817 = vadd.xlane.f32.xlu1 %v816_v1  ;;  %927 = vadd.xlane.f32.xlu0 %v926_v2 }
 0x378   :  { %v1032_v6 = vpop.xlane.xlu0 %1031 }
 0x379   :  { %v1033_v7 = vsub.f32 %v3804_v26, %v1032_v6 }
 0x37b   :  { %v1034_v8 = vmul.f32 1.442695, %v1033_v7 }
 0x37d   :  { %3291 = vpow2.f32 %v1034_v8 }
 0x382   :  { %822 = vrot.lane.b32.xlu1 %v3712_v14, %s3516_s18 }
 0x386   :  { %932 = vrot.lane.b32.xlu1 %v3712_v14, %s3518_s20 }
 0x387   :  { %v3847_v9 = vpop.eup %3291 }
 0x388   :  { %v1036_v10 = vsel %vm193_vm2, %v3847_v9, 0.0 }
 0x389   :  { %1037 = vadd.xlane.f32.xlu0 %v1036_v10 }
 0x38a   :  { %1042 = vrot.lane.b32.xlu1 %v3712_v14, %s3519_s6 }
 0x39f   :  { %712 = vrot.lane.b32.xlu0 %v3712_v14, %s3517_s19 }
 0x3b9   :  { %v248_v12 = vpop.xlane.xlu1 %247 }
 0x3ba   :  { %3293 = vrcp.f32 %v248_v12 }
 0x3c1   :  { %v359_v13 = vpop.xlane.xlu0 %358 }
 0x3c2   :  { %3295 = vrcp.f32 %v359_v13 }
 0x3c4   :  { %v3294_v15 = vpop.eup %3293 }
 0x3c5   :  { %v250_v16 = vmul.f32 %v3294_v15, %v3808_v34  ;;  %v474_v21 = vpop.permute.xlu0 %473 }
 0x3c6   :  { %v479_v23 = vsel %vm257_vm3, %v474_v21, 0 }
 0x3c7   :  { %v251_v17 = vpack.c.bf16 %v250_v16, %v250_v16 }
 0x3c9   :  { %2956 = vmatmul.mubr.msk.bf16.vlgmr.msra.gmra.mrb[0].mxu0 %vm193_vm2, %v251_v17  ;;  %v469_v19 = vpop.xlane.xlu1 %468 }
 0x3ca   :  { %2966 = vmatpush3.bf16.msra.mxu0 %v369_v18  ;;  %3297 = vrcp.f32 %v469_v19  ;;  %2967 = vmatprep.mubr.msk.bf16.mxu0 %vm3508_vm0, %v3507_v0 }
 0x3cb   :  { %2977 = vmatprep.subr.bf16.mxu0 %v3507_v0 }
 0x3cc   :  { %v3296_v14 = vpop.eup %3295 }
 0x3cd   :  { %v361_v20 = vmul.f32 %v3296_v14, %v3812_v41  ;;  %v584_v26 = vpop.permute.xlu1 %583  ;;  %v3259_v14 = vld [vmem:[%s4268_s4] sm:$0xff]  }
 0x3ce   :  { %v589_v28 = vsel %vm257_vm3, %v584_v26, 0  ;;  %3044 = vmatpush3.bf16.msra.mxu1 %v3259_v14 }
 0x3cf   :  { %v362_v22 = vpack.c.bf16 %v361_v20, %v361_v20  ;;  %3045 = vmatprep.subr.bf16.mxu1 %v3507_v0 }
 0x3d1   :  { %2968 = vmatmul.mubr.msk.bf16.vlgmr.msra.gmra.mrb[4].mxu0 %vm193_vm2, %v362_v22 }
 0x3d2   :  { %2978 = vmatpush3.bf16.msra.mxu0 %v479_v23  ;;  %2979 = vmatprep.mubr.msk.bf16.mxu0 %vm3508_vm0, %v3507_v0 }
 0x3d3   :  { %2989 = vmatprep.subr.bf16.mxu0 %v3507_v0 }
 0x3d4   :  { %v3298_v24 = vpop.eup %3297 }
 0x3d5   :  { %v471_v25 = vmul.f32 %v3298_v24, %v3816_v42  ;;  %v3260_v24 = vld [vmem:[%s4268_s4 + $0x8] sm:$0xff]  }
 0x3d6   :  { %3046 = vmatpush3.bf16.msra.mxu1 %v3260_v24 }
 0x3d7   :  { %v472_v27 = vpack.c.bf16 %v471_v25, %v471_v25  ;;  %3059 = vmatprep.subr.bf16.mxu1 %v3507_v0 }
 0x3d9   :  { %2980 = vmatmul.mubr.msk.bf16.vlgmr.msra.gmra.mrb[8].mxu0 %vm193_vm2, %v472_v27 }
 0x3da   :  { %2990 = vmatpush3.bf16.msra.mxu0 %v589_v28  ;;  %2991 = vmatprep.mubr.msk.bf16.mxu0 %vm3508_vm0, %v3507_v0 }
 0x3db   :  { %3001 = vmatprep.subr.bf16.mxu0 %v3507_v0 }
 0x3f6   :  { %v579_v29 = vpop.xlane.xlu0 %578 }
 0x3f7   :  { %3299 = vrcp.f32 %v579_v29 }
 0x3fa   :  { %v708_v33 = vpop.xlane.xlu0 %707 }
 0x3fb   :  { %3301 = vrcp.f32 %v708_v33 }
 0x3fe   :  { %v818_v34 = vpop.xlane.xlu1 %817  ;;  %v928_v35 = vpop.xlane.xlu0 %927 }
 0x3ff   :  { %3303 = vrcp.f32 %v818_v34 }
 0x400   :  { %3305 = vrcp.f32 %v928_v35 }
 0x401   :  { %v3300_v30 = vpop.eup %3299 }
 0x402   :  { %v581_v31 = vmul.f32 %v3300_v30, %v3284_v58  ;;  %v823_v42 = vpop.permute.xlu1 %822 }
 0x403   :  { %v828_v45 = vsel %vm257_vm3, %v823_v42, 0 }
 0x404   :  { %v582_v32 = vpack.c.bf16 %v581_v31, %v581_v31 }
 0x405   :  { %v3302_v36 = vpop.eup %3301 }
 0x406   :  { %2992 = vmatmul.mubr.msk.bf16.vlgmr.msra.gmra.mrb[12].mxu0 %vm193_vm2, %v582_v32  ;;  %v710_v40 = vmul.f32 %v3302_v36, %v3830_v60  ;;  %v933_v47 = vpop.permute.xlu1 %932 }
 0x407   :  { %3003 = vmatprep.mubr.msk.bf16.mxu0 %vm3508_vm0, %v3507_v0  ;;  %v938_v50 = vsel %vm257_vm3, %v933_v47, 0 }
 0x408   :  { %v711_v43 = vpack.c.bf16 %v710_v40, %v710_v40 }
 0x409   :  { %v3304_v44 = vpop.eup %3303 }
 0x40a   :  { %v820_v46 = vmul.f32 %v3304_v44, %v3832_v57  ;;  %v3306_v49 = vpop.eup %3305  ;;  %v1043_v52 = vpop.permute.xlu1 %1042 }
 0x40b   :  { %v930_v51 = vmul.f32 %v3306_v49, %v3836_v63  ;;  %v1048_v55 = vsel %vm257_vm3, %v1043_v52, 0  ;;  %v2766_v52 = vld [vmem:[%s4269_s5] ss:$0 sm:$0xff] }
 0x40c   :  { %v821_v48 = vpack.c.bf16 %v820_v46, %v820_v46 }
 0x40d   :  { %v931_v53 = vpack.c.bf16 %v930_v51, %v930_v51 }
 0x416   :  { %v1038_v38 = vpop.xlane.xlu0 %1037 }
 0x417   :  { %3307 = vrcp.f32 %v1038_v38 }
 0x41a   :  { %v713_v41 = vpop.permute.xlu0 %712 }
 0x41b   :  { %v718_v39 = vsel %vm257_vm3, %v713_v41, 0 }
 0x41c   :  { %3002 = vmatpush3.bf16.msra.mxu0 %v718_v39 }
 0x41d   :  { %3013 = vmatprep.subr.bf16.mxu0 %v3507_v0 }
 0x41f   :  { %3004 = vmatmul.mubr.msk.bf16.vlgmr.msra.gmra.mrb[16].mxu0 %vm193_vm2, %v711_v43 }
 0x420   :  { %3014 = vmatpush3.bf16.msra.mxu0 %v828_v45  ;;  %3015 = vmatprep.mubr.msk.bf16.mxu0 %vm3508_vm0, %v3507_v0 }
 0x421   :  { %3025 = vmatprep.subr.bf16.mxu0 %v3507_v0  ;;  %v3308_v54 = vpop.eup %3307 }
 0x422   :  { %v1040_v11 = vmul.f32 %v3308_v54, %v3847_v9 }
 0x424   :  { %v1041_v56 = vpack.c.bf16 %v1040_v11, %v1040_v11 }
 0x427   :  { %3016 = vmatmul.mubr.msk.bf16.vlgmr.msra.gmra.mrb[20].mxu0 %vm193_vm2, %v821_v48 }
 0x428   :  { %3026 = vmatpush3.bf16.msra.mxu0 %v938_v50  ;;  %3027 = vmatprep.mubr.msk.bf16.mxu0 %vm3508_vm0, %v3507_v0 }
 0x429   :  { %3037 = vmatprep.subr.bf16.mxu0 %v3507_v0 }
 0x42f   :  { %3028 = vmatmul.mubr.msk.bf16.vlgmr.msra.gmra.mrb[24].mxu0 %vm193_vm2, %v931_v53 }
 0x430   :  { %3038 = vmatpush3.bf16.msra.mxu0 %v1048_v55  ;;  %3039 = vmatprep.mubr.msk.bf16.mxu0 %vm3508_vm0, %v3507_v0 }
 0x431   :  { %3051 = vmatprep.subr.bf16.mxu0 %v3507_v0 }
 0x437   :  { %3040 = vmatmul.mubr.msk.bf16.vlgmr.msra.gmra.mrb[28].mxu0 %vm193_vm2, %v1041_v56 }
 0x438   :  { %3055 = vmatprep.mubr.msk.bf16.mxu0 %vm3508_vm0, %v3507_v0 }
 0x49c   :  { %v295_v58 = vpop.f32.mrb[0].mxu0 }
 0x49d   :  { %v2957_v59 = vpop.f32.mrb[1].mxu0 }
 0x49e   :  { %v298_v60 = vpop.f32.mrb[2].mxu0 }
 0x49f   :  { %v2958_v57 = vpop.f32.mrb[3].mxu0 }
 0x4a4   :  { %v405_v61 = vpop.f32.mrb[4].mxu0 }
 0x4a5   :  { %v2969_v63 = vpop.f32.mrb[5].mxu0 }
 0x4a6   :  { %v408_v1 = vpop.f32.mrb[6].mxu0 }
 0x4a7   :  { %v2970_v2 = vpop.f32.mrb[7].mxu0 }
 0x4ac   :  { %v515_v5 = vpop.f32.mrb[8].mxu0 }
 0x4ad   :  { %v2981_v6 = vpop.f32.mrb[9].mxu0 }
 0x4ae   :  { %v518_v7 = vpop.f32.mrb[10].mxu0 }
 0x4af   :  { %v2982_v8 = vpop.f32.mrb[11].mxu0 }
 0x4d9   :  { %v625_v9 = vpop.f32.mrb[12].mxu0 }
 0x4da   :  { %v2993_v10 = vpop.f32.mrb[13].mxu0 }
 0x4db   :  { %v628_v12 = vpop.f32.mrb[14].mxu0 }
 0x4dc   :  { %v2994_v13 = vpop.f32.mrb[15].mxu0  ;;  %v3262_v12 = vld [vmem:[%s4272_s8 + $0x8] sm:$0xff]  }
 0x4dd   :  { %v3263_v13 = vld [vmem:[%s4274_s10] sm:$0xff]  }
 0x4f2   :  { %v754_v15 = vpop.f32.mrb[16].mxu0 }
 0x4f3   :  { %v3005_v16 = vpop.f32.mrb[17].mxu0 }
 0x4f4   :  { %v757_v17 = vpop.f32.mrb[18].mxu0 }
 0x4f5   :  { %v3006_v18 = vpop.f32.mrb[19].mxu0 }
 0x4fa   :  { %v864_v19 = vpop.f32.mrb[20].mxu0 }
 0x4fb   :  { %v3227_v20 = vpack.i.bf16 %v864_v19, %v405_v61  ;;  %v3017_v21 = vpop.f32.mrb[21].mxu0 }
 0x4fc   :  { %v867_v22 = vpop.f32.mrb[22].mxu0 }
 0x4fd   :  { %3228 = vrot.lane.b32.xlu1 %v3227_v20, %s3500_s24  ;;  %v3018_v23 = vpop.f32.mrb[23].mxu0  ;;  %v2770_v22 = vld [vmem:[#allocation7] ss:$0 sm:$0xff] }
 0x502   :  { %v974_v25 = vpop.f32.mrb[24].mxu0 }
 0x503   :  { %v3232_v26 = vpack.i.bf16 %v974_v25, %v515_v5  ;;  %v3029_v27 = vpop.f32.mrb[25].mxu0 }
 0x504   :  { %v977_v28 = vpop.f32.mrb[26].mxu0  ;;  %v2771_v27 = vld [vmem:[#allocation8] ss:$0 sm:$0xff] }
 0x505   :  { %3233 = vrot.lane.b32.xlu1 %v3232_v26, %s3503_s30  ;;  %v3030_v29 = vpop.f32.mrb[27].mxu0 }
 0x50a   :  { %v1084_v30 = vpop.f32.mrb[28].mxu0 }
 0x50b   :  { %v3237_v31 = vpack.i.bf16 %v1084_v30, %v625_v9  ;;  %v3041_v32 = vpop.f32.mrb[29].mxu0 }
 0x50c   :  { %v1087_v33 = vpop.f32.mrb[30].mxu0  ;;  %v3265_v32 = vld [vmem:[%s4274_s10 + $0x10] sm:$0xff]  }
 0x50d   :  { %3238 = vrot.lane.b32.xlu0 %v3237_v31, %s4280_s29  ;;  %v3042_v34 = vpop.f32.mrb[31].mxu0  ;;  %v3266_v33 = vld [vmem:[%s4274_s10 + $0x18] sm:$0xff]  }
 0x50e   :  { %v2772_v34 = vld [vmem:[#allocation10] ss:$0 sm:$0xff] }
 0x56f   :  { %v3229_v35 = vpop.permute.xlu1 %3228 }
 0x570   :  { %v3231_v38 = vunpack.i.h.bf16 %v3229_v35  ;;  %v3230_v40 = vunpack.i.l.bf16 %v3229_v35 }
 0x572   :  { %v1102_v43 = vsel %vm193_vm2, %v754_v15, %v3231_v38  ;;  %v643_v44 = vsel %vm193_vm2, %v295_v58, %v3230_v40  ;;  %v3264_v15 = vld [vmem:[%s4274_s10 + $0x8] sm:$0xff]  }
 0x577   :  { %v3234_v36 = vpop.permute.xlu1 %3233 }
 0x578   :  { %v3236_v41 = vunpack.i.h.bf16 %v3234_v36  ;;  %v3235_v39 = vunpack.i.l.bf16 %v3234_v36 }
 0x57a   :  { %v1103_v47 = vsel %vm644_vm4, %v1102_v43, %v3236_v41  ;;  %v645_v48 = vsel %vm644_vm4, %v643_v44, %v3235_v39 }
 0x57f   :  { %v3239_v42 = vpop.permute.xlu0 %3238 }
 0x580   :  { %v3241_v45 = vunpack.i.h.bf16 %v3239_v42  ;;  %v3240_v46 = vunpack.i.l.bf16 %v3239_v42 }
 0x582   :  { %v1104_v49 = vsel %vm646_vm5, %v1103_v47, %v3241_v45  ;;  %v647_v50 = vsel %vm646_vm5, %v645_v48, %v3240_v46  ;;  %v2776_v45 = vld [vmem:[%s4275_s11] ss:$0 sm:$0xff] }
 0x583   :  { %v1109_v51 = vpack.c.bf16 %v1104_v49, %v647_v50 }
 0x585   :  { %3048 = vmatmul.mubr.msk.bf16.vlgmr.msra.gmra.mrb[36].mxu1 %vm143_vm1, %v1109_v51 }
 0x586   :  { %3067 = vmatprep.mubr.msk.bf16.mxu1 %vm3508_vm0, %v3507_v0  ;;  %3060 = vmatpush3.bf16.msra.mxu1 %v3263_v13  ;;  %v2782_v13 = vld [vmem:[%s4276_s12] ss:$0 sm:$0xff] }
 0x587   :  { %3061 = vmatprep.subr.bf16.mxu1 %v3507_v0 }
 0x58a   :  { %3062 = vmatpush3.bf16.msra.mxu1 %v3264_v15 }
 0x58b   :  { %3063 = vmatprep.subr.bf16.mxu1 %v3507_v0 }
 0x58e   :  { %3064 = vmatpush3.bf16.msra.mxu1 %v3265_v32 }
 0x58f   :  { %3065 = vmatprep.subr.bf16.mxu1 %v3507_v0 }
 0x592   :  { %3066 = vmatpush3.bf16.msra.mxu1 %v3266_v33 }
 0x593   :  { %3085 = vmatprep.subr.bf16.mxu1 %v3507_v0 }
 0x658   :  { %v1166_v53 = vpop.f32.mrb[36].mxu1 }
 0x659   :  { %v1167_v54 = vadd.f32 %v2766_v52, %v1166_v53  ;;  %v3049_v55 = vpop.f32.mrb[37].mxu1 }
 0x65a   :  { %v1169_v11 = vpop.f32.mrb[38].mxu1 }
 0x65b   :  { %v1170_v56 = vadd.f32 %v2766_v52, %v1169_v11  ;;  %v3050_v58 = vpop.f32.mrb[39].mxu1  ;;  %v1173_v59 = vadd.f32 %v1167_v54, %v3684_v3 }
 0x65d   :  { %v1177_v60 = vsel %vm143_vm1, %v1173_v59, 0.0  ;;  %v1174_v57 = vadd.f32 %v1170_v56, %v3686_v4  ;;  %v3261_v4 = vld [vmem:[%s4272_s8] sm:$0xff]  }
 0x65e   :  { %1178 = vadd.xlane.f32.xlu1 %v1177_v60  ;;  %3052 = vmatpush3.bf16.msra.mxu0 %v3261_v4 }
 0x65f   :  { %v1180_v61 = vsel %vm143_vm1, %v1174_v57, 0.0  ;;  %3053 = vmatprep.subr.bf16.mxu0 %v3507_v0 }
 0x660   :  { %1181 = vadd.xlane.f32.xlu0 %v1180_v61 }
 0x662   :  { %3054 = vmatpush3.bf16.msra.mxu0 %v3262_v12 }
 0x663   :  { %3071 = vmatprep.subr.bf16.mxu0 %v3507_v0 }
 0x6eb   :  { %v1179_v63 = vpop.xlane.xlu1 %1178 }
 0x6ec   :  { %v1184_v1 = vmul.f32 0.03125, %v1179_v63 }
 0x6ed   :  { %v1182_v2 = vpop.xlane.xlu0 %1181 }
 0x6ee   :  { %v1186_v5 = vsub.f32 %v1173_v59, %v1184_v1  ;;  %v1185_v6 = vmul.f32 0.03125, %v1182_v2 }
 0x6f0   :  { %v1187_v7 = vsub.f32 %v1174_v57, %v1185_v6  ;;  %v1188_v8 = vmul.f32 %v1186_v5, %v1186_v5  ;;  %v3268_v6 = vld [vmem:[%s4266_s2 + $0x18] sm:$0xff]  }
 0x6f2   :  { %v1190_v9 = vsel %vm143_vm1, %v1188_v8, 0.0  ;;  %v1189_v10 = vmul.f32 %v1187_v7, %v1187_v7 }
 0x6f3   :  { %1191 = vadd.xlane.f32.xlu0 %v1190_v9 }
 0x6f4   :  { %v1193_v3 = vsel %vm143_vm1, %v1189_v10, 0.0 }
 0x6f5   :  { %1194 = vadd.xlane.f32.xlu1 %v1193_v3 }
 0x780   :  { %v1192_v16 = vpop.xlane.xlu0 %1191 }
 0x781   :  { %v1196_v17 = vmul.f32 0.03125, %v1192_v16 }
 0x782   :  { %v1195_v18 = vpop.xlane.xlu1 %1194 }
 0x783   :  { %v1198_v19 = vadd.f32 1e-05, %v1196_v17  ;;  %v1197_v14 = vmul.f32 0.03125, %v1195_v18 }
 0x785   :  { %3309 = vrsqrt.f32 %v1198_v19  ;;  %v1199_v20 = vadd.f32 1e-05, %v1197_v14  ;;  %v2783_v19 = vld [vmem:[%s4277_s13] ss:$0 sm:$0xff] }
 0x787   :  { %3311 = vrsqrt.f32 %v1199_v20 }
 0x78f   :  { %v3310_v21 = vpop.eup %3309 }
 0x790   :  { %v1202_v23 = vmul.f32 %v3310_v21, %v1186_v5  ;;  %v3267_v5 = vld [vmem:[%s4266_s2 + $0x10] sm:$0xff]  }
 0x791   :  { %v3312_v24 = vpop.eup %3311 }
 0x792   :  { %v1210_v25 = vmul.f32 %v2770_v22, %v1202_v23  ;;  %v1203_v26 = vmul.f32 %v3312_v24, %v1187_v7  ;;  %v2789_v23 = vld [vmem:[%s4267_s3 + $0x1] ss:$0 sm:$0xff]  ;;  %s3468_s3 = scalar_lea.vmem %s2733_s22, 256 }
 0x793   :  { %p3469_p12 = scmp.ne.s32.totalorder %s2733_s22, %s3468_s3  ;;  %p3474_p0 = scmp.lt.s32.totalorder %s3468_s3, %s3468_s3 }
 0x794   :  { %v1211_v28 = vmul.f32 %v2770_v22, %v1203_v26  ;;  %v1218_v29 = vadd.f32 %v2771_v27, %v1210_v25 }
 0x795   :  { %p3475_p1 = por %p3474_p0, %p3473_p13 }
 0x796   :  { %v1219_v30 = vadd.f32 %v2771_v27, %v1211_v28 }
 0x797   :  { %p3476_p2 = pnand %p3475_p1, %p3469_p12 }
 0x798   :  { %v1224_v31 = vpack.c.bf16 %v1219_v30, %v1218_v29 }
 0x79a   :  { %3056 = vmatmul.mubr.msk.bf16.vlgmr.msra.gmra.mrb[32].mxu0 %vm143_vm1, %v1224_v31 }
 0x79b   :  { %3075 = vmatprep.mubr.msk.bf16.mxu0 %vm3508_vm0, %v3507_v0  ;;  %3072 = vmatpush3.bf16.msra.mxu0 %v3267_v5 }
 0x79c   :  { %3073 = vmatprep.subr.bf16.mxu0 %v3507_v0 }
 0x79f   :  { %3074 = vmatpush3.bf16.msra.mxu0 %v3268_v6 }
 0x7a0   :  { %3079 = vmatprep.subr.bf16.mxu0 %v3507_v0 }
 0x86d   :  { %v1281_v35 = vpop.f32.mrb[32].mxu0 }
 0x86e   :  { %v1282_v36 = vadd.f32 %v2772_v34, %v1281_v35  ;;  %v3057_v38 = vpop.f32.mrb[33].mxu0 }
 0x86f   :  { %v1284_v40 = vpop.f32.mrb[34].mxu0 }
 0x870   :  { %v1285_v41 = vadd.f32 %v2772_v34, %v1284_v40  ;;  %v3058_v39 = vpop.f32.mrb[35].mxu0  ;;  %v1288_v42 = vmax.f32 %v1282_v36, 0.0 }
 0x872   :  { %v1289_v43 = vmax.f32 %v1285_v41, 0.0 }
 0x874   :  { %v1298_v44 = vpack.c.bf16 %v1289_v43, %v1288_v42 }
 0x876   :  { %3068 = vmatmul.mubr.msk.bf16.vlgmr.msra.gmra.mrb[40].mxu1 %vm1330_vm6, %v1298_v44 }
 0x877   :  { %3087 = vmatprep.mubr.msk.bf16.mxu1 %vm3508_vm0, %v3507_v0 }
 0x949   :  { %v1368_v46 = vpop.f32.mrb[40].mxu1 }
 0x94a   :  { %v1369_v47 = vadd.f32 %v2776_v45, %v1368_v46  ;;  %v3069_v48 = vpop.f32.mrb[41].mxu1 }
 0x94b   :  { %v1371_v49 = vpop.f32.mrb[42].mxu1 }
 0x94c   :  { %v1372_v50 = vadd.f32 %v2776_v45, %v1371_v49  ;;  %v3070_v51 = vpop.f32.mrb[43].mxu1  ;;  %v1375_v52 = vadd.f32 %v1369_v47, %v1218_v29 }
 0x94e   :  { %v1379_v53 = vsel %vm143_vm1, %v1375_v52, 0.0  ;;  %v1376_v54 = vadd.f32 %v1372_v50, %v1219_v30 }
 0x94f   :  { %1380 = vadd.xlane.f32.xlu0 %v1379_v53 }
 0x950   :  { %v1382_v55 = vsel %vm143_vm1, %v1376_v54, 0.0 }
 0x951   :  { %1383 = vadd.xlane.f32.xlu1 %v1382_v55 }
 0x9dc   :  { %v1381_v11 = vpop.xlane.xlu0 %1380 }
 0x9dd   :  { %v1385_v56 = vmul.f32 0.03125, %v1381_v11 }
 0x9de   :  { %v1384_v58 = vpop.xlane.xlu1 %1383 }
 0x9df   :  { %v1387_v59 = vsub.f32 %v1375_v52, %v1385_v56  ;;  %v1386_v60 = vmul.f32 0.03125, %v1384_v58 }
 0x9e1   :  { %v1388_v57 = vsub.f32 %v1376_v54, %v1386_v60  ;;  %v1389_v61 = vmul.f32 %v1387_v59, %v1387_v59 }
 0x9e3   :  { %v1391_v63 = vsel %vm143_vm1, %v1389_v61, 0.0  ;;  %v1390_v1 = vmul.f32 %v1388_v57, %v1388_v57 }
 0x9e4   :  { %1392 = vadd.xlane.f32.xlu0 %v1391_v63 }
 0x9e5   :  { %v1394_v2 = vsel %vm143_vm1, %v1390_v1, 0.0 }
 0x9e6   :  { %1395 = vadd.xlane.f32.xlu1 %v1394_v2 }
 0xa71   :  { %v1393_v7 = vpop.xlane.xlu0 %1392 }
 0xa72   :  { %v1397_v8 = vmul.f32 0.03125, %v1393_v7 }
 0xa73   :  { %v1396_v9 = vpop.xlane.xlu1 %1395 }
 0xa74   :  { %v1399_v10 = vadd.f32 1e-05, %v1397_v8  ;;  %v1398_v3 = vmul.f32 0.03125, %v1396_v9 }
 0xa76   :  { %3313 = vrsqrt.f32 %v1399_v10  ;;  %v1400_v4 = vadd.f32 1e-05, %v1398_v3 }
 0xa78   :  { %3315 = vrsqrt.f32 %v1400_v4 }
 0xa80   :  { %v3314_v12 = vpop.eup %3313 }
 0xa81   :  { %v1403_v15 = vmul.f32 %v3314_v12, %v1387_v59 }
 0xa82   :  { %v3316_v16 = vpop.eup %3315 }
 0xa83   :  { %v1411_v17 = vmul.f32 %v2782_v13, %v1403_v15  ;;  %v1404_v18 = vmul.f32 %v3316_v16, %v1388_v57 }
 0xa85   :  { %v1412_v14 = vmul.f32 %v2782_v13, %v1404_v18  ;;  %v3980_v20 = vadd.f32 %v2783_v19, %v1411_v17 }
 0xa87   :  { %v3982_v21 = vadd.f32 %v2783_v19, %v1412_v14 }
 0xa89   :  { %v1426_v22 = vpack.c.bf16 %v3982_v21, %v3980_v20 }
 0xa8b   :  { %3076 = vmatmul.mubr.msk.bf16.vlgmr.msra.gmra.mrb[36].mxu0 %vm143_vm1, %v1426_v22 }
 0xa8c   :  { %3081 = vmatprep.mubr.msk.bf16.mxu0 %vm3508_vm0, %v3507_v0 }
 0xb5e   :  { %v1484_v24 = vpop.f32.mrb[36].mxu0 }
 0xb5f   :  { %v1485_v25 = vadd.f32 %v2789_v23, %v1484_v24  ;;  %v3077_v26 = vpop.f32.mrb[37].mxu0 }
 0xb60   :  { %v1487_v27 = vpop.f32.mrb[38].mxu0 }
 0xb61   :  { %v3992_v28 = vpack.c.bf16 %v1485_v25, %v1485_v25  ;;  %v3078_v29 = vpop.f32.mrb[39].mxu0  ;;  %v1488_v30 = vadd.f32 %v2789_v23, %v1487_v27 }
 0xb63   :  { %1603 = vrot.lane.b32.xlu1 %v3992_v28, %s3512_s1  ;;  %1493 = vrot.lane.b32.xlu0 %v3992_v28, %s3510_s7  ;;  %v4006_v31 = vpack.c.bf16 %v1488_v30, %v1488_v30 }
 0xb67   :  { %1601 = vrot.lane.b32.xlu1 %v3992_v28, %s3509_s15  ;;  %1713 = vrot.lane.b32.xlu0 %v3992_v28, %s3511_s28 }
 0xb6b   :  { %1711 = vrot.lane.b32.xlu1 %v3992_v28, %s3514_s16  ;;  %1823 = vrot.lane.b32.xlu0 %v3992_v28, %s3513_s27 }
 0xb6f   :  { %1821 = vrot.lane.b32.xlu1 %v3992_v28, %s3515_s17  ;;  %1948 = vrot.lane.b32.xlu0 %v4006_v31, %s3510_s7 }
 0xb73   :  { %2058 = vrot.lane.b32.xlu1 %v4006_v31, %s3512_s1  ;;  %2056 = vrot.lane.b32.xlu0 %v4006_v31, %s3509_s15  ;;  %s4281_s1 = smov 24  }
 0xb77   :  { %2168 = vrot.lane.b32.xlu1 %v4006_v31, %s3511_s28  ;;  %2166 = vrot.lane.b32.xlu0 %v4006_v31, %s3514_s16 }
 0xb7b   :  { %2278 = vrot.lane.b32.xlu1 %v4006_v31, %s3513_s27  ;;  %2276 = vrot.lane.b32.xlu0 %v4006_v31, %s3515_s17 }
 0xbd5   :  { %v1494_v32 = vpop.permute.xlu0 %1493  ;;  %v1604_v34 = vpop.permute.xlu1 %1603 }
 0xbd6   :  { %v1499_v33 = vsel %vm193_vm2, %v1494_v32, 0  ;;  %v1609_v35 = vsel %vm193_vm2, %v1604_v34, 0 }
 0xbd7   :  { %3080 = vmatpush3.bf16.xpose.msra.mxu0 %v1499_v33 }
 0xbd8   :  { %3091 = vmatprep.subr.bf16.mxu0 %v3507_v0 }
 0xbd9   :  { %v1714_v36 = vpop.permute.xlu0 %1713  ;;  %v1602_v38 = vpop.permute.xlu1 %1601 }
 0xbda   :  { %v1719_v40 = vsel %vm193_vm2, %v1714_v36, 0 }
 0xbdd   :  { %v1824_v41 = vpop.permute.xlu0 %1823  ;;  %v1712_v39 = vpop.permute.xlu1 %1711 }
 0xbde   :  { %3082 = vmatmul.mubr.msk.bf16.vlgmr.msra.gmra.mrb[40].mxu0 %vm193_vm2, %v3992_v28  ;;  %v1829_v42 = vsel %vm193_vm2, %v1824_v41, 0 }
 0xbdf   :  { %3092 = vmatpush3.bf16.xpose.msra.mxu0 %v1609_v35  ;;  %3093 = vmatprep.mubr.msk.bf16.mxu0 %vm3508_vm0, %v3507_v0 }
 0xbe0   :  { %3103 = vmatprep.subr.bf16.mxu0 %v3507_v0 }
 0xbe1   :  { %v1949_v43 = vpop.permute.xlu0 %1948  ;;  %v1822_v44 = vpop.permute.xlu1 %1821 }
 0xbe2   :  { %v1954_v45 = vsel %vm193_vm2, %v1949_v43, 0  ;;  %v3357_v43 = vld [vmem:[#allocation5 + $0x8] sm:$0xff] }
 0xbe5   :  { %v2059_v46 = vpop.permute.xlu1 %2058  ;;  %v2057_v49 = vpop.permute.xlu0 %2056 }
 0xbe6   :  { %3094 = vmatmul.mubr.msk.bf16.vlgmr.msra.gmra.mrb[44].mxu0 %vm193_vm2, %v1602_v38  ;;  %v2064_v47 = vsel %vm193_vm2, %v2059_v46, 0 }
 0xbe7   :  { %3104 = vmatpush3.bf16.xpose.msra.mxu0 %v1719_v40  ;;  %3105 = vmatprep.mubr.msk.bf16.mxu0 %vm3508_vm0, %v3507_v0 }
 0xbe8   :  { %3115 = vmatprep.subr.bf16.mxu0 %v3507_v0 }
 0xbe9   :  { %v2169_v48 = vpop.permute.xlu1 %2168  ;;  %v2167_v52 = vpop.permute.xlu0 %2166 }
 0xbea   :  { %v2174_v50 = vsel %vm193_vm2, %v2169_v48, 0 }
 0xbed   :  { %v2279_v51 = vpop.permute.xlu1 %2278  ;;  %v2277_v54 = vpop.permute.xlu0 %2276 }
 0xbee   :  { %3106 = vmatmul.mubr.msk.bf16.vlgmr.msra.gmra.mrb[48].mxu0 %vm193_vm2, %v1712_v39  ;;  %v2284_v53 = vsel %vm193_vm2, %v2279_v51, 0 }
 0xbef   :  { %3116 = vmatpush3.bf16.xpose.msra.mxu0 %v1829_v42  ;;  %3117 = vmatprep.mubr.msk.bf16.mxu0 %vm3508_vm0, %v3507_v0 }
 0xbf0   :  { %3127 = vmatprep.subr.bf16.mxu0 %v3507_v0 }
 0xbf6   :  { %3118 = vmatmul.mubr.msk.bf16.vlgmr.msra.gmra.mrb[52].mxu0 %vm193_vm2, %v1822_v44 }
 0xbf7   :  { %3128 = vmatpush3.bf16.xpose.msra.mxu0 %v1954_v45  ;;  %3129 = vmatprep.mubr.msk.bf16.mxu0 %vm3508_vm0, %v3507_v0 }
 0xbf8   :  { %3139 = vmatprep.subr.bf16.mxu0 %v3507_v0 }
 0xbfe   :  { %3130 = vmatmul.mubr.msk.bf16.vlgmr.msra.gmra.mrb[56].mxu0 %vm193_vm2, %v4006_v31 }
 0xbff   :  { %3140 = vmatpush3.bf16.xpose.msra.mxu0 %v2064_v47  ;;  %3141 = vmatprep.mubr.msk.bf16.mxu0 %vm3508_vm0, %v3507_v0 }
 0xc00   :  { %3151 = vmatprep.subr.bf16.mxu0 %v3507_v0 }
 0xc06   :  { %3142 = vmatmul.mubr.msk.bf16.vlgmr.msra.gmra.mrb[60].mxu0 %vm193_vm2, %v2057_v49 }
 0xc07   :  { %3152 = vmatpush3.bf16.xpose.msra.mxu0 %v2174_v50  ;;  %3153 = vmatprep.mubr.msk.bf16.mxu0 %vm3508_vm0, %v3507_v0 }
 0xc08   :  { %3163 = vmatprep.subr.bf16.mxu0 %v3507_v0 }
 0xc0e   :  { %3154 = vmatmul.mubr.msk.bf16.vlgmr.msra.gmra.mrb[64].mxu0 %vm193_vm2, %v2167_v52 }
 0xc0f   :  { %3164 = vmatpush3.bf16.xpose.msra.mxu0 %v2284_v53  ;;  %3165 = vmatprep.mubr.msk.bf16.mxu0 %vm3508_vm0, %v3507_v0 }
 0xc10   :  { %3175 = vmatprep.subr.bf16.mxu0 %v3507_v0 }
 0xc16   :  { %3166 = vmatmul.mubr.msk.bf16.vlgmr.msra.gmra.mrb[68].mxu0 %vm193_vm2, %v2277_v54 }
 0xc17   :  { %3179 = vmatprep.mubr.msk.bf16.mxu0 %vm3508_vm0, %v3507_v0 }
 0xcb1   :  { %v1535_v55 = vpop.f32.mrb[40].mxu0 }
 0xcb2   :  { %v1536_v11 = vadd.f32 %v1535_v55, %v3772_v37  ;;  %v3083_v56 = vpop.f32.mrb[41].mxu0 }
 0xcb3   :  { %v1538_v58 = vpop.f32.mrb[42].mxu0 }
 0xcb4   :  { %v3084_v59 = vpop.f32.mrb[43].mxu0  ;;  %v1541_v60 = vsel %vm193_vm2, %v1536_v11, -inf }
 0xcb5   :  { %1542 = vmax.xlane.f32.xlu1 %v1541_v60 }
 0xcb9   :  { %v1645_v57 = vpop.f32.mrb[44].mxu0 }
 0xcba   :  { %v1646_v61 = vadd.f32 %v1645_v57, %v3772_v37  ;;  %v3095_v63 = vpop.f32.mrb[45].mxu0 }
 0xcbb   :  { %v1648_v1 = vpop.f32.mrb[46].mxu0 }
 0xcbc   :  { %v3096_v2 = vpop.f32.mrb[47].mxu0  ;;  %v1651_v5 = vsel %vm193_vm2, %v1646_v61, -inf }
 0xcbd   :  { %1652 = vmax.xlane.f32.xlu0 %v1651_v5 }
 0xcc1   :  { %v1755_v6 = vpop.f32.mrb[48].mxu0 }
 0xcc2   :  { %v1756_v7 = vadd.f32 %v1755_v6, %v3772_v37  ;;  %v3107_v8 = vpop.f32.mrb[49].mxu0 }
 0xcc3   :  { %v1758_v9 = vpop.f32.mrb[50].mxu0 }
 0xcc4   :  { %v3108_v10 = vpop.f32.mrb[51].mxu0  ;;  %v1761_v3 = vsel %vm193_vm2, %v1756_v7, -inf }
 0xcc5   :  { %1762 = vmax.xlane.f32.xlu0 %v1761_v3 }
 0xcc9   :  { %v1865_v4 = vpop.f32.mrb[52].mxu0 }
 0xcca   :  { %v1866_v12 = vadd.f32 %v1865_v4, %v3772_v37  ;;  %v3119_v13 = vpop.f32.mrb[53].mxu0 }
 0xccb   :  { %v1868_v15 = vpop.f32.mrb[54].mxu0 }
 0xccc   :  { %v3120_v16 = vpop.f32.mrb[55].mxu0  ;;  %v1871_v17 = vsel %vm193_vm2, %v1866_v12, -inf }
 0xccd   :  { %1872 = vmax.xlane.f32.xlu1 %v1871_v17 }
 0xcd1   :  { %v1990_v18 = vpop.f32.mrb[56].mxu0 }
 0xcd2   :  { %v1991_v19 = vadd.f32 %v1990_v18, %v3785_v62  ;;  %v3131_v14 = vpop.f32.mrb[57].mxu0 }
 0xcd3   :  { %v1993_v22 = vpop.f32.mrb[58].mxu0 }
 0xcd4   :  { %v3132_v23 = vpop.f32.mrb[59].mxu0  ;;  %v1996_v24 = vsel %vm193_vm2, %v1991_v19, -inf }
 0xcd5   :  { %1997 = vmax.xlane.f32.xlu0 %v1996_v24 }
 0xcd9   :  { %v2100_v25 = vpop.f32.mrb[60].mxu0 }
 0xcda   :  { %v4077_v26 = vadd.f32 %v2100_v25, %v3785_v62  ;;  %v3143_v37 = vpop.f32.mrb[61].mxu0 }
 0xcdb   :  { %v2103_v27 = vpop.f32.mrb[62].mxu0 }
 0xcdc   :  { %v3144_v29 = vpop.f32.mrb[63].mxu0  ;;  %v2106_v30 = vsel %vm193_vm2, %v4077_v26, -inf }
 0xcdd   :  { %2107 = vmax.xlane.f32.xlu1 %v2106_v30 }
 0xce1   :  { %v2210_v32 = vpop.f32.mrb[64].mxu0 }
 0xce2   :  { %v2211_v33 = vadd.f32 %v2210_v32, %v3785_v62  ;;  %v3155_v34 = vpop.f32.mrb[65].mxu0 }
 0xce3   :  { %v2213_v35 = vpop.f32.mrb[66].mxu0 }
 0xce4   :  { %v3156_v36 = vpop.f32.mrb[67].mxu0  ;;  %v2216_v38 = vsel %vm193_vm2, %v2211_v33, -inf }
 0xce5   :  { %2217 = vmax.xlane.f32.xlu0 %v2216_v38 }
 0xce9   :  { %v2320_v40 = vpop.f32.mrb[68].mxu0 }
 0xcea   :  { %v3167_v41 = vpop.f32.mrb[69].mxu0  ;;  %v2321_v44 = vadd.f32 %v3357_v43, %v2320_v40 }
 0xceb   :  { %v2323_v39 = vpop.f32.mrb[70].mxu0 }
 0xcec   :  { %v3168_v42 = vpop.f32.mrb[71].mxu0  ;;  %v2326_v62 = vsel %vm193_vm2, %v2321_v44, -inf }
 0xcee   :  { %1663 = vrot.lane.b32.xlu1 %v3992_v28, %s3516_s18 }
 0xcfb   :  { %1553 = vrot.lane.b32.xlu0 %v3992_v28, %s3517_s19 }
 0xd12   :  { %2327 = vmax.xlane.f32.xlu1 %v2326_v62 }
 0xd23   :  { %1773 = vrot.lane.b32.xlu1 %v3992_v28, %s3518_s20 }
 0xd42   :  { %v1543_v45 = vpop.xlane.xlu1 %1542 }
 0xd43   :  { %v1544_v46 = vsub.f32 %v1536_v11, %v1543_v45 }
 0xd45   :  { %v1545_v47 = vmul.f32 1.442695, %v1544_v46 }
 0xd47   :  { %3317 = vpow2.f32 %v1545_v47 }
 0xd4a   :  { %v1653_v48 = vpop.xlane.xlu0 %1652 }
 0xd4b   :  { %v1654_v49 = vsub.f32 %v1646_v61, %v1653_v48 }
 0xd4d   :  { %v1655_v50 = vmul.f32 1.442695, %v1654_v49 }
 0xd4f   :  { %3319 = vpow2.f32 %v1655_v50 }
 0xd51   :  { %v4090_v51 = vpop.eup %3317 }
 0xd52   :  { %v1763_v52 = vpop.xlane.xlu0 %1762  ;;  %v1547_v53 = vsel %vm193_vm2, %v4090_v51, 0.0 }
 0xd53   :  { %v1764_v54 = vsub.f32 %v1756_v7, %v1763_v52  ;;  %1548 = vadd.xlane.f32.xlu0 %v1547_v53 }
 0xd55   :  { %v1765_v55 = vmul.f32 1.442695, %v1764_v54 }
 0xd57   :  { %3321 = vpow2.f32 %v1765_v55 }
 0xd59   :  { %v4094_v56 = vpop.eup %3319 }
 0xd5a   :  { %v1873_v58 = vpop.xlane.xlu1 %1872  ;;  %v1657_v11 = vsel %vm193_vm2, %v4094_v56, 0.0 }
 0xd5b   :  { %v1874_v59 = vsub.f32 %v1866_v12, %v1873_v58  ;;  %1658 = vadd.xlane.f32.xlu1 %v1657_v11 }
 0xd5d   :  { %v1875_v60 = vmul.f32 1.442695, %v1874_v59 }
 0xd5f   :  { %3323 = vpow2.f32 %v1875_v60 }
 0xd61   :  { %v4098_v57 = vpop.eup %3321 }
 0xd62   :  { %v1998_v61 = vpop.xlane.xlu0 %1997  ;;  %v1767_v63 = vsel %vm193_vm2, %v4098_v57, 0.0 }
 0xd63   :  { %v1999_v1 = vsub.f32 %v1991_v19, %v1998_v61  ;;  %1768 = vadd.xlane.f32.xlu0 %v1767_v63 }
 0xd65   :  { %v2000_v2 = vmul.f32 1.442695, %v1999_v1 }
 0xd67   :  { %3325 = vpow2.f32 %v2000_v2 }
 0xd69   :  { %v4102_v5 = vpop.eup %3323 }
 0xd6a   :  { %v1877_v6 = vsel %vm193_vm2, %v4102_v5, 0.0  ;;  %v2108_v13 = vpop.xlane.xlu1 %2107 }
 0xd6b   :  { %1878 = vadd.xlane.f32.xlu1 %v1877_v6  ;;  %v2109_v16 = vsub.f32 %v4077_v26, %v2108_v13 }
 0xd6d   :  { %v2110_v18 = vmul.f32 1.442695, %v2109_v16 }
 0xd71   :  { %v4106_v7 = vpop.eup %3325 }
 0xd72   :  { %v2218_v8 = vpop.xlane.xlu0 %2217  ;;  %v2002_v9 = vsel %vm193_vm2, %v4106_v7, 0.0 }
 0xd73   :  { %v2219_v10 = vsub.f32 %v2211_v33, %v2218_v8  ;;  %2003 = vadd.xlane.f32.xlu1 %v2002_v9 }
 0xd75   :  { %v2220_v3 = vmul.f32 1.442695, %v2219_v10 }
 0xd76   :  { %v1554_v4 = vpop.permute.xlu0 %1553 }
 0xd77   :  { %3327 = vpow2.f32 %v2220_v3  ;;  %v1559_v12 = vsel %vm257_vm3, %v1554_v4, 0 }
 0xd78   :  { %3086 = vmatpush3.bf16.msra.mxu1 %v1559_v12  ;;  %3329 = vpow2.f32 %v2110_v18 }
 0xd79   :  { %1883 = vrot.lane.b32.xlu0 %v3992_v28, %s3519_s6  ;;  %3097 = vmatprep.subr.bf16.mxu1 %v3507_v0  ;;  %v1664_v28 = vpop.permute.xlu1 %1663 }
 0xd7a   :  { %v1669_v34 = vsel %vm257_vm3, %v1664_v28, 0 }
 0xd81   :  { %v4114_v15 = vpop.eup %3327 }
 0xd82   :  { %v2222_v17 = vsel %vm193_vm2, %v4114_v15, 0.0  ;;  %v4119_v19 = vpop.eup %3329 }
 0xd83   :  { %2223 = vadd.xlane.f32.xlu1 %v2222_v17  ;;  %v2112_v14 = vsel %vm193_vm2, %v4119_v19, 0.0 }
 0xd98   :  { %2113 = vadd.xlane.f32.xlu0 %v2112_v14 }
 0xd9f   :  { %v2328_v22 = vpop.xlane.xlu1 %2327 }
 0xda0   :  { %v2329_v23 = vsub.f32 %v2321_v44, %v2328_v22 }
 0xda2   :  { %v2330_v24 = vmul.f32 1.442695, %v2329_v23 }
 0xda3   :  { %v1774_v27 = vpop.permute.xlu1 %1773 }
 0xda4   :  { %3331 = vpow2.f32 %v2330_v24  ;;  %v1779_v40 = vsel %vm257_vm3, %v1774_v27, 0 }
 0xdae   :  { %v4123_v25 = vpop.eup %3331  ;;  %2118 = vrot.lane.b32.xlu0 %v4006_v31, %s3516_s18 }
 0xdaf   :  { %v2332_v26 = vsel %vm193_vm2, %v4123_v25, 0.0 }
 0xdb0   :  { %2333 = vadd.xlane.f32.xlu1 %v2332_v26 }
 0xdb2   :  { %2228 = vrot.lane.b32.xlu0 %v4006_v31, %s3518_s20 }
 0xdb6   :  { %2338 = vrot.lane.b32.xlu0 %v4006_v31, %s3519_s6 }
 0xdc1   :  { %2008 = vrot.lane.b32.xlu1 %v4006_v31, %s3517_s19 }
 0xde0   :  { %v1549_v37 = vpop.xlane.xlu0 %1548 }
 0xde1   :  { %3333 = vrcp.f32 %v1549_v37 }
 0xde8   :  { %v1659_v29 = vpop.xlane.xlu1 %1658 }
 0xde9   :  { %3335 = vrcp.f32 %v1659_v29 }
 0xdeb   :  { %v3334_v30 = vpop.eup %3333 }
 0xdec   :  { %v1551_v32 = vmul.f32 %v3334_v30, %v4090_v51 }
 0xdee   :  { %v1552_v33 = vpack.c.bf16 %v1551_v32, %v1551_v32 }
 0xdf0   :  { %3088 = vmatmul.mubr.msk.bf16.vlgmr.msra.gmra.mrb[44].mxu1 %vm193_vm2, %v1552_v33  ;;  %v1769_v35 = vpop.xlane.xlu0 %1768  ;;  %v3269_v33 = vld [vmem:[%s4268_s4 + $0x10] sm:$0xff]  }
 0xdf1   :  { %3098 = vmatpush3.bf16.msra.mxu1 %v1669_v34  ;;  %3337 = vrcp.f32 %v1769_v35  ;;  %3099 = vmatprep.mubr.msk.bf16.mxu1 %vm3508_vm0, %v3507_v0 }
 0xdf2   :  { %3109 = vmatprep.subr.bf16.mxu1 %v3507_v0  ;;  %3176 = vmatpush3.bf16.msra.mxu0 %v3269_v33 }
 0xdf3   :  { %v3336_v31 = vpop.eup %3335  ;;  %3177 = vmatprep.subr.bf16.mxu0 %v3507_v0 }
 0xdf4   :  { %v1661_v36 = vmul.f32 %v3336_v31, %v4094_v56  ;;  %v1884_v43 = vpop.permute.xlu0 %1883 }
 0xdf5   :  { %v1889_v62 = vsel %vm257_vm3, %v1884_v43, 0 }
 0xdf6   :  { %v1662_v38 = vpack.c.bf16 %v1661_v36, %v1661_v36 }
 0xdf8   :  { %3100 = vmatmul.mubr.msk.bf16.vlgmr.msra.gmra.mrb[48].mxu1 %vm193_vm2, %v1662_v38  ;;  %v1879_v41 = vpop.xlane.xlu1 %1878  ;;  %v3270_v38 = vld [vmem:[%s4268_s4 + $0x18] sm:$0xff]  }
 0xdf9   :  { %3110 = vmatpush3.bf16.msra.mxu1 %v1779_v40  ;;  %3339 = vrcp.f32 %v1879_v41  ;;  %3111 = vmatprep.mubr.msk.bf16.mxu1 %vm3508_vm0, %v3507_v0 }
 0xdfa   :  { %3121 = vmatprep.subr.bf16.mxu1 %v3507_v0  ;;  %3178 = vmatpush3.bf16.msra.mxu0 %v3270_v38 }
 0xdfb   :  { %v3338_v39 = vpop.eup %3337  ;;  %3191 = vmatprep.subr.bf16.mxu0 %v3507_v0 }
 0xdfc   :  { %v1771_v42 = vmul.f32 %v3338_v39, %v4098_v57 }
 0xdfe   :  { %v1772_v44 = vpack.c.bf16 %v1771_v42, %v1771_v42 }
 0xe00   :  { %3112 = vmatmul.mubr.msk.bf16.vlgmr.msra.gmra.mrb[52].mxu1 %vm193_vm2, %v1772_v44  ;;  %v2004_v48 = vpop.xlane.xlu1 %2003 }
 0xe01   :  { %3122 = vmatpush3.bf16.msra.mxu1 %v1889_v62  ;;  %3123 = vmatprep.mubr.msk.bf16.mxu1 %vm3508_vm0, %v3507_v0  ;;  %3341 = vrcp.f32 %v2004_v48 }
 0xe02   :  { %3133 = vmatprep.subr.bf16.mxu1 %v3507_v0 }
 0xe03   :  { %v3340_v45 = vpop.eup %3339 }
 0xe04   :  { %v1881_v46 = vmul.f32 %v3340_v45, %v4102_v5 }
 0xe06   :  { %v1882_v47 = vpack.c.bf16 %v1881_v46, %v1881_v46 }
 0xe08   :  { %3124 = vmatmul.mubr.msk.bf16.vlgmr.msra.gmra.mrb[56].mxu1 %vm193_vm2, %v1882_v47 }
 0xe09   :  { %3135 = vmatprep.mubr.msk.bf16.mxu1 %vm3508_vm0, %v3507_v0 }
 0xe0b   :  { %v3342_v51 = vpop.eup %3341 }
 0xe0c   :  { %v2006_v53 = vmul.f32 %v3342_v51, %v4106_v7 }
 0xe0e   :  { %v2007_v58 = vpack.c.bf16 %v2006_v53, %v2006_v53 }
 0xe10   :  { %v2224_v50 = vpop.xlane.xlu1 %2223 }
 0xe25   :  { %v2114_v49 = vpop.xlane.xlu0 %2113 }
 0xe26   :  { %3343 = vrcp.f32 %v2114_v49 }
 0xe27   :  { %3345 = vrcp.f32 %v2224_v50 }
 0xe29   :  { %v2119_v56 = vpop.permute.xlu0 %2118 }
 0xe2a   :  { %v2124_v59 = vsel %vm257_vm3, %v2119_v56, 0 }
 0xe2d   :  { %v2229_v57 = vpop.permute.xlu0 %2228 }
 0xe2e   :  { %v2234_v1 = vsel %vm257_vm3, %v2229_v57, 0 }
 0xe30   :  { %v3344_v11 = vpop.eup %3343 }
 0xe31   :  { %v2116_v60 = vmul.f32 %v3344_v11, %v4119_v19  ;;  %v3346_v63 = vpop.eup %3345  ;;  %v2339_v5 = vpop.permute.xlu0 %2338 }
 0xe32   :  { %v2226_v2 = vmul.f32 %v3346_v63, %v4114_v15  ;;  %v2344_v8 = vsel %vm257_vm3, %v2339_v5, 0 }
 0xe33   :  { %v2117_v61 = vpack.c.bf16 %v2116_v60, %v2116_v60 }
 0xe34   :  { %v2227_v6 = vpack.c.bf16 %v2226_v2, %v2226_v2 }
 0xe3d   :  { %v2334_v52 = vpop.xlane.xlu1 %2333 }
 0xe3e   :  { %3347 = vrcp.f32 %v2334_v52 }
 0xe41   :  { %v2009_v54 = vpop.permute.xlu1 %2008 }
 0xe42   :  { %v2014_v55 = vsel %vm257_vm3, %v2009_v54, 0 }
 0xe43   :  { %3134 = vmatpush3.bf16.msra.mxu1 %v2014_v55 }
 0xe44   :  { %3145 = vmatprep.subr.bf16.mxu1 %v3507_v0 }
 0xe46   :  { %3136 = vmatmul.mubr.msk.bf16.vlgmr.msra.gmra.mrb[60].mxu1 %vm193_vm2, %v2007_v58 }
 0xe47   :  { %3146 = vmatpush3.bf16.msra.mxu1 %v2124_v59  ;;  %3147 = vmatprep.mubr.msk.bf16.mxu1 %vm3508_vm0, %v3507_v0 }
 0xe48   :  { %3157 = vmatprep.subr.bf16.mxu1 %v3507_v0  ;;  %v3348_v7 = vpop.eup %3347 }
 0xe49   :  { %v2336_v9 = vmul.f32 %v3348_v7, %v4123_v25 }
 0xe4b   :  { %v2337_v10 = vpack.c.bf16 %v2336_v9, %v2336_v9 }
 0xe4e   :  { %3148 = vmatmul.mubr.msk.bf16.vlgmr.msra.gmra.mrb[64].mxu1 %vm193_vm2, %v2117_v61 }
 0xe4f   :  { %3158 = vmatpush3.bf16.msra.mxu1 %v2234_v1  ;;  %3159 = vmatprep.mubr.msk.bf16.mxu1 %vm3508_vm0, %v3507_v0  ;;  %v2814_v1 = vld [vmem:[%s4269_s5 + $0x1] ss:$0 sm:$0xff] }
 0xe50   :  { %3169 = vmatprep.subr.bf16.mxu1 %v3507_v0 }
 0xe56   :  { %3160 = vmatmul.mubr.msk.bf16.vlgmr.msra.gmra.mrb[68].mxu1 %vm193_vm2, %v2227_v6 }
 0xe57   :  { %3170 = vmatpush3.bf16.msra.mxu1 %v2344_v8  ;;  %3171 = vmatprep.mubr.msk.bf16.mxu1 %vm3508_vm0, %v3507_v0 }
 0xe58   :  { %3183 = vmatprep.subr.bf16.mxu1 %v3507_v0 }
 0xe5e   :  { %3172 = vmatmul.mubr.msk.bf16.vlgmr.msra.gmra.mrb[72].mxu1 %vm193_vm2, %v2337_v10 }
 0xe5f   :  { %3187 = vmatprep.mubr.msk.bf16.mxu1 %vm3508_vm0, %v3507_v0 }
 0xec3   :  { %v1595_v3 = vpop.f32.mrb[44].mxu1 }
 0xec4   :  { %v3089_v4 = vpop.f32.mrb[45].mxu1 }
 0xec5   :  { %v1598_v12 = vpop.f32.mrb[46].mxu1 }
 0xec6   :  { %v3090_v13 = vpop.f32.mrb[47].mxu1 }
 0xecb   :  { %v1705_v15 = vpop.f32.mrb[48].mxu1 }
 0xecc   :  { %v3101_v16 = vpop.f32.mrb[49].mxu1 }
 0xecd   :  { %v1708_v17 = vpop.f32.mrb[50].mxu1 }
 0xece   :  { %v3102_v18 = vpop.f32.mrb[51].mxu1 }
 0xed3   :  { %v1815_v19 = vpop.f32.mrb[52].mxu1 }
 0xed4   :  { %v3113_v14 = vpop.f32.mrb[53].mxu1 }
 0xed5   :  { %v1818_v28 = vpop.f32.mrb[54].mxu1 }
 0xed6   :  { %v3114_v22 = vpop.f32.mrb[55].mxu1 }
 0xedb   :  { %v1925_v23 = vpop.f32.mrb[56].mxu1 }
 0xedc   :  { %v3125_v24 = vpop.f32.mrb[57].mxu1 }
 0xedd   :  { %v1928_v25 = vpop.f32.mrb[58].mxu1  ;;  %v3273_v24 = vld [vmem:[%s4274_s10 + $0x20] sm:$0xff]  }
 0xede   :  { %v3126_v26 = vpop.f32.mrb[59].mxu1  ;;  %v3274_v25 = vld [vmem:[%s4274_s10 + $0x28] sm:$0xff]  }
 0xf19   :  { %v2050_v37 = vpop.f32.mrb[60].mxu1 }
 0xf1a   :  { %v3137_v27 = vpop.f32.mrb[61].mxu1 }
 0xf1b   :  { %v2053_v29 = vpop.f32.mrb[62].mxu1 }
 0xf1c   :  { %v3138_v30 = vpop.f32.mrb[63].mxu1 }
 0xf21   :  { %v2160_v32 = vpop.f32.mrb[64].mxu1 }
 0xf22   :  { %v3242_v34 = vpack.i.bf16 %v2160_v32, %v1705_v15  ;;  %v3149_v35 = vpop.f32.mrb[65].mxu1 }
 0xf23   :  { %v2163_v31 = vpop.f32.mrb[66].mxu1  ;;  %v2818_v35 = vld [vmem:[#allocation7 + $0x1] ss:$0 sm:$0xff] }
 0xf24   :  { %3243 = vrot.lane.b32.xlu1 %v3242_v34, %s3500_s24  ;;  %v3150_v36 = vpop.f32.mrb[67].mxu1 }
 0xf29   :  { %v2270_v40 = vpop.f32.mrb[68].mxu1 }
 0xf2a   :  { %v3247_v41 = vpack.i.bf16 %v2270_v40, %v1815_v19  ;;  %v3161_v39 = vpop.f32.mrb[69].mxu1  ;;  %v2819_v40 = vld [vmem:[#allocation8 + $0x1] ss:$0 sm:$0xff] }
 0xf2b   :  { %v2273_v42 = vpop.f32.mrb[70].mxu1 }
 0xf2c   :  { %3248 = vrot.lane.b32.xlu0 %v3247_v41, %s3503_s30  ;;  %v3162_v43 = vpop.f32.mrb[71].mxu1 }
 0xf31   :  { %v2380_v44 = vpop.f32.mrb[72].mxu1 }
 0xf32   :  { %v3252_v62 = vpack.i.bf16 %v2380_v44, %v1925_v23  ;;  %v3173_v45 = vpop.f32.mrb[73].mxu1  ;;  %v3272_v23 = vld [vmem:[%s4272_s8 + $0x18] sm:$0xff]   ;;  %v3275_v44 = vld [vmem:[%s4274_s10 + $0x30] sm:$0xff]  }
 0xf33   :  { %v2383_v46 = vpop.f32.mrb[74].mxu1  ;;  %v2824_v45 = vld [vmem:[#allocation10 + $0x1] ss:$0 sm:$0xff] }
 0xf34   :  { %3253 = vrot.lane.b32.xlu1 %v3252_v62, %s4281_s1  ;;  %v3174_v47 = vpop.f32.mrb[75].mxu1  ;;  %v3276_v62 = vld [vmem:[%s4274_s10 + $0x38] sm:$0xff]  }
 0xf96   :  { %v3244_v48 = vpop.permute.xlu1 %3243 }
 0xf97   :  { %v3246_v50 = vunpack.i.h.bf16 %v3244_v48  ;;  %v3245_v51 = vunpack.i.l.bf16 %v3244_v48 }
 0xf99   :  { %v2398_v55 = vsel %vm193_vm2, %v2050_v37, %v3246_v50  ;;  %v1943_v56 = vsel %vm193_vm2, %v1595_v3, %v3245_v51 }
 0xf9e   :  { %v3249_v49 = vpop.permute.xlu0 %3248 }
 0xf9f   :  { %v3251_v52 = vunpack.i.h.bf16 %v3249_v49  ;;  %v3250_v53 = vunpack.i.l.bf16 %v3249_v49 }
 0xfa1   :  { %v2399_v59 = vsel %vm644_vm4, %v2398_v55, %v3251_v52  ;;  %v1944_v60 = vsel %vm644_vm4, %v1943_v56, %v3250_v53 }
 0xfa6   :  { %v3254_v54 = vpop.permute.xlu1 %3253 }
 0xfa7   :  { %v3256_v58 = vunpack.i.h.bf16 %v3254_v54  ;;  %v3255_v11 = vunpack.i.l.bf16 %v3254_v54 }
 0xfa9   :  { %v2400_v57 = vsel %vm646_vm5, %v2399_v59, %v3256_v58  ;;  %v1945_v61 = vsel %vm646_vm5, %v1944_v60, %v3255_v11 }
 0xfaa   :  { %v2406_v63 = vpack.c.bf16 %v2400_v57, %v1945_v61 }
 0xfac   :  { %3180 = vmatmul.mubr.msk.bf16.vlgmr.msra.gmra.mrb[72].mxu0 %vm143_vm1, %v2406_v63 }
 0xfad   :  { %3199 = vmatprep.mubr.msk.bf16.mxu0 %vm3508_vm0, %v3507_v0  ;;  %3192 = vmatpush3.bf16.msra.mxu0 %v3273_v24 }
 0xfae   :  { %3193 = vmatprep.subr.bf16.mxu0 %v3507_v0 }
 0xfb1   :  { %3194 = vmatpush3.bf16.msra.mxu0 %v3274_v25 }
 0xfb2   :  { %3195 = vmatprep.subr.bf16.mxu0 %v3507_v0 }
 0xfb5   :  { %3196 = vmatpush3.bf16.msra.mxu0 %v3275_v44 }
 0xfb6   :  { %3197 = vmatprep.subr.bf16.mxu0 %v3507_v0 }
 0xfb9   :  { %3198 = vmatpush3.bf16.msra.mxu0 %v3276_v62 }
0x107f   :  { %v2464_v2 = vpop.f32.mrb[72].mxu0 }
0x1080   :  { %v2465_v5 = vadd.f32 %v2814_v1, %v2464_v2  ;;  %v3181_v6 = vpop.f32.mrb[73].mxu0 }
0x1081   :  { %v2467_v7 = vpop.f32.mrb[74].mxu0 }
0x1082   :  { %v2468_v8 = vadd.f32 %v2814_v1, %v2467_v7  ;;  %v3182_v9 = vpop.f32.mrb[75].mxu0  ;;  %v2471_v10 = vadd.f32 %v2465_v5, %v3980_v20 }
0x1084   :  { %v2477_v3 = vsel %vm143_vm1, %v2471_v10, 0.0  ;;  %v2472_v4 = vadd.f32 %v2468_v8, %v3982_v21  ;;  %v3271_v21 = vld [vmem:[%s4272_s8 + $0x10] sm:$0xff]  }
0x1085   :  { %2478 = vadd.xlane.f32.xlu0 %v2477_v3  ;;  %3184 = vmatpush3.bf16.msra.mxu1 %v3271_v21  ;;  %v2846_v21 = vld [vmem:[%s4277_s13 + $0x1] ss:$0 sm:$0xff] }
0x1086   :  { %v2480_v12 = vsel %vm143_vm1, %v2472_v4, 0.0  ;;  %3185 = vmatprep.subr.bf16.mxu1 %v3507_v0  ;;  %v2837_v0 = vld [vmem:[%s4275_s11 + $0x1] ss:$0 sm:$0xff] }
0x1087   :  { %2481 = vadd.xlane.f32.xlu1 %v2480_v12 }
0x1089   :  { %3186 = vmatpush3.bf16.msra.mxu1 %v3272_v23 }
0x1112   :  { %v2479_v13 = vpop.xlane.xlu0 %2478 }
0x1113   :  { %v2483_v15 = vmul.f32 0.03125, %v2479_v13 }
0x1114   :  { %v2482_v16 = vpop.xlane.xlu1 %2481 }
0x1115   :  { %v2485_v17 = vsub.f32 %v2471_v10, %v2483_v15  ;;  %v2484_v18 = vmul.f32 0.03125, %v2482_v16 }
0x1117   :  { %v2486_v19 = vsub.f32 %v2472_v4, %v2484_v18  ;;  %v2487_v14 = vmul.f32 %v2485_v17, %v2485_v17 }
0x1119   :  { %v2489_v28 = vsel %vm143_vm1, %v2487_v14, 0.0  ;;  %v2488_v22 = vmul.f32 %v2486_v19, %v2486_v19 }
0x111a   :  { %2490 = vadd.xlane.f32.xlu0 %v2489_v28  ;;  %v2845_v28 = vld [vmem:[%s4276_s12 + $0x1] ss:$0 sm:$0xff] }
0x111b   :  { %v2492_v20 = vsel %vm143_vm1, %v2488_v22, 0.0 }
0x111e   :  { %2493 = vadd.xlane.f32.xlu0 %v2492_v20 }
0x11a7   :  { %v2491_v26 = vpop.xlane.xlu0 %2490 }
0x11a8   :  { %v2495_v37 = vmul.f32 0.03125, %v2491_v26 }
0x11aa   :  { %v2497_v27 = vadd.f32 1e-05, %v2495_v37 }
0x11ab   :  { %v2494_v29 = vpop.xlane.xlu0 %2493 }
0x11ac   :  { %3349 = vrsqrt.f32 %v2497_v27  ;;  %v2496_v30 = vmul.f32 0.03125, %v2494_v29 }
0x11ae   :  { %v2498_v32 = vadd.f32 1e-05, %v2496_v30 }
0x11b0   :  { %3351 = vrsqrt.f32 %v2498_v32 }
0x11b6   :  { %v3350_v33 = vpop.eup %3349 }
0x11b7   :  { %v2501_v34 = vmul.f32 %v3350_v33, %v2485_v17 }
0x11b9   :  { %v2509_v36 = vmul.f32 %v2818_v35, %v2501_v34 }
0x11ba   :  { %v3352_v31 = vpop.eup %3351 }
0x11bb   :  { %v2502_v38 = vmul.f32 %v3352_v31, %v2486_v19  ;;  %v2517_v39 = vadd.f32 %v2819_v40, %v2509_v36 }
0x11bd   :  { %v2510_v41 = vmul.f32 %v2818_v35, %v2502_v38 }
0x11bf   :  { %v2518_v42 = vadd.f32 %v2819_v40, %v2510_v41 }
0x11c1   :  { %v2524_v43 = vpack.c.bf16 %v2518_v42, %v2517_v39 }
0x11c3   :  { %3188 = vmatmul.mubr.msk.bf16.vlgmr.msra.gmra.mrb[76].mxu1 %vm143_vm1, %v2524_v43 }
0x1296   :  { %v2582_v46 = vpop.f32.mrb[76].mxu1 }
0x1297   :  { %v2583_v47 = vadd.f32 %v2824_v45, %v2582_v46  ;;  %v3189_v48 = vpop.f32.mrb[77].mxu1 }
0x1298   :  { %v2585_v49 = vpop.f32.mrb[78].mxu1 }
0x1299   :  { %v2586_v50 = vadd.f32 %v2824_v45, %v2585_v49  ;;  %v3190_v51 = vpop.f32.mrb[79].mxu1  ;;  %v2589_v52 = vmax.f32 %v2583_v47, 0.0 }
0x129b   :  { %v2590_v53 = vmax.f32 %v2586_v50, 0.0 }
0x129d   :  { %v2600_v54 = vpack.c.bf16 %v2590_v53, %v2589_v52 }
0x129f   :  { %3200 = vmatmul.mubr.msk.bf16.vlgmr.msra.gmra.mrb[76].mxu0 %vm1330_vm6, %v2600_v54 }
0x1372   :  { %v2670_v55 = vpop.f32.mrb[76].mxu0 }
0x1373   :  { %v2671_v56 = vadd.f32 %v2837_v0, %v2670_v55  ;;  %v3201_v58 = vpop.f32.mrb[77].mxu0 }
0x1374   :  { %v2673_v11 = vpop.f32.mrb[78].mxu0 }
0x1375   :  { %v2674_v59 = vadd.f32 %v2837_v0, %v2673_v11  ;;  %v3202_v60 = vpop.f32.mrb[79].mxu0  ;;  %v2677_v57 = vadd.f32 %v2671_v56, %v2517_v39 }
0x1377   :  { %v2683_v61 = vsel %vm143_vm1, %v2677_v57, 0.0  ;;  %v2678_v63 = vadd.f32 %v2674_v59, %v2518_v42 }
0x1378   :  { %2684 = vadd.xlane.f32.xlu1 %v2683_v61 }
0x1379   :  { %v2686_v1 = vsel %vm143_vm1, %v2678_v63, 0.0 }
0x137a   :  { %2687 = vadd.xlane.f32.xlu0 %v2686_v1 }
0x1405   :  { %v2685_v2 = vpop.xlane.xlu1 %2684 }
0x1406   :  { %v2689_v5 = vmul.f32 0.03125, %v2685_v2 }
0x1407   :  { %v2688_v6 = vpop.xlane.xlu0 %2687 }
0x1408   :  { %v2691_v7 = vsub.f32 %v2677_v57, %v2689_v5  ;;  %v2690_v8 = vmul.f32 0.03125, %v2688_v6 }
0x140a   :  { %v2692_v9 = vsub.f32 %v2678_v63, %v2690_v8  ;;  %v2693_v10 = vmul.f32 %v2691_v7, %v2691_v7 }
0x140c   :  { %v2695_v3 = vsel %vm143_vm1, %v2693_v10, 0.0  ;;  %v2694_v4 = vmul.f32 %v2692_v9, %v2692_v9 }
0x140d   :  { %2696 = vadd.xlane.f32.xlu1 %v2695_v3 }
0x140e   :  { %v2698_v12 = vsel %vm143_vm1, %v2694_v4, 0.0 }
0x140f   :  { %2699 = vadd.xlane.f32.xlu0 %v2698_v12 }
0x149a   :  { %v2697_v13 = vpop.xlane.xlu1 %2696 }
0x149b   :  { %v2701_v15 = vmul.f32 0.03125, %v2697_v13 }
0x149c   :  { %v2700_v16 = vpop.xlane.xlu0 %2699 }
0x149d   :  { %v2703_v17 = vadd.f32 1e-05, %v2701_v15  ;;  %v2702_v18 = vmul.f32 0.03125, %v2700_v16 }
0x149f   :  { %3353 = vrsqrt.f32 %v2703_v17  ;;  %v2704_v19 = vadd.f32 1e-05, %v2702_v18 }
0x14a1   :  { %3355 = vrsqrt.f32 %v2704_v19 }
0x14a9   :  { %v3354_v14 = vpop.eup %3353 }
0x14aa   :  { %v2707_v22 = vmul.f32 %v3354_v14, %v2691_v7 }
0x14ab   :  { %v3356_v20 = vpop.eup %3355 }
0x14ac   :  { %v2708_v23 = vmul.f32 %v3356_v20, %v2692_v9  ;;  %v2715_v24 = vmul.f32 %v2845_v28, %v2707_v22 }
0x14ae   :  { %v2716_v25 = vmul.f32 %v2845_v28, %v2708_v23  ;;  %v2723_v26 = vadd.f32 %v2846_v21, %v2715_v24 }
0x14b0   :  { %v2724_v37 = vadd.f32 %v2846_v21, %v2716_v25  ;;  %2725 = vst.msk [vmem:[#allocation11] sm:$0xff] %vm143_vm1, %v2723_v26 }
0x14b2   :  { %2726 = vst.msk [vmem:[#allocation11 + $0x8] sm:$0xff] %vm143_vm1, %v2724_v37 }
0x14b3   :  { %3479 = shalt.err (!%p3476_p2)
}
0x14b4   :  { %s3480_s15 = scalar_lea.hbm %s4278_s14, 256 }
0x14b5   :  { %p3481_p3 = scmp.ne.s32.totalorder %s4278_s14, %s3480_s15  ;;  %p3484_p4 = scmp.lt.u32.totalorder %s3480_s15, %s4278_s14 }
0x14b7   :  { %p3486_p5 = pnand %p3484_p4, %p3481_p3 }
0x14b9   :  { %3489 = shalt.err (!%p3486_p5)
}
0x14ba   :  { %s4282_s30 = smov 128  }
0x14bb   :  { %2738 = dma.vmem_to_hbm [thread:$0]  %s2733_s22, 256, %s4278_s14, [#allocation4], %s4282_s30, %s4282_s30, %s3500_s24  }
0x14bc   :  { %3496 = dma.done.wait [#allocation4], 256  }
0x14bd   :  { %3497 = vsyncadd [#allocation4], 4294967040 }
0x14be   :  { %2742 = vsyncpa [#allocation3], 1 }
0x14bf   :  { %2743 = vsyncpa [#allocation6], 1 }
0x14c0   :  { %2744 = vsyncpa [#allocation9], 1 }
0x14c1   :  { %2745 = vsyncpa [#allocation4], 1 }

</bundles_post_ra>
